<compile_context>
chip_gen: v7x
topology: tpu7x:2x2x1
jax: 0.10.0
libtpu: 0.0.40
codegen_flags: <defaults>
</compile_context>

<pallas_src>
import jax
import jax.numpy as jnp
from jax.experimental import pallas as pl
from jax.experimental.pallas import tpu as pltpu

LEAK = 0.2          # nn.LeakyReLU(0.2)
EPS = 1e-5          # nn.LayerNorm default eps
DIMS = [794, 794, 794, 256, 128, 64, 32, 16, 1]
DP = 896            # 794 padded up to 7 * 128 lanes


# ---------------------------------------------------------------------------
# kernel
# ---------------------------------------------------------------------------
def _dot(h, w_ref):
    """f32 activations -> bf16 MXU matmul with f32 accumulation."""
    return jnp.dot(h.astype(jnp.bfloat16), w_ref[...],
                   preferred_element_type=jnp.float32)


def _ln_lrelu(h, g, e, d):
    """LayerNorm (biased var over `d` logical lanes) + LeakyReLU(0.2).

    One-pass variance: E[h^2] - E[h]^2.  Any lanes of `h` beyond `d` are
    exactly zero (zero-padded weights / bias), and gamma/beta are zero-padded,
    so sums over the padded width equal sums over the logical width and padded
    output lanes remain exactly zero.
    """
    inv_d = 1.0 / d
    mu = jnp.sum(h, axis=-1, keepdims=True) * inv_d
    var = jnp.sum(h * h, axis=-1, keepdims=True) * inv_d - mu * mu
    hn = (h - mu) * jax.lax.rsqrt(var + EPS) * g + e
    return jnp.maximum(hn, LEAK * hn)


def disc_kernel(z_ref, x_ref, w0z, w0x, w1, w2, w3, w4, w5, w6, w7,
                vec_ref, out_ref):
    # packed small-vector rows: [b0,g0,e0, b1,g1,e1, ..., b5,g5,e5, b6, b7]
    def row(r, width):
        return vec_ref[r:r + 1, 0:width]

    # layer 0:  y = [z, x]  ->  z @ W0[:10] + x @ W0[10:]   (concat-free)
    h = _dot(z_ref[...], w0z) + _dot(x_ref[...], w0x) + row(0, DP)
    h = _ln_lrelu(h, row(1, DP), row(2, DP), 794.0)
    # layer 1
    h = _dot(h, w1) + row(3, DP)
    h = _ln_lrelu(h, row(4, DP), row(5, DP), 794.0)
    # layer 2
    h = _dot(h, w2) + row(6, 256)
    h = _ln_lrelu(h, row(7, 256), row(8, 256), 256.0)
    # layer 3
    h = _dot(h, w3) + row(9, 128)
    h = _ln_lrelu(h, row(10, 128), row(11, 128), 128.0)
    # layer 4
    h = _dot(h, w4) + row(12, 64)
    h = _ln_lrelu(h, row(13, 64), row(14, 64), 64.0)
    # layer 5
    h = _dot(h, w5) + row(15, 32)
    h = _ln_lrelu(h, row(16, 32), row(17, 32), 32.0)
    # layer 6 (LeakyReLU, no LayerNorm)
    h = _dot(h, w6) + row(18, 16)
    h = jnp.maximum(h, LEAK * h)
    # layer 7 -> lane-dense (TILE_B, 128) output; column 0 is the real logit
    out_ref[...] = _dot(h, w7) + row(19, 128)


# ---------------------------------------------------------------------------
# parameters
# ---------------------------------------------------------------------------
def init_params(key):
    """Synthetic params (PyTorch-style U(-1/sqrt(fan_in), +) for the linears;
    random gamma/beta so the LayerNorm wiring is actually exercised)."""
    lin = []
    for i in range(8):
        fan_in, fan_out = DIMS[i], DIMS[i + 1]
        key, kw, kb = jax.random.split(key, 3)
        bound = 1.0 / float(fan_in) ** 0.5
        w = jax.random.uniform(kw, (fan_in, fan_out), jnp.float32, -bound, bound)
        b = jax.random.uniform(kb, (fan_out,), jnp.float32, -bound, bound)
        lin.append((w, b))
    ln = []
    for d in DIMS[1:7]:
        key, kg, ke = jax.random.split(key, 3)
        g = jax.random.uniform(kg, (d,), jnp.float32, 0.5, 1.5)
        e = jax.random.uniform(ke, (d,), jnp.float32, -0.5, 0.5)
        ln.append((g, e))
    return lin, ln


def prepare_kernel_params(lin, ln):
    """Pad to lane multiples, cast weights to bf16, pack the small vectors."""
    def padw(w, rows, cols):
        return jnp.pad(w, ((0, rows - w.shape[0]),
                           (0, cols - w.shape[1]))).astype(jnp.bfloat16)

    w0 = lin[0][0]
    w0z = padw(w0[:10, :], 10, DP)        # (10, 896)
    w0x = padw(w0[10:, :], 784, DP)       # (784, 896)
    w1 = padw(lin[1][0], DP, DP)          # (896, 896)
    w2 = padw(lin[2][0], DP, 256)         # (896, 256)
    w3 = lin[3][0].astype(jnp.bfloat16)   # (256, 128)
    w4 = lin[4][0].astype(jnp.bfloat16)   # (128, 64)
    w5 = lin[5][0].astype(jnp.bfloat16)   # (64, 32)
    w6 = lin[6][0].astype(jnp.bfloat16)   # (32, 16)
    w7 = padw(lin[7][0], 16, 128)         # (16, 128)

    rows = []
    for i in range(6):
        rows += [lin[i][1], ln[i][0], ln[i][1]]     # b_i, gamma_i, beta_i
    rows += [lin[6][1], lin[7][1]]                  # b6, b7
    vec = jnp.stack([jnp.pad(r, (0, DP - r.shape[0])) for r in rows])  # (20,896) f32

    return (w0z, w0x, w1, w2, w3, w4, w5, w6, w7, vec)


# ---------------------------------------------------------------------------
# wrapper
# ---------------------------------------------------------------------------
@jax.jit
def discriminator_forward(x, z, w0z, w0x, w1, w2, w3, w4, w5, w6, w7, vec):
    B = x.shape[0]
    x2 = x.reshape(B, 784).astype(jnp.float32)
    z2 = z.astype(jnp.float32)

    tile_b = min(128, -(-B // 8) * 8)            # multiple of 8, capped at 128
    b_pad = -(-B // tile_b) * tile_b
    if b_pad != B:
        x2 = jnp.pad(x2, ((0, b_pad - B), (0, 0)))
        z2 = jnp.pad(z2, ((0, b_pad - B), (0, 0)))

    def resident(shape):                          # weights: fetched once, stay in VMEM
        return pl.BlockSpec(shape, lambda i: (0, 0))

    out = pl.pallas_call(
        disc_kernel,
        out_shape=jax.ShapeDtypeStruct((b_pad, 128), jnp.float32),
        grid_spec=pltpu.PrefetchScalarGridSpec(
            num_scalar_prefetch=0,
            grid=(b_pad // tile_b,),
            in_specs=[
                pl.BlockSpec((tile_b, 10), lambda i: (i, 0)),     # z tile
                pl.BlockSpec((tile_b, 784), lambda i: (i, 0)),    # x tile
                resident(w0z.shape), resident(w0x.shape),
                resident(w1.shape), resident(w2.shape), resident(w3.shape),
                resident(w4.shape), resident(w5.shape), resident(w6.shape),
                resident(w7.shape), resident(vec.shape),
            ],
            out_specs=pl.BlockSpec((tile_b, 128), lambda i: (i, 0)),
        ),
        compiler_params=pltpu.CompilerParams(
            dimension_semantics=("parallel",)),   # batch tiles split across v7x TCs
    )(z2, x2, w0z, w0x, w1, w2, w3, w4, w5, w6, w7, vec)

    return out[:B, :1]


# ---------------------------------------------------------------------------
# reference (mirrors the PyTorch forward, with the same bf16 quantisation)
# ---------------------------------------------------------------------------
def reference_forward(x, z, lin, ln):
    B = x.shape[0]
    h = jnp.concatenate([z, x.reshape(B, 784)], axis=1).astype(jnp.float32)

    def dot_bf16(a, w):
        return jnp.dot(a.astype(jnp.bfloat16), w.astype(jnp.bfloat16),
                       preferred_element_type=jnp.float32)

    for i in range(6):
        w, b = lin[i]
        g, e = ln[i]
        h = dot_bf16(h, w) + b
        mu = jnp.mean(h, axis=-1, keepdims=True)
        var = jnp.mean((h - mu) ** 2, axis=-1, keepdims=True)
        h = (h - mu) / jnp.sqrt(var + EPS) * g + e
        h = jnp.where(h > 0, h, LEAK * h)
    h = dot_bf16(h, lin[6][0]) + lin[6][1]
    h = jnp.where(h > 0, h, LEAK * h)
    return dot_bf16(h, lin[7][0]) + lin[7][1]


if __name__ == "__main__":
    key = jax.random.PRNGKey(0)
    kx, kz, kp = jax.random.split(key, 3)

    B = 8
    x = jax.random.normal(kx, (B, 1, 28, 28), jnp.float32)       # MNIST image
    labels = jax.random.randint(kz, (B,), 0, 10)
    z = jax.nn.one_hot(labels, 10, dtype=jnp.float32)            # one-hot label

    lin, ln = init_params(kp)
    kparams = prepare_kernel_params(lin, ln)

    out = discriminator_forward(x, z, *kparams)
    out = jax.block_until_ready(out)

    ref = reference_forward(x, z, lin, ln)
    assert out.shape == (B, 1)
    assert jnp.allclose(out, ref, atol=1e-2, rtol=1e-2), (out, ref)

    print("KERNEL_OK")
</pallas_src>

<mosaic_0001>
module attributes {stable_mosaic.version = 11 : i64} {
  func.func @disc_kernel(%arg0: i32, %arg1: memref<8x10xf32, #tpu.memory_space<vmem>>, %arg2: memref<8x784xf32, #tpu.memory_space<vmem>>, %arg3: memref<10x896xbf16, #tpu.memory_space<vmem>>, %arg4: memref<784x896xbf16, #tpu.memory_space<vmem>>, %arg5: memref<896x896xbf16, #tpu.memory_space<vmem>>, %arg6: memref<896x256xbf16, #tpu.memory_space<vmem>>, %arg7: memref<256x128xbf16, #tpu.memory_space<vmem>>, %arg8: memref<128x64xbf16, #tpu.memory_space<vmem>>, %arg9: memref<64x32xbf16, #tpu.memory_space<vmem>>, %arg10: memref<32x16xbf16, #tpu.memory_space<vmem>>, %arg11: memref<16x128xbf16, #tpu.memory_space<vmem>>, %arg12: memref<20x896xf32, #tpu.memory_space<vmem>>, %arg13: memref<8x128xf32, #tpu.memory_space<vmem>>) attributes {dimension_semantics = [#tpu.dimension_semantics<parallel>], iteration_bounds = array<i64: 1>, scalar_prefetch = 0 : i64, scratch_operands = 0 : i64, tpu.core_type = #tpu.core_type<tc>, window_params = [{transform_indices = @transform_0, window_bounds = array<i64: 8, 10>}, {transform_indices = @transform_1, window_bounds = array<i64: 8, 784>}, {pipeline_mode = #tpu.pipeline_mode<synchronous>, transform_indices = @transform_2, window_bounds = array<i64: 10, 896>}, {pipeline_mode = #tpu.pipeline_mode<synchronous>, transform_indices = @transform_3, window_bounds = array<i64: 784, 896>}, {pipeline_mode = #tpu.pipeline_mode<synchronous>, transform_indices = @transform_4, window_bounds = array<i64: 896, 896>}, {pipeline_mode = #tpu.pipeline_mode<synchronous>, transform_indices = @transform_5, window_bounds = array<i64: 896, 256>}, {pipeline_mode = #tpu.pipeline_mode<synchronous>, transform_indices = @transform_6, window_bounds = array<i64: 256, 128>}, {pipeline_mode = #tpu.pipeline_mode<synchronous>, transform_indices = @transform_7, window_bounds = array<i64: 128, 64>}, {pipeline_mode = #tpu.pipeline_mode<synchronous>, transform_indices = @transform_8, window_bounds = array<i64: 64, 32>}, {pipeline_mode = #tpu.pipeline_mode<synchronous>, transform_indices = @transform_9, window_bounds = array<i64: 32, 16>}, {pipeline_mode = #tpu.pipeline_mode<synchronous>, transform_indices = @transform_10, window_bounds = array<i64: 16, 128>}, {pipeline_mode = #tpu.pipeline_mode<synchronous>, transform_indices = @transform_11, window_bounds = array<i64: 20, 896>}, {transform_indices = @transform_12, window_bounds = array<i64: 8, 128>}]} {
    %c0 = arith.constant 0 : index
    %c0_0 = arith.constant 0 : index
    %0 = vector.load %arg1[%c0, %c0_0] : memref<8x10xf32, #tpu.memory_space<vmem>>, vector<8x10xf32>
    %1 = arith.truncf %0 : vector<8x10xf32> to vector<8x10xbf16>
    %c0_1 = arith.constant 0 : index
    %c0_2 = arith.constant 0 : index
    %2 = vector.load %arg3[%c0_1, %c0_2] : memref<10x896xbf16, #tpu.memory_space<vmem>>, vector<10x896xbf16>
    %cst = arith.constant dense<0.000000e+00> : vector<8x896xf32>
    %3 = tpu.matmul %1, %2, %cst {dimension_numbers = #tpu.dot_dimension_numbers<[1], [0], [0], [1], [0, 0, 1, 1], [], []>} : vector<8x10xbf16>, vector<10x896xbf16>, vector<8x896xf32> -> vector<8x896xf32>
    %c0_3 = arith.constant 0 : index
    %c0_4 = arith.constant 0 : index
    %4 = vector.load %arg2[%c0_3, %c0_4] : memref<8x784xf32, #tpu.memory_space<vmem>>, vector<8x784xf32>
    %5 = arith.truncf %4 : vector<8x784xf32> to vector<8x784xbf16>
    %c0_5 = arith.constant 0 : index
    %c0_6 = arith.constant 0 : index
    %6 = vector.load %arg4[%c0_5, %c0_6] : memref<784x896xbf16, #tpu.memory_space<vmem>>, vector<784x896xbf16>
    %cst_7 = arith.constant dense<0.000000e+00> : vector<8x896xf32>
    %7 = tpu.matmul %5, %6, %cst_7 {dimension_numbers = #tpu.dot_dimension_numbers<[1], [0], [0], [1], [0, 0, 1, 1], [], []>} : vector<8x784xbf16>, vector<784x896xbf16>, vector<8x896xf32> -> vector<8x896xf32>
    %8 = arith.addf %3, %7 : vector<8x896xf32>
    %c0_8 = arith.constant 0 : index
    %c0_9 = arith.constant 0 : index
    %9 = vector.load %arg12[%c0_8, %c0_9] : memref<20x896xf32, #tpu.memory_space<vmem>>, vector<1x896xf32>
    %10 = vector.broadcast %9 : vector<1x896xf32> to vector<8x896xf32>
    %11 = arith.addf %8, %10 : vector<8x896xf32>
    %c1 = arith.constant 1 : index
    %c0_10 = arith.constant 0 : index
    %12 = vector.load %arg12[%c1, %c0_10] : memref<20x896xf32, #tpu.memory_space<vmem>>, vector<1x896xf32>
    %c2 = arith.constant 2 : index
    %c0_11 = arith.constant 0 : index
    %13 = vector.load %arg12[%c2, %c0_11] : memref<20x896xf32, #tpu.memory_space<vmem>>, vector<1x896xf32>
    %cst_12 = arith.constant dense<0.000000e+00> : vector<8xf32>
    %14 = vector.multi_reduction <add>, %11, %cst_12 [1] : vector<8x896xf32> to vector<8xf32>
    %15 = vector.shape_cast %14 : vector<8xf32> to vector<8x1xf32>
    %cst_13 = arith.constant 0.00125944579 : f32
    %16 = vector.broadcast %cst_13 : f32 to vector<8x1xf32>
    %17 = arith.mulf %15, %16 : vector<8x1xf32>
    %18 = arith.mulf %11, %11 : vector<8x896xf32>
    %cst_14 = arith.constant dense<0.000000e+00> : vector<8xf32>
    %19 = vector.multi_reduction <add>, %18, %cst_14 [1] : vector<8x896xf32> to vector<8xf32>
    %20 = vector.shape_cast %19 : vector<8xf32> to vector<8x1xf32>
    %cst_15 = arith.constant 0.00125944579 : f32
    %21 = vector.broadcast %cst_15 : f32 to vector<8x1xf32>
    %22 = arith.mulf %20, %21 : vector<8x1xf32>
    %23 = arith.mulf %17, %17 : vector<8x1xf32>
    %24 = arith.subf %22, %23 : vector<8x1xf32>
    %25 = vector.broadcast %17 : vector<8x1xf32> to vector<8x896xf32>
    %26 = arith.subf %11, %25 : vector<8x896xf32>
    %cst_16 = arith.constant 9.99999974E-6 : f32
    %27 = vector.broadcast %cst_16 : f32 to vector<8x1xf32>
    %28 = arith.addf %24, %27 : vector<8x1xf32>
    %29 = math.rsqrt %28 : vector<8x1xf32>
    %30 = vector.broadcast %29 : vector<8x1xf32> to vector<8x896xf32>
    %31 = arith.mulf %26, %30 : vector<8x896xf32>
    %32 = vector.broadcast %12 : vector<1x896xf32> to vector<8x896xf32>
    %33 = arith.mulf %31, %32 : vector<8x896xf32>
    %34 = vector.broadcast %13 : vector<1x896xf32> to vector<8x896xf32>
    %35 = arith.addf %33, %34 : vector<8x896xf32>
    %cst_17 = arith.constant 2.000000e-01 : f32
    %36 = vector.broadcast %cst_17 : f32 to vector<8x896xf32>
    %37 = arith.mulf %36, %35 : vector<8x896xf32>
    %38 = arith.maximumf %35, %37 : vector<8x896xf32>
    %39 = arith.truncf %38 : vector<8x896xf32> to vector<8x896xbf16>
    %c0_18 = arith.constant 0 : index
    %c0_19 = arith.constant 0 : index
    %40 = vector.load %arg5[%c0_18, %c0_19] : memref<896x896xbf16, #tpu.memory_space<vmem>>, vector<896x896xbf16>
    %cst_20 = arith.constant dense<0.000000e+00> : vector<8x896xf32>
    %41 = tpu.matmul %39, %40, %cst_20 {dimension_numbers = #tpu.dot_dimension_numbers<[1], [0], [0], [1], [0, 0, 1, 1], [], []>} : vector<8x896xbf16>, vector<896x896xbf16>, vector<8x896xf32> -> vector<8x896xf32>
    %c3 = arith.constant 3 : index
    %c0_21 = arith.constant 0 : index
    %42 = vector.load %arg12[%c3, %c0_21] : memref<20x896xf32, #tpu.memory_space<vmem>>, vector<1x896xf32>
    %43 = vector.broadcast %42 : vector<1x896xf32> to vector<8x896xf32>
    %44 = arith.addf %41, %43 : vector<8x896xf32>
    %c4 = arith.constant 4 : index
    %c0_22 = arith.constant 0 : index
    %45 = vector.load %arg12[%c4, %c0_22] : memref<20x896xf32, #tpu.memory_space<vmem>>, vector<1x896xf32>
    %c5 = arith.constant 5 : index
    %c0_23 = arith.constant 0 : index
    %46 = vector.load %arg12[%c5, %c0_23] : memref<20x896xf32, #tpu.memory_space<vmem>>, vector<1x896xf32>
    %cst_24 = arith.constant dense<0.000000e+00> : vector<8xf32>
    %47 = vector.multi_reduction <add>, %44, %cst_24 [1] : vector<8x896xf32> to vector<8xf32>
    %48 = vector.shape_cast %47 : vector<8xf32> to vector<8x1xf32>
    %cst_25 = arith.constant 0.00125944579 : f32
    %49 = vector.broadcast %cst_25 : f32 to vector<8x1xf32>
    %50 = arith.mulf %48, %49 : vector<8x1xf32>
    %51 = arith.mulf %44, %44 : vector<8x896xf32>
    %cst_26 = arith.constant dense<0.000000e+00> : vector<8xf32>
    %52 = vector.multi_reduction <add>, %51, %cst_26 [1] : vector<8x896xf32> to vector<8xf32>
    %53 = vector.shape_cast %52 : vector<8xf32> to vector<8x1xf32>
    %cst_27 = arith.constant 0.00125944579 : f32
    %54 = vector.broadcast %cst_27 : f32 to vector<8x1xf32>
    %55 = arith.mulf %53, %54 : vector<8x1xf32>
    %56 = arith.mulf %50, %50 : vector<8x1xf32>
    %57 = arith.subf %55, %56 : vector<8x1xf32>
    %58 = vector.broadcast %50 : vector<8x1xf32> to vector<8x896xf32>
    %59 = arith.subf %44, %58 : vector<8x896xf32>
    %cst_28 = arith.constant 9.99999974E-6 : f32
    %60 = vector.broadcast %cst_28 : f32 to vector<8x1xf32>
    %61 = arith.addf %57, %60 : vector<8x1xf32>
    %62 = math.rsqrt %61 : vector<8x1xf32>
    %63 = vector.broadcast %62 : vector<8x1xf32> to vector<8x896xf32>
    %64 = arith.mulf %59, %63 : vector<8x896xf32>
    %65 = vector.broadcast %45 : vector<1x896xf32> to vector<8x896xf32>
    %66 = arith.mulf %64, %65 : vector<8x896xf32>
    %67 = vector.broadcast %46 : vector<1x896xf32> to vector<8x896xf32>
    %68 = arith.addf %66, %67 : vector<8x896xf32>
    %cst_29 = arith.constant 2.000000e-01 : f32
    %69 = vector.broadcast %cst_29 : f32 to vector<8x896xf32>
    %70 = arith.mulf %69, %68 : vector<8x896xf32>
    %71 = arith.maximumf %68, %70 : vector<8x896xf32>
    %72 = arith.truncf %71 : vector<8x896xf32> to vector<8x896xbf16>
    %c0_30 = arith.constant 0 : index
    %c0_31 = arith.constant 0 : index
    %73 = vector.load %arg6[%c0_30, %c0_31] : memref<896x256xbf16, #tpu.memory_space<vmem>>, vector<896x256xbf16>
    %cst_32 = arith.constant dense<0.000000e+00> : vector<8x256xf32>
    %74 = tpu.matmul %72, %73, %cst_32 {dimension_numbers = #tpu.dot_dimension_numbers<[1], [0], [0], [1], [0, 0, 1, 1], [], []>} : vector<8x896xbf16>, vector<896x256xbf16>, vector<8x256xf32> -> vector<8x256xf32>
    %c6 = arith.constant 6 : index
    %c0_33 = arith.constant 0 : index
    %75 = vector.load %arg12[%c6, %c0_33] : memref<20x896xf32, #tpu.memory_space<vmem>>, vector<1x256xf32>
    %76 = vector.broadcast %75 : vector<1x256xf32> to vector<8x256xf32>
    %77 = arith.addf %74, %76 : vector<8x256xf32>
    %c7 = arith.constant 7 : index
    %c0_34 = arith.constant 0 : index
    %78 = vector.load %arg12[%c7, %c0_34] : memref<20x896xf32, #tpu.memory_space<vmem>>, vector<1x256xf32>
    %c8 = arith.constant 8 : index
    %c0_35 = arith.constant 0 : index
    %79 = vector.load %arg12[%c8, %c0_35] : memref<20x896xf32, #tpu.memory_space<vmem>>, vector<1x256xf32>
    %cst_36 = arith.constant dense<0.000000e+00> : vector<8xf32>
    %80 = vector.multi_reduction <add>, %77, %cst_36 [1] : vector<8x256xf32> to vector<8xf32>
    %81 = vector.shape_cast %80 : vector<8xf32> to vector<8x1xf32>
    %cst_37 = arith.constant 3.906250e-03 : f32
    %82 = vector.broadcast %cst_37 : f32 to vector<8x1xf32>
    %83 = arith.mulf %81, %82 : vector<8x1xf32>
    %84 = arith.mulf %77, %77 : vector<8x256xf32>
    %cst_38 = arith.constant dense<0.000000e+00> : vector<8xf32>
    %85 = vector.multi_reduction <add>, %84, %cst_38 [1] : vector<8x256xf32> to vector<8xf32>
    %86 = vector.shape_cast %85 : vector<8xf32> to vector<8x1xf32>
    %cst_39 = arith.constant 3.906250e-03 : f32
    %87 = vector.broadcast %cst_39 : f32 to vector<8x1xf32>
    %88 = arith.mulf %86, %87 : vector<8x1xf32>
    %89 = arith.mulf %83, %83 : vector<8x1xf32>
    %90 = arith.subf %88, %89 : vector<8x1xf32>
    %91 = vector.broadcast %83 : vector<8x1xf32> to vector<8x256xf32>
    %92 = arith.subf %77, %91 : vector<8x256xf32>
    %cst_40 = arith.constant 9.99999974E-6 : f32
    %93 = vector.broadcast %cst_40 : f32 to vector<8x1xf32>
    %94 = arith.addf %90, %93 : vector<8x1xf32>
    %95 = math.rsqrt %94 : vector<8x1xf32>
    %96 = vector.broadcast %95 : vector<8x1xf32> to vector<8x256xf32>
    %97 = arith.mulf %92, %96 : vector<8x256xf32>
    %98 = vector.broadcast %78 : vector<1x256xf32> to vector<8x256xf32>
    %99 = arith.mulf %97, %98 : vector<8x256xf32>
    %100 = vector.broadcast %79 : vector<1x256xf32> to vector<8x256xf32>
    %101 = arith.addf %99, %100 : vector<8x256xf32>
    %cst_41 = arith.constant 2.000000e-01 : f32
    %102 = vector.broadcast %cst_41 : f32 to vector<8x256xf32>
    %103 = arith.mulf %102, %101 : vector<8x256xf32>
    %104 = arith.maximumf %101, %103 : vector<8x256xf32>
    %105 = arith.truncf %104 : vector<8x256xf32> to vector<8x256xbf16>
    %c0_42 = arith.constant 0 : index
    %c0_43 = arith.constant 0 : index
    %106 = vector.load %arg7[%c0_42, %c0_43] : memref<256x128xbf16, #tpu.memory_space<vmem>>, vector<256x128xbf16>
    %cst_44 = arith.constant dense<0.000000e+00> : vector<8x128xf32>
    %107 = tpu.matmul %105, %106, %cst_44 {dimension_numbers = #tpu.dot_dimension_numbers<[1], [0], [0], [1], [0, 0, 1, 1], [], []>} : vector<8x256xbf16>, vector<256x128xbf16>, vector<8x128xf32> -> vector<8x128xf32>
    %c9 = arith.constant 9 : index
    %c0_45 = arith.constant 0 : index
    %108 = vector.load %arg12[%c9, %c0_45] : memref<20x896xf32, #tpu.memory_space<vmem>>, vector<1x128xf32>
    %109 = vector.broadcast %108 : vector<1x128xf32> to vector<8x128xf32>
    %110 = arith.addf %107, %109 : vector<8x128xf32>
    %c10 = arith.constant 10 : index
    %c0_46 = arith.constant 0 : index
    %111 = vector.load %arg12[%c10, %c0_46] : memref<20x896xf32, #tpu.memory_space<vmem>>, vector<1x128xf32>
    %c11 = arith.constant 11 : index
    %c0_47 = arith.constant 0 : index
    %112 = vector.load %arg12[%c11, %c0_47] : memref<20x896xf32, #tpu.memory_space<vmem>>, vector<1x128xf32>
    %cst_48 = arith.constant dense<0.000000e+00> : vector<8xf32>
    %113 = vector.multi_reduction <add>, %110, %cst_48 [1] : vector<8x128xf32> to vector<8xf32>
    %114 = vector.shape_cast %113 : vector<8xf32> to vector<8x1xf32>
    %cst_49 = arith.constant 7.812500e-03 : f32
    %115 = vector.broadcast %cst_49 : f32 to vector<8x1xf32>
    %116 = arith.mulf %114, %115 : vector<8x1xf32>
    %117 = arith.mulf %110, %110 : vector<8x128xf32>
    %cst_50 = arith.constant dense<0.000000e+00> : vector<8xf32>
    %118 = vector.multi_reduction <add>, %117, %cst_50 [1] : vector<8x128xf32> to vector<8xf32>
    %119 = vector.shape_cast %118 : vector<8xf32> to vector<8x1xf32>
    %cst_51 = arith.constant 7.812500e-03 : f32
    %120 = vector.broadcast %cst_51 : f32 to vector<8x1xf32>
    %121 = arith.mulf %119, %120 : vector<8x1xf32>
    %122 = arith.mulf %116, %116 : vector<8x1xf32>
    %123 = arith.subf %121, %122 : vector<8x1xf32>
    %124 = vector.broadcast %116 : vector<8x1xf32> to vector<8x128xf32>
    %125 = arith.subf %110, %124 : vector<8x128xf32>
    %cst_52 = arith.constant 9.99999974E-6 : f32
    %126 = vector.broadcast %cst_52 : f32 to vector<8x1xf32>
    %127 = arith.addf %123, %126 : vector<8x1xf32>
    %128 = math.rsqrt %127 : vector<8x1xf32>
    %129 = vector.broadcast %128 : vector<8x1xf32> to vector<8x128xf32>
    %130 = arith.mulf %125, %129 : vector<8x128xf32>
    %131 = vector.broadcast %111 : vector<1x128xf32> to vector<8x128xf32>
    %132 = arith.mulf %130, %131 : vector<8x128xf32>
    %133 = vector.broadcast %112 : vector<1x128xf32> to vector<8x128xf32>
    %134 = arith.addf %132, %133 : vector<8x128xf32>
    %cst_53 = arith.constant 2.000000e-01 : f32
    %135 = vector.broadcast %cst_53 : f32 to vector<8x128xf32>
    %136 = arith.mulf %135, %134 : vector<8x128xf32>
    %137 = arith.maximumf %134, %136 : vector<8x128xf32>
    %138 = arith.truncf %137 : vector<8x128xf32> to vector<8x128xbf16>
    %c0_54 = arith.constant 0 : index
    %c0_55 = arith.constant 0 : index
    %139 = vector.load %arg8[%c0_54, %c0_55] : memref<128x64xbf16, #tpu.memory_space<vmem>>, vector<128x64xbf16>
    %cst_56 = arith.constant dense<0.000000e+00> : vector<8x64xf32>
    %140 = tpu.matmul %138, %139, %cst_56 {dimension_numbers = #tpu.dot_dimension_numbers<[1], [0], [0], [1], [0, 0, 1, 1], [], []>} : vector<8x128xbf16>, vector<128x64xbf16>, vector<8x64xf32> -> vector<8x64xf32>
    %c12 = arith.constant 12 : index
    %c0_57 = arith.constant 0 : index
    %141 = vector.load %arg12[%c12, %c0_57] : memref<20x896xf32, #tpu.memory_space<vmem>>, vector<1x64xf32>
    %142 = vector.broadcast %141 : vector<1x64xf32> to vector<8x64xf32>
    %143 = arith.addf %140, %142 : vector<8x64xf32>
    %c13 = arith.constant 13 : index
    %c0_58 = arith.constant 0 : index
    %144 = vector.load %arg12[%c13, %c0_58] : memref<20x896xf32, #tpu.memory_space<vmem>>, vector<1x64xf32>
    %c14 = arith.constant 14 : index
    %c0_59 = arith.constant 0 : index
    %145 = vector.load %arg12[%c14, %c0_59] : memref<20x896xf32, #tpu.memory_space<vmem>>, vector<1x64xf32>
    %cst_60 = arith.constant dense<0.000000e+00> : vector<8xf32>
    %146 = vector.multi_reduction <add>, %143, %cst_60 [1] : vector<8x64xf32> to vector<8xf32>
    %147 = vector.shape_cast %146 : vector<8xf32> to vector<8x1xf32>
    %cst_61 = arith.constant 1.562500e-02 : f32
    %148 = vector.broadcast %cst_61 : f32 to vector<8x1xf32>
    %149 = arith.mulf %147, %148 : vector<8x1xf32>
    %150 = arith.mulf %143, %143 : vector<8x64xf32>
    %cst_62 = arith.constant dense<0.000000e+00> : vector<8xf32>
    %151 = vector.multi_reduction <add>, %150, %cst_62 [1] : vector<8x64xf32> to vector<8xf32>
    %152 = vector.shape_cast %151 : vector<8xf32> to vector<8x1xf32>
    %cst_63 = arith.constant 1.562500e-02 : f32
    %153 = vector.broadcast %cst_63 : f32 to vector<8x1xf32>
    %154 = arith.mulf %152, %153 : vector<8x1xf32>
    %155 = arith.mulf %149, %149 : vector<8x1xf32>
    %156 = arith.subf %154, %155 : vector<8x1xf32>
    %157 = vector.broadcast %149 : vector<8x1xf32> to vector<8x64xf32>
    %158 = arith.subf %143, %157 : vector<8x64xf32>
    %cst_64 = arith.constant 9.99999974E-6 : f32
    %159 = vector.broadcast %cst_64 : f32 to vector<8x1xf32>
    %160 = arith.addf %156, %159 : vector<8x1xf32>
    %161 = math.rsqrt %160 : vector<8x1xf32>
    %162 = vector.broadcast %161 : vector<8x1xf32> to vector<8x64xf32>
    %163 = arith.mulf %158, %162 : vector<8x64xf32>
    %164 = vector.broadcast %144 : vector<1x64xf32> to vector<8x64xf32>
    %165 = arith.mulf %163, %164 : vector<8x64xf32>
    %166 = vector.broadcast %145 : vector<1x64xf32> to vector<8x64xf32>
    %167 = arith.addf %165, %166 : vector<8x64xf32>
    %cst_65 = arith.constant 2.000000e-01 : f32
    %168 = vector.broadcast %cst_65 : f32 to vector<8x64xf32>
    %169 = arith.mulf %168, %167 : vector<8x64xf32>
    %170 = arith.maximumf %167, %169 : vector<8x64xf32>
    %171 = arith.truncf %170 : vector<8x64xf32> to vector<8x64xbf16>
    %c0_66 = arith.constant 0 : index
    %c0_67 = arith.constant 0 : index
    %172 = vector.load %arg9[%c0_66, %c0_67] : memref<64x32xbf16, #tpu.memory_space<vmem>>, vector<64x32xbf16>
    %cst_68 = arith.constant dense<0.000000e+00> : vector<8x32xf32>
    %173 = tpu.matmul %171, %172, %cst_68 {dimension_numbers = #tpu.dot_dimension_numbers<[1], [0], [0], [1], [0, 0, 1, 1], [], []>} : vector<8x64xbf16>, vector<64x32xbf16>, vector<8x32xf32> -> vector<8x32xf32>
    %c15 = arith.constant 15 : index
    %c0_69 = arith.constant 0 : index
    %174 = vector.load %arg12[%c15, %c0_69] : memref<20x896xf32, #tpu.memory_space<vmem>>, vector<1x32xf32>
    %175 = vector.broadcast %174 : vector<1x32xf32> to vector<8x32xf32>
    %176 = arith.addf %173, %175 : vector<8x32xf32>
    %c16 = arith.constant 16 : index
    %c0_70 = arith.constant 0 : index
    %177 = vector.load %arg12[%c16, %c0_70] : memref<20x896xf32, #tpu.memory_space<vmem>>, vector<1x32xf32>
    %c17 = arith.constant 17 : index
    %c0_71 = arith.constant 0 : index
    %178 = vector.load %arg12[%c17, %c0_71] : memref<20x896xf32, #tpu.memory_space<vmem>>, vector<1x32xf32>
    %cst_72 = arith.constant dense<0.000000e+00> : vector<8xf32>
    %179 = vector.multi_reduction <add>, %176, %cst_72 [1] : vector<8x32xf32> to vector<8xf32>
    %180 = vector.shape_cast %179 : vector<8xf32> to vector<8x1xf32>
    %cst_73 = arith.constant 3.125000e-02 : f32
    %181 = vector.broadcast %cst_73 : f32 to vector<8x1xf32>
    %182 = arith.mulf %180, %181 : vector<8x1xf32>
    %183 = arith.mulf %176, %176 : vector<8x32xf32>
    %cst_74 = arith.constant dense<0.000000e+00> : vector<8xf32>
    %184 = vector.multi_reduction <add>, %183, %cst_74 [1] : vector<8x32xf32> to vector<8xf32>
    %185 = vector.shape_cast %184 : vector<8xf32> to vector<8x1xf32>
    %cst_75 = arith.constant 3.125000e-02 : f32
    %186 = vector.broadcast %cst_75 : f32 to vector<8x1xf32>
    %187 = arith.mulf %185, %186 : vector<8x1xf32>
    %188 = arith.mulf %182, %182 : vector<8x1xf32>
    %189 = arith.subf %187, %188 : vector<8x1xf32>
    %190 = vector.broadcast %182 : vector<8x1xf32> to vector<8x32xf32>
    %191 = arith.subf %176, %190 : vector<8x32xf32>
    %cst_76 = arith.constant 9.99999974E-6 : f32
    %192 = vector.broadcast %cst_76 : f32 to vector<8x1xf32>
    %193 = arith.addf %189, %192 : vector<8x1xf32>
    %194 = math.rsqrt %193 : vector<8x1xf32>
    %195 = vector.broadcast %194 : vector<8x1xf32> to vector<8x32xf32>
    %196 = arith.mulf %191, %195 : vector<8x32xf32>
    %197 = vector.broadcast %177 : vector<1x32xf32> to vector<8x32xf32>
    %198 = arith.mulf %196, %197 : vector<8x32xf32>
    %199 = vector.broadcast %178 : vector<1x32xf32> to vector<8x32xf32>
    %200 = arith.addf %198, %199 : vector<8x32xf32>
    %cst_77 = arith.constant 2.000000e-01 : f32
    %201 = vector.broadcast %cst_77 : f32 to vector<8x32xf32>
    %202 = arith.mulf %201, %200 : vector<8x32xf32>
    %203 = arith.maximumf %200, %202 : vector<8x32xf32>
    %204 = arith.truncf %203 : vector<8x32xf32> to vector<8x32xbf16>
    %c0_78 = arith.constant 0 : index
    %c0_79 = arith.constant 0 : index
    %205 = vector.load %arg10[%c0_78, %c0_79] : memref<32x16xbf16, #tpu.memory_space<vmem>>, vector<32x16xbf16>
    %cst_80 = arith.constant dense<0.000000e+00> : vector<8x16xf32>
    %206 = tpu.matmul %204, %205, %cst_80 {dimension_numbers = #tpu.dot_dimension_numbers<[1], [0], [0], [1], [0, 0, 1, 1], [], []>} : vector<8x32xbf16>, vector<32x16xbf16>, vector<8x16xf32> -> vector<8x16xf32>
    %c18 = arith.constant 18 : index
    %c0_81 = arith.constant 0 : index
    %207 = vector.load %arg12[%c18, %c0_81] : memref<20x896xf32, #tpu.memory_space<vmem>>, vector<1x16xf32>
    %208 = vector.broadcast %207 : vector<1x16xf32> to vector<8x16xf32>
    %209 = arith.addf %206, %208 : vector<8x16xf32>
    %cst_82 = arith.constant 2.000000e-01 : f32
    %210 = vector.broadcast %cst_82 : f32 to vector<8x16xf32>
    %211 = arith.mulf %210, %209 : vector<8x16xf32>
    %212 = arith.maximumf %209, %211 : vector<8x16xf32>
    %213 = arith.truncf %212 : vector<8x16xf32> to vector<8x16xbf16>
    %c0_83 = arith.constant 0 : index
    %c0_84 = arith.constant 0 : index
    %214 = vector.load %arg11[%c0_83, %c0_84] : memref<16x128xbf16, #tpu.memory_space<vmem>>, vector<16x128xbf16>
    %cst_85 = arith.constant dense<0.000000e+00> : vector<8x128xf32>
    %215 = tpu.matmul %213, %214, %cst_85 {dimension_numbers = #tpu.dot_dimension_numbers<[1], [0], [0], [1], [0, 0, 1, 1], [], []>} : vector<8x16xbf16>, vector<16x128xbf16>, vector<8x128xf32> -> vector<8x128xf32>
    %c19 = arith.constant 19 : index
    %c0_86 = arith.constant 0 : index
    %216 = vector.load %arg12[%c19, %c0_86] : memref<20x896xf32, #tpu.memory_space<vmem>>, vector<1x128xf32>
    %217 = vector.broadcast %216 : vector<1x128xf32> to vector<8x128xf32>
    %218 = arith.addf %215, %217 : vector<8x128xf32>
    %c0_87 = arith.constant 0 : index
    %c0_88 = arith.constant 0 : index
    %219 = vector.load %arg13[%c0_87, %c0_88] : memref<8x128xf32, #tpu.memory_space<vmem>>, vector<8x128xf32>
    tpu.vector_store %arg13[%c0_87, %c0_88], %218 {strides = array<i32>} : memref<8x128xf32, #tpu.memory_space<vmem>>, vector<8x128xf32>,
    return
  }
  func.func @transform_0(%arg0: i32) -> (i32, i32) {
    %c0_i32 = arith.constant 0 : i32
    %c0_i32_0 = arith.constant 0 : i32
    return %arg0, %c0_i32 : i32, i32
  }
  func.func @transform_1(%arg0: i32) -> (i32, i32) {
    %c0_i32 = arith.constant 0 : i32
    %c0_i32_0 = arith.constant 0 : i32
    return %arg0, %c0_i32 : i32, i32
  }
  func.func @transform_2(%arg0: i32) -> (i32, i32) {
    %c0_i32 = arith.constant 0 : i32
    %c0_i32_0 = arith.constant 0 : i32
    %c0_i32_1 = arith.constant 0 : i32
    return %c0_i32, %c0_i32_0 : i32, i32
  }
  func.func @transform_3(%arg0: i32) -> (i32, i32) {
    %c0_i32 = arith.constant 0 : i32
    %c0_i32_0 = arith.constant 0 : i32
    %c0_i32_1 = arith.constant 0 : i32
    return %c0_i32, %c0_i32_0 : i32, i32
  }
  func.func @transform_4(%arg0: i32) -> (i32, i32) {
    %c0_i32 = arith.constant 0 : i32
    %c0_i32_0 = arith.constant 0 : i32
    %c0_i32_1 = arith.constant 0 : i32
    return %c0_i32, %c0_i32_0 : i32, i32
  }
  func.func @transform_5(%arg0: i32) -> (i32, i32) {
    %c0_i32 = arith.constant 0 : i32
    %c0_i32_0 = arith.constant 0 : i32
    %c0_i32_1 = arith.constant 0 : i32
    return %c0_i32, %c0_i32_0 : i32, i32
  }
  func.func @transform_6(%arg0: i32) -> (i32, i32) {
    %c0_i32 = arith.constant 0 : i32
    %c0_i32_0 = arith.constant 0 : i32
    %c0_i32_1 = arith.constant 0 : i32
    return %c0_i32, %c0_i32_0 : i32, i32
  }
  func.func @transform_7(%arg0: i32) -> (i32, i32) {
    %c0_i32 = arith.constant 0 : i32
    %c0_i32_0 = arith.constant 0 : i32
    %c0_i32_1 = arith.constant 0 : i32
    return %c0_i32, %c0_i32_0 : i32, i32
  }
  func.func @transform_8(%arg0: i32) -> (i32, i32) {
    %c0_i32 = arith.constant 0 : i32
    %c0_i32_0 = arith.constant 0 : i32
    %c0_i32_1 = arith.constant 0 : i32
    return %c0_i32, %c0_i32_0 : i32, i32
  }
  func.func @transform_9(%arg0: i32) -> (i32, i32) {
    %c0_i32 = arith.constant 0 : i32
    %c0_i32_0 = arith.constant 0 : i32
    %c0_i32_1 = arith.constant 0 : i32
    return %c0_i32, %c0_i32_0 : i32, i32
  }
  func.func @transform_10(%arg0: i32) -> (i32, i32) {
    %c0_i32 = arith.constant 0 : i32
    %c0_i32_0 = arith.constant 0 : i32
    %c0_i32_1 = arith.constant 0 : i32
    return %c0_i32, %c0_i32_0 : i32, i32
  }
  func.func @transform_11(%arg0: i32) -> (i32, i32) {
    %c0_i32 = arith.constant 0 : i32
    %c0_i32_0 = arith.constant 0 : i32
    %c0_i32_1 = arith.constant 0 : i32
    return %c0_i32, %c0_i32_0 : i32, i32
  }
  func.func @transform_12(%arg0: i32) -> (i32, i32) {
    %c0_i32 = arith.constant 0 : i32
    %c0_i32_0 = arith.constant 0 : i32
    return %arg0, %c0_i32 : i32, i32
  }
}

</mosaic_0001>

<bundles_post_ra>
// kernel: discriminator_forward.1
= control target key start
LH: loop header
LB: loop body
LE: loop exit
PB: predicated region body
PF: predicated region fallthrough
CT: control target
= control target key end

     0   :  { %17 = vsyncpa [#allocation3], 0  ;;  %s11521_s0 = inlined_call_operand.hbm [shape: f32[8,10], index: 0, kind: input, shape index: {}]   ;;  %s11522_s1 = inlined_call_operand.vmem [shape: f32[8,784], index: 1, kind: input, shape index: {}]   ;;  %s11523_s2 = inlined_call_operand.hbm [shape: bf16[10,896], index: 2, kind: input, shape index: {}]   ;;  %s11524_s3 = inlined_call_operand.hbm [shape: bf16[784,896], index: 3, kind: input, shape index: {}]   ;;  %s11525_s4 = inlined_call_operand.hbm [shape: bf16[896,896], index: 4, kind: input, shape index: {}]   ;;  %s11526_s5 = inlined_call_operand.hbm [shape: bf16[896,256], index: 5, kind: input, shape index: {}]   ;;  %s11527_s6 = inlined_call_operand.hbm [shape: bf16[256,128], index: 6, kind: input, shape index: {}]   ;;  %s11528_s7 = inlined_call_operand.vmem [shape: bf16[128,64], index: 7, kind: input, shape index: {}]   ;;  %s11529_s8 = inlined_call_operand.vmem [shape: bf16[64,32], index: 8, kind: input, shape index: {}]   ;;  %s11530_s9 = inlined_call_operand.vmem [shape: bf16[32,16], index: 9, kind: input, shape index: {}]   ;;  %s11531_s10 = inlined_call_operand.hbm [shape: bf16[16,128], index: 10, kind: input, shape index: {}]   ;;  %s11532_s11 = inlined_call_operand.hbm [shape: f32[20,896], index: 11, kind: input, shape index: {}]   ;;  %s11533_s12 = inlined_call_operand.vmem [shape: f32[8,128], index: 12, kind: output, shape index: {}]  }
   0x1   :  { %18 = vsyncpa [#allocation5], 0 }
   0x2   :  { %19 = vsyncpa [#allocation8], 0 }
   0x3   :  { %20 = vsyncpa [#allocation11], 0 }
   0x4   :  { %21 = vsyncpa [#allocation14], 0  ;;  %s10860_s21 = smov [#allocation4]   ;;  %s10674_s25 = scalar_lea.hbm %s11523_s2, 896 }
   0x5   :  { %s39_s22 = sshll.u32 %s10860_s21, 4  ;;  %p10675_p0 = scmp.ne.s32.totalorder %s11523_s2, %s10674_s25  ;;  %s40_s22 = int_to_ptr.vmem [resolvable:$true] %s39_s22 }
   0x6   :  { %p10678_p1 = scmp.lt.u32.totalorder %s10674_s25, %s11523_s2 }
   0x8   :  { %p10680_p2 = pnand %p10678_p1, %p10675_p0 }
   0xa   :  { %10683 = shalt.err (!%p10680_p2)
}
   0xb   :  { %s10684_s30 = scalar_lea.vmem %s40_s22, 896  ;;  %p10689_p4 = scmp.lt.s32.totalorder %s40_s22, %s40_s22 }
   0xc   :  { %p10685_p3 = scmp.ne.s32.totalorder %s40_s22, %s10684_s30  ;;  %p10690_p5 = scmp.lt.s32.totalorder %s10684_s30, %s10684_s30 }
   0xe   :  { %p10691_p6 = por %p10690_p5, %p10689_p4 }
  0x10   :  { %p10692_p7 = pnand %p10691_p6, %p10685_p3 }
  0x12   :  { %10695 = shalt.err (!%p10692_p7)
}
  0x13   :  { %s10861_s13 = smov 448   ;;  %s10862_s14 = smov 28  }
  0x14   :  { %45 = dma.hbm_to_vmem [thread:$0]  %s11523_s2, 896, %s40_s22, [#allocation5], %s10861_s13, %s10861_s13, %s10862_s14  }
  0x15   :  { %s10863_s17 = smov [#allocation7]   ;;  %s10864_s19 = smov [#allocation10]  }
  0x16   :  { %s63_s18 = sshll.u32 %s10863_s17, 4  ;;  %s87_s20 = sshll.u32 %s10864_s19, 4  ;;  %s64_s18 = int_to_ptr.vmem [resolvable:$true] %s63_s18  ;;  %s88_s20 = int_to_ptr.vmem [resolvable:$true] %s87_s20 }
  0x17   :  { %s10696_s24 = scalar_lea.hbm %s11525_s4, 50176 }
  0x18   :  { %p10697_p8 = scmp.ne.s32.totalorder %s11525_s4, %s10696_s24  ;;  %p10700_p9 = scmp.lt.u32.totalorder %s10696_s24, %s11525_s4 }
  0x1a   :  { %p10702_p10 = pnand %p10700_p9, %p10697_p8 }
  0x1c   :  { %10705 = shalt.err (!%p10702_p10)
}
  0x1d   :  { %s10706_s2 = scalar_lea.vmem %s64_s18, 50176  ;;  %p10711_p12 = scmp.lt.s32.totalorder %s64_s18, %s64_s18 }
  0x1e   :  { %p10707_p11 = scmp.ne.s32.totalorder %s64_s18, %s10706_s2  ;;  %p10712_p13 = scmp.lt.s32.totalorder %s10706_s2, %s10706_s2 }
  0x20   :  { %p10713_p0 = por %p10712_p13, %p10711_p12 }
  0x22   :  { %p10714_p1 = pnand %p10713_p0, %p10707_p11 }
  0x24   :  { %10717 = shalt.err (!%p10714_p1)
}
  0x25   :  { %69 = dma.hbm_to_vmem [thread:$0]  %s11525_s4, 50176, %s64_s18, [#allocation8], %s10861_s13, %s10861_s13, %s10862_s14  }
  0x26   :  { %s10718_s16 = scalar_lea.hbm %s11527_s6, 2048 }
  0x27   :  { %p10719_p2 = scmp.ne.s32.totalorder %s11527_s6, %s10718_s16  ;;  %p10722_p3 = scmp.lt.u32.totalorder %s10718_s16, %s11527_s6 }
  0x29   :  { %p10724_p4 = pnand %p10722_p3, %p10719_p2 }
  0x2b   :  { %10727 = shalt.err (!%p10724_p4)
}
  0x2c   :  { %s10728_s24 = scalar_lea.vmem %s88_s20, 2048  ;;  %p10733_p6 = scmp.lt.s32.totalorder %s88_s20, %s88_s20 }
  0x2d   :  { %p10729_p5 = scmp.ne.s32.totalorder %s88_s20, %s10728_s24  ;;  %p10734_p7 = scmp.lt.s32.totalorder %s10728_s24, %s10728_s24 }
  0x2f   :  { %p10735_p8 = por %p10734_p7, %p10733_p6 }
  0x31   :  { %p10736_p9 = pnand %p10735_p8, %p10729_p5 }
  0x33   :  { %10739 = shalt.err (!%p10736_p9)
}
  0x34   :  { %s10865_s4 = smov 64   ;;  %s10866_s18 = smov 4  }
  0x35   :  { %93 = dma.hbm_to_vmem [thread:$0]  %s11527_s6, 2048, %s88_s20, [#allocation11], %s10865_s4, %s10865_s4, %s10866_s18  }
  0x36   :  { %s10867_s27 = smov [#allocation2]   ;;  %s10868_s2 = smov [#allocation6]  }
  0x37   :  { %s28_s28 = sshll.u32 %s10867_s27, 4  ;;  %s51_s22 = sshll.u32 %s10868_s2, 4  ;;  %s29_s28 = int_to_ptr.vmem [resolvable:$true] %s28_s28  ;;  %s52_s22 = int_to_ptr.vmem [resolvable:$true] %s51_s22 }
  0x38   :  { %s10740_s15 = scalar_lea.hbm %s11521_s0, 128 }
  0x39   :  { %p10741_p10 = scmp.ne.s32.totalorder %s11521_s0, %s10740_s15  ;;  %p10744_p11 = scmp.lt.u32.totalorder %s10740_s15, %s11521_s0 }
  0x3b   :  { %p10746_p12 = pnand %p10744_p11, %p10741_p10 }
  0x3d   :  { %10749 = shalt.err (!%p10746_p12)
}
  0x3e   :  { %s10750_s6 = scalar_lea.vmem %s29_s28, 128  ;;  %p10755_p0 = scmp.lt.s32.totalorder %s29_s28, %s29_s28 }
  0x3f   :  { %p10751_p13 = scmp.ne.s32.totalorder %s29_s28, %s10750_s6  ;;  %p10756_p1 = scmp.lt.s32.totalorder %s10750_s6, %s10750_s6 }
  0x41   :  { %p10757_p2 = por %p10756_p1, %p10755_p0 }
  0x43   :  { %p10758_p3 = pnand %p10757_p2, %p10751_p13 }
  0x45   :  { %10761 = shalt.err (!%p10758_p3)
}
  0x46   :  { %31 = dma.hbm_to_vmem [thread:$0]  %s11521_s0, 128, %s29_s28, [#allocation3]  }
  0x47   :  { %s10762_s26 = scalar_lea.hbm %s11524_s3, 43904 }
  0x48   :  { %p10763_p4 = scmp.ne.s32.totalorder %s11524_s3, %s10762_s26  ;;  %p10766_p5 = scmp.lt.u32.totalorder %s10762_s26, %s11524_s3 }
  0x4a   :  { %p10768_p6 = pnand %p10766_p5, %p10763_p4 }
  0x4c   :  { %10771 = shalt.err (!%p10768_p6)
}
  0x4d   :  { %s10772_s15 = scalar_lea.vmem %s52_s22, 43904  ;;  %p10777_p8 = scmp.lt.s32.totalorder %s52_s22, %s52_s22 }
  0x4e   :  { %p10773_p7 = scmp.ne.s32.totalorder %s52_s22, %s10772_s15  ;;  %p10778_p9 = scmp.lt.s32.totalorder %s10772_s15, %s10772_s15 }
  0x50   :  { %p10779_p10 = por %p10778_p9, %p10777_p8 }
  0x52   :  { %p10780_p11 = pnand %p10779_p10, %p10773_p7 }
  0x54   :  { %10783 = shalt.err (!%p10780_p11)
}
  0x55   :  { %57 = dma.hbm_to_vmem [thread:$0]  %s11524_s3, 43904, %s52_s22, [#allocation5], %s10861_s13, %s10861_s13, %s10862_s14  }
  0x56   :  { %s10869_s16 = smov [#allocation9]   ;;  %s10784_s6 = scalar_lea.hbm %s11526_s5, 14336 }
  0x57   :  { %s75_s17 = sshll.u32 %s10869_s16, 4  ;;  %p10785_p12 = scmp.ne.s32.totalorder %s11526_s5, %s10784_s6  ;;  %s76_s17 = int_to_ptr.vmem [resolvable:$true] %s75_s17 }
  0x58   :  { %p10788_p13 = scmp.lt.u32.totalorder %s10784_s6, %s11526_s5 }
  0x5a   :  { %p10790_p0 = pnand %p10788_p13, %p10785_p12 }
  0x5c   :  { %10793 = shalt.err (!%p10790_p0)
}
  0x5d   :  { %s10794_s26 = scalar_lea.vmem %s76_s17, 14336  ;;  %p10799_p2 = scmp.lt.s32.totalorder %s76_s17, %s76_s17 }
  0x5e   :  { %p10795_p1 = scmp.ne.s32.totalorder %s76_s17, %s10794_s26  ;;  %p10800_p3 = scmp.lt.s32.totalorder %s10794_s26, %s10794_s26 }
  0x60   :  { %p10801_p4 = por %p10800_p3, %p10799_p2 }
  0x62   :  { %p10802_p5 = pnand %p10801_p4, %p10795_p1 }
  0x64   :  { %10805 = shalt.err (!%p10802_p5)
}
  0x65   :  { %s10870_s3 = smov 128   ;;  %s10871_s13 = smov 8  }
  0x66   :  { %81 = dma.hbm_to_vmem [thread:$0]  %s11526_s5, 14336, %s76_s17, [#allocation8], %s10870_s3, %s10870_s3, %s10871_s13  }
  0x67   :  { %s10872_s27 = smov [#allocation12]   ;;  %s10873_s29 = smov [#allocation13]  }
  0x68   :  { %s105_s2 = sshll.u32 %s10872_s27, 4  ;;  %s117_s30 = sshll.u32 %s10873_s29, 4  ;;  %s106_s2 = int_to_ptr.vmem [resolvable:$true] %s105_s2  ;;  %s11028_s30 = int_to_ptr.vmem [resolvable:$true] %s117_s30 }
  0x69   :  { %s10806_s28 = scalar_lea.hbm %s11531_s10, 128 }
  0x6a   :  { %p10807_p6 = scmp.ne.s32.totalorder %s11531_s10, %s10806_s28  ;;  %p10810_p7 = scmp.lt.u32.totalorder %s10806_s28, %s11531_s10 }
  0x6c   :  { %p10812_p8 = pnand %p10810_p7, %p10807_p6 }
  0x6e   :  { %10815 = shalt.err (!%p10812_p8)
}
  0x6f   :  { %s10816_s5 = scalar_lea.vmem %s106_s2, 128  ;;  %p10821_p10 = scmp.lt.s32.totalorder %s106_s2, %s106_s2 }
  0x70   :  { %p10817_p9 = scmp.ne.s32.totalorder %s106_s2, %s10816_s5  ;;  %p10822_p11 = scmp.lt.s32.totalorder %s10816_s5, %s10816_s5 }
  0x72   :  { %p10823_p12 = por %p10822_p11, %p10821_p10 }
  0x74   :  { %p10824_p13 = pnand %p10823_p12, %p10817_p9 }
  0x76   :  { %10827 = shalt.err (!%p10824_p13)
}
  0x77   :  { %111 = dma.hbm_to_vmem [thread:$0]  %s11531_s10, 128, %s106_s2, [#allocation11], %s10865_s4, %s10865_s4, %s10866_s18  }
  0x78   :  { %s10828_s25 = scalar_lea.hbm %s11532_s11, 2688 }
  0x79   :  { %p10829_p0 = scmp.ne.s32.totalorder %s11532_s11, %s10828_s25  ;;  %p10832_p1 = scmp.lt.u32.totalorder %s10828_s25, %s11532_s11 }
  0x7b   :  { %p10834_p2 = pnand %p10832_p1, %p10829_p0 }
  0x7d   :  { %10837 = shalt.err (!%p10834_p2)
}
  0x7e   :  { %s10838_s22 = scalar_lea.vmem %s11028_s30, 2688  ;;  %p10843_p4 = scmp.lt.s32.totalorder %s11028_s30, %s11028_s30 }
  0x7f   :  { %p10839_p3 = scmp.ne.s32.totalorder %s11028_s30, %s10838_s22  ;;  %p10844_p5 = scmp.lt.s32.totalorder %s10838_s22, %s10838_s22 }
  0x81   :  { %p10845_p6 = por %p10844_p5, %p10843_p4 }
  0x83   :  { %p10846_p7 = pnand %p10845_p6, %p10839_p3 }
  0x85   :  { %10849 = shalt.err (!%p10846_p7)
}
  0x86   :  { %s10874_s10 = smov 896   ;;  %s10875_s4 = smov 56  }
  0x87   :  { %123 = dma.hbm_to_vmem [thread:$0]  %s11532_s11, 2688, %s11028_s30, [#allocation14], %s10874_s10, %s10874_s10, %s10875_s4  }
  0x88   :  { %10850 = dma.done.wait [#allocation3], 128  }
  0x89   :  { %10851 = vsyncadd [#allocation3], 4294967168 }
  0x8a   :  { %10852 = dma.done.wait [#allocation5], 44800  }
  0x8b   :  { %10853 = vsyncadd [#allocation5], 4294922496 }
  0x8c   :  { %10854 = dma.done.wait [#allocation8], 64512  }
  0x8d   :  { %10855 = vsyncadd [#allocation8], 4294902784 }
  0x8e   :  { %10856 = dma.done.wait [#allocation11], 2176  }
  0x8f   :  { %10857 = vsyncadd [#allocation11], 4294965120 }
  0x90   :  { %10858 = dma.done.wait [#allocation14], 2688  }
  0x91   :  { %10859 = vsyncadd [#allocation14], 4294964608  ;;  %v9403_v0 = vld [vmem:[#allocation6 + $0x4] ss:$28 sps:$4 sm:$0xff]   ;;  %v9409_v4 = vld [vmem:[#allocation6 + $0x3c] ss:$28 sps:$4 sm:$0xff]  }
  0x92   :  { %v9405_v1 = vld [vmem:[#allocation6 + $0x384] ss:$28 sps:$4 sm:$0xff]   ;;  %2333 = vmatprep.subr.bf16.mxu0 %v9403_v0  ;;  %v9411_v5 = vld [vmem:[#allocation6 + $0x3bc] ss:$28 sps:$4 sm:$0xff]   ;;  %v9415_v8 = vld [vmem:[#allocation6 + $0x74] ss:$28 sps:$4 sm:$0xff]  }
  0x93   :  { %v9407_v2 = vld [vmem:[#allocation6] ss:$28 sps:$4 sm:$0xff]   ;;  %2374 = vmatprep.subr.bf16.mxu1 %v9405_v1  ;;  %v9413_v6 = vld [vmem:[#allocation6 + $0x38] ss:$28 sps:$4 sm:$0xff]   ;;  %v9419_v10 = vld [vmem:[#allocation6 + $0x70] ss:$28 sps:$4 sm:$0xff]  }
  0x94   :  { %v9408_v3 = vld [vmem:[#allocation6 + $0x380] ss:$28 sps:$4 sm:$0xff]   ;;  %2334 = vmatpush1.bf16.msra.mxu0 %v9407_v2  ;;  %v9414_v7 = vld [vmem:[#allocation6 + $0x3b8] ss:$28 sps:$4 sm:$0xff]   ;;  %v9420_v11 = vld [vmem:[#allocation6 + $0x3f0] ss:$28 sps:$4 sm:$0xff]  }
  0x95   :  { %2375 = vmatpush1.bf16.msra.mxu1 %v9408_v3  ;;  %2335 = vmatprep.subr.bf16.mxu0 %v9409_v4  ;;  %v9417_v9 = vld [vmem:[#allocation6 + $0x3f4] ss:$28 sps:$4 sm:$0xff]   ;;  %v9421_v12 = vld [vmem:[#allocation6 + $0xac] ss:$28 sps:$4 sm:$0xff]   ;;  %v9427_v16 = vld [vmem:[#allocation6 + $0xe4] ss:$28 sps:$4 sm:$0xff]  }
  0x96   :  { %2376 = vmatprep.subr.bf16.mxu1 %v9411_v5  ;;  %v9423_v13 = vld [vmem:[#allocation6 + $0x42c] ss:$28 sps:$4 sm:$0xff]   ;;  %v9429_v17 = vld [vmem:[#allocation6 + $0x464] ss:$28 sps:$4 sm:$0xff]   ;;  %v9433_v20 = vld [vmem:[#allocation6 + $0x11c] ss:$28 sps:$4 sm:$0xff]  }
  0x97   :  { %v9425_v14 = vld [vmem:[#allocation6 + $0xa8] ss:$28 sps:$4 sm:$0xff]   ;;  %v9431_v18 = vld [vmem:[#allocation6 + $0xe0] ss:$28 sps:$4 sm:$0xff]   ;;  %v9437_v22 = vld [vmem:[#allocation6 + $0x118] ss:$28 sps:$4 sm:$0xff]  }
  0x98   :  { %2336 = vmatpush1.bf16.msra.mxu0 %v9413_v6  ;;  %v9426_v15 = vld [vmem:[#allocation6 + $0x428] ss:$28 sps:$4 sm:$0xff]   ;;  %v9432_v19 = vld [vmem:[#allocation6 + $0x460] ss:$28 sps:$4 sm:$0xff]   ;;  %v9438_v23 = vld [vmem:[#allocation6 + $0x498] ss:$28 sps:$4 sm:$0xff]  }
  0x99   :  { %2377 = vmatpush1.bf16.msra.mxu1 %v9414_v7  ;;  %2337 = vmatprep.subr.bf16.mxu0 %v9415_v8  ;;  %v9435_v21 = vld [vmem:[#allocation6 + $0x49c] ss:$28 sps:$4 sm:$0xff]   ;;  %v9439_v24 = vld [vmem:[#allocation6 + $0x154] ss:$28 sps:$4 sm:$0xff]   ;;  %v9445_v28 = vld [vmem:[#allocation6 + $0x18c] ss:$28 sps:$4 sm:$0xff]  }
  0x9a   :  { %2378 = vmatprep.subr.bf16.mxu1 %v9417_v9  ;;  %v9441_v25 = vld [vmem:[#allocation6 + $0x4d4] ss:$28 sps:$4 sm:$0xff]   ;;  %v9447_v29 = vld [vmem:[#allocation6 + $0x50c] ss:$28 sps:$4 sm:$0xff]   ;;  %v9451_v32 = vld [vmem:[#allocation6 + $0x1c4] ss:$28 sps:$4 sm:$0xff]  }
  0x9b   :  { %v9443_v26 = vld [vmem:[#allocation6 + $0x150] ss:$28 sps:$4 sm:$0xff]   ;;  %v9449_v30 = vld [vmem:[#allocation6 + $0x188] ss:$28 sps:$4 sm:$0xff]   ;;  %v9455_v34 = vld [vmem:[#allocation6 + $0x1c0] ss:$28 sps:$4 sm:$0xff]  }
  0x9c   :  { %2338 = vmatpush1.bf16.msra.mxu0 %v9419_v10  ;;  %v9444_v27 = vld [vmem:[#allocation6 + $0x4d0] ss:$28 sps:$4 sm:$0xff]   ;;  %v9450_v31 = vld [vmem:[#allocation6 + $0x508] ss:$28 sps:$4 sm:$0xff]   ;;  %v9456_v35 = vld [vmem:[#allocation6 + $0x540] ss:$28 sps:$4 sm:$0xff]  }
  0x9d   :  { %2379 = vmatpush1.bf16.msra.mxu1 %v9420_v11  ;;  %2339 = vmatprep.subr.bf16.mxu0 %v9421_v12  ;;  %v9453_v33 = vld [vmem:[#allocation6 + $0x544] ss:$28 sps:$4 sm:$0xff]   ;;  %v9457_v36 = vld [vmem:[#allocation6 + $0x1fc] ss:$28 sps:$4 sm:$0xff]   ;;  %v9463_v40 = vld [vmem:[#allocation6 + $0x234] ss:$28 sps:$4 sm:$0xff]  }
  0x9e   :  { %2380 = vmatprep.subr.bf16.mxu1 %v9423_v13  ;;  %v9459_v37 = vld [vmem:[#allocation6 + $0x57c] ss:$28 sps:$4 sm:$0xff]   ;;  %v9465_v41 = vld [vmem:[#allocation6 + $0x5b4] ss:$28 sps:$4 sm:$0xff]   ;;  %v9469_v44 = vld [vmem:[#allocation6 + $0x26c] ss:$28 sps:$4 sm:$0xff]  }
  0x9f   :  { %v9461_v38 = vld [vmem:[#allocation6 + $0x1f8] ss:$28 sps:$4 sm:$0xff]   ;;  %v9467_v42 = vld [vmem:[#allocation6 + $0x230] ss:$28 sps:$4 sm:$0xff]   ;;  %v9473_v47 = vld [vmem:[#allocation6 + $0x268] ss:$28 sps:$4 sm:$0xff]  }
  0xa0   :  { %2340 = vmatpush1.bf16.msra.mxu0 %v9425_v14  ;;  %v9462_v39 = vld [vmem:[#allocation6 + $0x578] ss:$28 sps:$4 sm:$0xff]   ;;  %v9468_v43 = vld [vmem:[#allocation6 + $0x5b0] ss:$28 sps:$4 sm:$0xff]   ;;  %v9474_v48 = vld [vmem:[#allocation6 + $0x5e8] ss:$28 sps:$4 sm:$0xff]  }
  0xa1   :  { %2381 = vmatpush1.bf16.msra.mxu1 %v9426_v15  ;;  %2341 = vmatprep.subr.bf16.mxu0 %v9427_v16  ;;  %v9471_v45 = vld [vmem:[#allocation6 + $0x5ec] ss:$28 sps:$4 sm:$0xff]   ;;  %v162_v50 = vld [vmem:[%s11522_s1 + $0x18] sm:$0xff]  ;;  %v9475_v51 = vld [vmem:[#allocation6 + $0x2a4] ss:$28 sps:$4 sm:$0xff]   ;;  %vm2329_vm0 = vcmask 130048  }
  0xa2   :  { %2382 = vmatprep.subr.bf16.mxu1 %v9429_v17  ;;  %v160_v46 = vld [vmem:[%s11522_s1 + $0x8] sm:$0xff]  ;;  %v11070_v52 = vpack.c.bf16 %v162_v50, %v162_v50  ;;  %v9477_v53 = vld [vmem:[#allocation6 + $0x624] ss:$28 sps:$4 sm:$0xff]   ;;  %v9481_v56 = vld [vmem:[#allocation6 + $0x2dc] ss:$28 sps:$4 sm:$0xff]   ;;  %vm3018_vm1 = vcmask 1044480  }
  0xa3   :  { %v11065_v49 = vpack.c.bf16 %v160_v46, %v160_v46  ;;  %v9479_v54 = vld [vmem:[#allocation6 + $0x2a0] ss:$28 sps:$4 sm:$0xff]   ;;  %v9485_v58 = vld [vmem:[#allocation6 + $0x2d8] ss:$28 sps:$4 sm:$0xff]   ;;  %v9491_v62 = vld [vmem:[#allocation6 + $0x310] ss:$28 sps:$4 sm:$0xff]  }
  0xa4   :  { %2342 = vmatpush1.bf16.msra.mxu0 %v9431_v18  ;;  %2406 = vmatprep.mubr.bf16.mxu1 %v11070_v52  ;;  %v9480_v55 = vld [vmem:[#allocation6 + $0x620] ss:$28 sps:$4 sm:$0xff]   ;;  %v9486_v59 = vld [vmem:[#allocation6 + $0x658] ss:$28 sps:$4 sm:$0xff]   ;;  %v9492_v63 = vld [vmem:[#allocation6 + $0x690] ss:$28 sps:$4 sm:$0xff]  }
  0xa5   :  { %2383 = vmatpush1.bf16.msra.mxu1 %v9432_v19  ;;  %2343 = vmatprep.subr.bf16.mxu0 %v9433_v20  ;;  %v9483_v57 = vld [vmem:[#allocation6 + $0x65c] ss:$28 sps:$4 sm:$0xff]   ;;  %v9487_v60 = vld [vmem:[#allocation6 + $0x314] ss:$28 sps:$4 sm:$0xff]   ;;  %v9493_v0 = vld [vmem:[#allocation6 + $0x34c] ss:$28 sps:$4 sm:$0xff]  }
  0xa6   :  { %2384 = vmatprep.subr.bf16.mxu1 %v9435_v21  ;;  %2365 = vmatprep.mubr.bf16.mxu0 %v11065_v49  ;;  %v9489_v61 = vld [vmem:[#allocation6 + $0x694] ss:$28 sps:$4 sm:$0xff]   ;;  %v9495_v1 = vld [vmem:[#allocation6 + $0x6cc] ss:$28 sps:$4 sm:$0xff]   ;;  %v159_v4 = vld [vmem:[%s11522_s1] sm:$0xff]  ;;  %vm10878_vm2 = vmmov 0  }
  0xa7   :  { %v9497_v2 = vld [vmem:[#allocation6 + $0x348] ss:$28 sps:$4 sm:$0xff]   ;;  %v161_v5 = vld [vmem:[%s11522_s1 + $0x10] sm:$0xff]  ;;  %v11080_v8 = vpack.c.bf16 %v159_v4, %v159_v4  ;;  %v9499_v10 = vld [vmem:[#allocation6 + $0x700] ss:$28 sps:$4 sm:$0xff]   ;;  %vm3014_vm3 = vcmask 80896  }
  0xa8   :  { %2344 = vmatpush1.bf16.msra.mxu0 %v9437_v22  ;;  %v9498_v3 = vld [vmem:[#allocation6 + $0x6c8] ss:$28 sps:$4 sm:$0xff]   ;;  %v11082_v9 = vpack.c.bf16 %v161_v5, %v161_v5  ;;  %v9507_v12 = vld [vmem:[#allocation6 + $0x73c] ss:$28 sps:$4 sm:$0xff]   ;;  %v9513_v16 = vld [vmem:[#allocation6 + $0x774] ss:$28 sps:$4 sm:$0xff]  }
  0xa9   :  { %2385 = vmatpush1.bf16.msra.mxu1 %v9438_v23  ;;  %2345 = vmatprep.subr.bf16.mxu0 %v9439_v24  ;;  %v9501_v6 = vld [vmem:[#allocation6 + $0x704] ss:$28 sps:$4 sm:$0xff]   ;;  %v9504_v7 = vld [vmem:[#allocation6 + $0xc] ss:$28 sps:$4 sm:$0xff]   ;;  %v9505_v14 = vld [vmem:[#allocation6 + $0x738] ss:$28 sps:$4 sm:$0xff]  }
  0xaa   :  { %2386 = vmatprep.subr.bf16.mxu1 %v9441_v25  ;;  %v9502_v11 = vld [vmem:[#allocation6 + $0x8] ss:$28 sps:$4 sm:$0xff]   ;;  %v9508_v15 = vld [vmem:[#allocation6 + $0x40] ss:$28 sps:$4 sm:$0xff]   ;;  %v9511_v18 = vld [vmem:[#allocation6 + $0x770] ss:$28 sps:$4 sm:$0xff]  }
  0xab   :  { %v9510_v13 = vld [vmem:[#allocation6 + $0x44] ss:$28 sps:$4 sm:$0xff]   ;;  %v9516_v17 = vld [vmem:[#allocation6 + $0x7c] ss:$28 sps:$4 sm:$0xff]   ;;  %v9519_v20 = vld [vmem:[#allocation6 + $0x7ac] ss:$28 sps:$4 sm:$0xff]  }
  0xac   :  { %2346 = vmatpush1.bf16.msra.mxu0 %v9443_v26  ;;  %v9514_v19 = vld [vmem:[#allocation6 + $0x78] ss:$28 sps:$4 sm:$0xff]   ;;  %v9517_v22 = vld [vmem:[#allocation6 + $0x7a8] ss:$28 sps:$4 sm:$0xff]   ;;  %v9520_v23 = vld [vmem:[#allocation6 + $0xb0] ss:$28 sps:$4 sm:$0xff]  }
  0xad   :  { %2387 = vmatpush1.bf16.msra.mxu1 %v9444_v27  ;;  %2347 = vmatprep.subr.bf16.mxu0 %v9445_v28  ;;  %v9522_v21 = vld [vmem:[#allocation6 + $0xb4] ss:$28 sps:$4 sm:$0xff]   ;;  %v9525_v24 = vld [vmem:[#allocation6 + $0x7e4] ss:$28 sps:$4 sm:$0xff]   ;;  %v9528_v25 = vld [vmem:[#allocation6 + $0xec] ss:$28 sps:$4 sm:$0xff]  }
  0xae   :  { %2388 = vmatprep.subr.bf16.mxu1 %v9447_v29  ;;  %v9523_v26 = vld [vmem:[#allocation6 + $0x7e0] ss:$28 sps:$4 sm:$0xff]   ;;  %v9526_v27 = vld [vmem:[#allocation6 + $0xe8] ss:$28 sps:$4 sm:$0xff]   ;;  %v9585_v4 = vld [vmem:[#allocation6 + $0xa14] ss:$28 sps:$4 sm:$0xff]  }
  0xaf   :  { %v9531_v28 = vld [vmem:[#allocation6 + $0x81c] ss:$28 sps:$4 sm:$0xff]   ;;  %v9534_v29 = vld [vmem:[#allocation6 + $0x124] ss:$28 sps:$4 sm:$0xff]   ;;  %vm7920_vm4 = vcmask 523264   ;;  %vm8019_vm5 = vcmask 261120  }
  0xb0   :  { %2348 = vmatpush1.bf16.msra.mxu0 %v9449_v30  ;;  %v9529_v30 = vld [vmem:[#allocation6 + $0x818] ss:$28 sps:$4 sm:$0xff]   ;;  %v9556_v50 = vld [vmem:[#allocation6 + $0x200] ss:$28 sps:$4 sm:$0xff]  }
  0xb1   :  { %2389 = vmatpush1.bf16.msra.mxu1 %v9450_v31  ;;  %2349 = vmatprep.subr.bf16.mxu0 %v9451_v32  ;;  %v9532_v31 = vld [vmem:[#allocation6 + $0x120] ss:$28 sps:$4 sm:$0xff]   ;;  %v9537_v32 = vld [vmem:[#allocation6 + $0x854] ss:$28 sps:$4 sm:$0xff]  }
  0xb2   :  { %2390 = vmatprep.subr.bf16.mxu1 %v9453_v33  ;;  %v9540_v33 = vld [vmem:[#allocation6 + $0x15c] ss:$28 sps:$4 sm:$0xff]  }
  0xb3   :  { %v9555_v46 = vld [vmem:[#allocation6 + $0x8fc] ss:$28 sps:$4 sm:$0xff]  }
  0xb4   :  { %2350 = vmatpush1.bf16.msra.mxu0 %v9455_v34  ;;  %v164_v34 = vld [vmem:[%s11522_s1 + $0x28] sm:$0xff]  ;;  %v9588_v5 = vld [vmem:[#allocation6 + $0x31c] ss:$28 sps:$4 sm:$0xff]  }
  0xb5   :  { %2391 = vmatpush1.bf16.msra.mxu1 %v9456_v35  ;;  %2351 = vmatprep.subr.bf16.mxu0 %v9457_v36  ;;  %v11090_v35 = vpack.c.bf16 %v164_v34, %v164_v34  ;;  %v9535_v36 = vld [vmem:[#allocation6 + $0x850] ss:$28 sps:$4 sm:$0xff]  }
  0xb6   :  { %2392 = vmatprep.subr.bf16.mxu1 %v9459_v37  ;;  %v9538_v37 = vld [vmem:[#allocation6 + $0x158] ss:$28 sps:$4 sm:$0xff]   ;;  %v9621_v34 = vld [vmem:[#allocation6 + $0x7ec] ss:$28 sps:$4 sm:$0xff]  }
  0xb8   :  { %2352 = vmatpush1.bf16.msra.mxu0 %v9461_v38  ;;  %v9543_v38 = vld [vmem:[#allocation6 + $0x88c] ss:$28 sps:$4 sm:$0xff]  }
  0xb9   :  { %2393 = vmatpush1.bf16.msra.mxu1 %v9462_v39  ;;  %2353 = vmatprep.subr.bf16.mxu0 %v9463_v40  ;;  %v9546_v39 = vld [vmem:[#allocation6 + $0x194] ss:$28 sps:$4 sm:$0xff]   ;;  %v9541_v40 = vld [vmem:[#allocation6 + $0x888] ss:$28 sps:$4 sm:$0xff]  }
  0xba   :  { %2394 = vmatprep.subr.bf16.mxu1 %v9465_v41  ;;  %v9544_v41 = vld [vmem:[#allocation6 + $0x190] ss:$28 sps:$4 sm:$0xff]  }
  0xbc   :  { %2354 = vmatpush1.bf16.msra.mxu0 %v9467_v42  ;;  %v9549_v42 = vld [vmem:[#allocation6 + $0x8c4] ss:$28 sps:$4 sm:$0xff]  }
  0xbd   :  { %2395 = vmatpush1.bf16.msra.mxu1 %v9468_v43  ;;  %2355 = vmatprep.subr.bf16.mxu0 %v9469_v44  ;;  %v9552_v43 = vld [vmem:[#allocation6 + $0x1cc] ss:$28 sps:$4 sm:$0xff]   ;;  %v9547_v44 = vld [vmem:[#allocation6 + $0x8c0] ss:$28 sps:$4 sm:$0xff]  }
  0xbe   :  { %2396 = vmatprep.subr.bf16.mxu1 %v9471_v45  ;;  %v9550_v45 = vld [vmem:[#allocation6 + $0x1c8] ss:$28 sps:$4 sm:$0xff]  }
  0xc0   :  { %2356 = vmatpush1.bf16.msra.mxu0 %v9473_v47  ;;  %v9558_v47 = vld [vmem:[#allocation6 + $0x204] ss:$28 sps:$4 sm:$0xff]  }
  0xc1   :  { %2397 = vmatpush1.bf16.msra.mxu1 %v9474_v48  ;;  %2357 = vmatprep.subr.bf16.mxu0 %v9475_v51  ;;  %v9553_v48 = vld [vmem:[#allocation6 + $0x8f8] ss:$28 sps:$4 sm:$0xff]  }
  0xc2   :  { %2398 = vmatprep.subr.bf16.mxu1 %v9477_v53  ;;  %v9561_v51 = vld [vmem:[#allocation6 + $0x934] ss:$28 sps:$4 sm:$0xff]   ;;  %v9564_v53 = vld [vmem:[#allocation6 + $0x23c] ss:$28 sps:$4 sm:$0xff]  }
  0xc4   :  { %2358 = vmatpush1.bf16.msra.mxu0 %v9479_v54  ;;  %v9559_v54 = vld [vmem:[#allocation6 + $0x930] ss:$28 sps:$4 sm:$0xff]  }
  0xc5   :  { %2399 = vmatpush1.bf16.msra.mxu1 %v9480_v55  ;;  %2359 = vmatprep.subr.bf16.mxu0 %v9481_v56  ;;  %v9562_v55 = vld [vmem:[#allocation6 + $0x238] ss:$28 sps:$4 sm:$0xff]   ;;  %v9567_v56 = vld [vmem:[#allocation6 + $0x96c] ss:$28 sps:$4 sm:$0xff]  }
  0xc6   :  { %2400 = vmatprep.subr.bf16.mxu1 %v9483_v57  ;;  %v9570_v57 = vld [vmem:[#allocation6 + $0x274] ss:$28 sps:$4 sm:$0xff]  }
  0xc8   :  { %2360 = vmatpush1.bf16.msra.mxu0 %v9485_v58  ;;  %v9565_v58 = vld [vmem:[#allocation6 + $0x968] ss:$28 sps:$4 sm:$0xff]  }
  0xc9   :  { %2401 = vmatpush1.bf16.msra.mxu1 %v9486_v59  ;;  %2361 = vmatprep.subr.bf16.mxu0 %v9487_v60  ;;  %v9568_v59 = vld [vmem:[#allocation6 + $0x270] ss:$28 sps:$4 sm:$0xff]   ;;  %v9573_v60 = vld [vmem:[#allocation6 + $0x9a4] ss:$28 sps:$4 sm:$0xff]  }
  0xca   :  { %2402 = vmatprep.subr.bf16.mxu1 %v9489_v61  ;;  %v9576_v61 = vld [vmem:[#allocation6 + $0x2ac] ss:$28 sps:$4 sm:$0xff]  }
  0xcc   :  { %2362 = vmatpush1.bf16.msra.mxu0 %v9491_v62  ;;  %v9571_v62 = vld [vmem:[#allocation6 + $0x9a0] ss:$28 sps:$4 sm:$0xff]  }
  0xcd   :  { %2403 = vmatpush1.bf16.msra.mxu1 %v9492_v63  ;;  %2363 = vmatprep.subr.bf16.mxu0 %v9493_v0  ;;  %v9574_v63 = vld [vmem:[#allocation6 + $0x2a8] ss:$28 sps:$4 sm:$0xff]   ;;  %v9579_v0 = vld [vmem:[#allocation6 + $0x9dc] ss:$28 sps:$4 sm:$0xff]  }
  0xce   :  { %2404 = vmatprep.subr.bf16.mxu1 %v9495_v1  ;;  %v9582_v1 = vld [vmem:[#allocation6 + $0x2e4] ss:$28 sps:$4 sm:$0xff]  }
  0xd0   :  { %2364 = vmatpush1.bf16.msra.mxu0 %v9497_v2  ;;  %v9577_v2 = vld [vmem:[#allocation6 + $0x9d8] ss:$28 sps:$4 sm:$0xff]  }
  0xd1   :  { %2405 = vmatpush1.bf16.msra.mxu1 %v9498_v3  ;;  %2415 = vmatprep.subr.bf16.mxu0 %v9501_v6  ;;  %v9580_v3 = vld [vmem:[#allocation6 + $0x2e0] ss:$28 sps:$4 sm:$0xff]   ;;  %v9583_v6 = vld [vmem:[#allocation6 + $0xa10] ss:$28 sps:$4 sm:$0xff]  }
  0xd2   :  { %2497 = vmatprep.subr.bf16.mxu1 %v9504_v7  ;;  %v9586_v7 = vld [vmem:[#allocation6 + $0x318] ss:$28 sps:$4 sm:$0xff]  }
  0xd3   :  { %2366 = vmatmul.mubr.bf16.vlgmr.msra.gmra.mrb[0].mxu0 %v11080_v8 }
  0xd4   :  { %2407 = vmatmul.mubr.bf16.vlgmr.msra.gmra.mrb[0].mxu1 %v11082_v9  ;;  %2416 = vmatpush1.bf16.msra.mxu0 %v9499_v10  ;;  %v9591_v10 = vld [vmem:[#allocation6 + $0xa4c] ss:$28 sps:$4 sm:$0xff]  }
  0xd5   :  { %2498 = vmatpush1.bf16.msra.mxu1 %v9502_v11  ;;  %2417 = vmatprep.subr.bf16.mxu0 %v9507_v12  ;;  %v9594_v11 = vld [vmem:[#allocation6 + $0x354] ss:$28 sps:$4 sm:$0xff]   ;;  %v9589_v12 = vld [vmem:[#allocation6 + $0xa48] ss:$28 sps:$4 sm:$0xff]  }
  0xd6   :  { %2499 = vmatprep.subr.bf16.mxu1 %v9510_v13  ;;  %2529 = vmatprep.mubr.bf16.mxu1 %v11065_v49  ;;  %v9592_v13 = vld [vmem:[#allocation6 + $0x350] ss:$28 sps:$4 sm:$0xff]  }
  0xd7   :  { %2447 = vmatprep.mubr.bf16.mxu0 %v11090_v35 }
  0xd8   :  { %2418 = vmatpush1.bf16.msra.mxu0 %v9505_v14  ;;  %v163_v14 = vld [vmem:[%s11522_s1 + $0x20] sm:$0xff] }
  0xd9   :  { %2500 = vmatpush1.bf16.msra.mxu1 %v9508_v15  ;;  %2419 = vmatprep.subr.bf16.mxu0 %v9513_v16  ;;  %v9597_v15 = vld [vmem:[#allocation6 + $0xa84] ss:$28 sps:$4 sm:$0xff]   ;;  %v9600_v16 = vld [vmem:[#allocation6 + $0x70c] ss:$28 sps:$4 sm:$0xff]  }
  0xda   :  { %2501 = vmatprep.subr.bf16.mxu1 %v9516_v17  ;;  %v11096_v17 = vpack.c.bf16 %v163_v14, %v163_v14  ;;  %v9678_v14 = vld [vmem:[#allocation6 + $0x62c] ss:$28 sps:$4 sm:$0xff]  }
  0xdc   :  { %2420 = vmatpush1.bf16.msra.mxu0 %v9511_v18  ;;  %v9595_v18 = vld [vmem:[#allocation6 + $0xa80] ss:$28 sps:$4 sm:$0xff]  }
  0xdd   :  { %2502 = vmatpush1.bf16.msra.mxu1 %v9514_v19  ;;  %2421 = vmatprep.subr.bf16.mxu0 %v9519_v20  ;;  %v9598_v19 = vld [vmem:[#allocation6 + $0x708] ss:$28 sps:$4 sm:$0xff]  }
  0xde   :  { %2503 = vmatprep.subr.bf16.mxu1 %v9522_v21  ;;  %v9603_v20 = vld [vmem:[#allocation6 + $0x744] ss:$28 sps:$4 sm:$0xff]   ;;  %v9606_v21 = vld [vmem:[#allocation6 + $0x38c] ss:$28 sps:$4 sm:$0xff]  }
  0xe0   :  { %2422 = vmatpush1.bf16.msra.mxu0 %v9517_v22  ;;  %v9601_v22 = vld [vmem:[#allocation6 + $0x740] ss:$28 sps:$4 sm:$0xff]  }
  0xe1   :  { %2504 = vmatpush1.bf16.msra.mxu1 %v9520_v23  ;;  %2423 = vmatprep.subr.bf16.mxu0 %v9525_v24  ;;  %v165_v23 = vld [vmem:[%s11522_s1 + $0x30] sm:$0xff]  ;;  %v10876_v24 = vmov 0  }
  0xe2   :  { %2505 = vmatprep.subr.bf16.mxu1 %v9528_v25  ;;  %v9609_v25 = vld [vmem:[#allocation6 + $0x77c] ss:$28 sps:$4 sm:$0xff]  }
  0xe4   :  { %2424 = vmatpush1.bf16.msra.mxu0 %v9523_v26  ;;  %v9604_v26 = vld [vmem:[#allocation6 + $0x388] ss:$28 sps:$4 sm:$0xff]  }
  0xe5   :  { %2506 = vmatpush1.bf16.msra.mxu1 %v9526_v27  ;;  %2425 = vmatprep.subr.bf16.mxu0 %v9531_v28  ;;  %v11105_v27 = vpack.c.bf16 %v165_v23, %v165_v23  ;;  %v9607_v28 = vld [vmem:[#allocation6 + $0x778] ss:$28 sps:$4 sm:$0xff]  }
  0xe6   :  { %2507 = vmatprep.subr.bf16.mxu1 %v9534_v29  ;;  %v9612_v29 = vld [vmem:[#allocation6 + $0x3c4] ss:$28 sps:$4 sm:$0xff]   ;;  %v9690_v23 = vld [vmem:[#allocation6 + $0x69c] ss:$28 sps:$4 sm:$0xff]  }
  0xe8   :  { %2426 = vmatpush1.bf16.msra.mxu0 %v9529_v30  ;;  %v9615_v30 = vld [vmem:[#allocation6 + $0x7b4] ss:$28 sps:$4 sm:$0xff]  }
  0xe9   :  { %2508 = vmatpush1.bf16.msra.mxu1 %v9532_v31  ;;  %2427 = vmatprep.subr.bf16.mxu0 %v9537_v32  ;;  %v9610_v31 = vld [vmem:[#allocation6 + $0x3c0] ss:$28 sps:$4 sm:$0xff]   ;;  %v9613_v32 = vld [vmem:[#allocation6 + $0x7b0] ss:$28 sps:$4 sm:$0xff]  }
  0xea   :  { %2509 = vmatprep.subr.bf16.mxu1 %v9540_v33  ;;  %v9618_v33 = vld [vmem:[#allocation6 + $0x3fc] ss:$28 sps:$4 sm:$0xff]  }
  0xec   :  { %2428 = vmatpush1.bf16.msra.mxu0 %v9535_v36  ;;  %v9616_v36 = vld [vmem:[#allocation6 + $0x3f8] ss:$28 sps:$4 sm:$0xff]  }
  0xed   :  { %2510 = vmatpush1.bf16.msra.mxu1 %v9538_v37  ;;  %2429 = vmatprep.subr.bf16.mxu0 %v9543_v38  ;;  %v9619_v37 = vld [vmem:[#allocation6 + $0x7e8] ss:$28 sps:$4 sm:$0xff]   ;;  %v9624_v38 = vld [vmem:[#allocation6 + $0x434] ss:$28 sps:$4 sm:$0xff]  }
  0xee   :  { %2511 = vmatprep.subr.bf16.mxu1 %v9546_v39  ;;  %v9627_v39 = vld [vmem:[#allocation6 + $0x824] ss:$28 sps:$4 sm:$0xff]  }
  0xf0   :  { %2430 = vmatpush1.bf16.msra.mxu0 %v9541_v40  ;;  %v9622_v40 = vld [vmem:[#allocation6 + $0x430] ss:$28 sps:$4 sm:$0xff]  }
  0xf1   :  { %2512 = vmatpush1.bf16.msra.mxu1 %v9544_v41  ;;  %2431 = vmatprep.subr.bf16.mxu0 %v9549_v42  ;;  %v9625_v41 = vld [vmem:[#allocation6 + $0x820] ss:$28 sps:$4 sm:$0xff]   ;;  %v9630_v42 = vld [vmem:[#allocation6 + $0x46c] ss:$28 sps:$4 sm:$0xff]  }
  0xf2   :  { %2513 = vmatprep.subr.bf16.mxu1 %v9552_v43  ;;  %v9633_v43 = vld [vmem:[#allocation6 + $0x85c] ss:$28 sps:$4 sm:$0xff]  }
  0xf4   :  { %2432 = vmatpush1.bf16.msra.mxu0 %v9547_v44  ;;  %v9628_v44 = vld [vmem:[#allocation6 + $0x468] ss:$28 sps:$4 sm:$0xff]  }
  0xf5   :  { %2514 = vmatpush1.bf16.msra.mxu1 %v9550_v45  ;;  %2433 = vmatprep.subr.bf16.mxu0 %v9555_v46  ;;  %v9631_v45 = vld [vmem:[#allocation6 + $0x858] ss:$28 sps:$4 sm:$0xff]   ;;  %v9636_v46 = vld [vmem:[#allocation6 + $0x4a4] ss:$28 sps:$4 sm:$0xff]  }
  0xf6   :  { %2515 = vmatprep.subr.bf16.mxu1 %v9558_v47  ;;  %v9639_v47 = vld [vmem:[#allocation6 + $0x894] ss:$28 sps:$4 sm:$0xff]  }
  0xf8   :  { %2434 = vmatpush1.bf16.msra.mxu0 %v9553_v48  ;;  %v9634_v48 = vld [vmem:[#allocation6 + $0x4a0] ss:$28 sps:$4 sm:$0xff]  }
  0xf9   :  { %2516 = vmatpush1.bf16.msra.mxu1 %v9556_v50  ;;  %2435 = vmatprep.subr.bf16.mxu0 %v9561_v51  ;;  %v9637_v50 = vld [vmem:[#allocation6 + $0x890] ss:$28 sps:$4 sm:$0xff]   ;;  %v9642_v51 = vld [vmem:[#allocation6 + $0x4dc] ss:$28 sps:$4 sm:$0xff]  }
  0xfa   :  { %2517 = vmatprep.subr.bf16.mxu1 %v9564_v53  ;;  %v9645_v53 = vld [vmem:[#allocation6 + $0x8cc] ss:$28 sps:$4 sm:$0xff]  }
  0xfc   :  { %2436 = vmatpush1.bf16.msra.mxu0 %v9559_v54  ;;  %v9640_v54 = vld [vmem:[#allocation6 + $0x4d8] ss:$28 sps:$4 sm:$0xff]  }
  0xfd   :  { %2518 = vmatpush1.bf16.msra.mxu1 %v9562_v55  ;;  %2437 = vmatprep.subr.bf16.mxu0 %v9567_v56  ;;  %v9643_v55 = vld [vmem:[#allocation6 + $0x8c8] ss:$28 sps:$4 sm:$0xff]   ;;  %v9648_v56 = vld [vmem:[#allocation6 + $0x514] ss:$28 sps:$4 sm:$0xff]  }
  0xfe   :  { %2519 = vmatprep.subr.bf16.mxu1 %v9570_v57  ;;  %v9651_v57 = vld [vmem:[#allocation6 + $0x904] ss:$28 sps:$4 sm:$0xff]  }
 0x100   :  { %2438 = vmatpush1.bf16.msra.mxu0 %v9565_v58  ;;  %v9646_v58 = vld [vmem:[#allocation6 + $0x510] ss:$28 sps:$4 sm:$0xff]  }
 0x101   :  { %2520 = vmatpush1.bf16.msra.mxu1 %v9568_v59  ;;  %2439 = vmatprep.subr.bf16.mxu0 %v9573_v60  ;;  %v9649_v59 = vld [vmem:[#allocation6 + $0x900] ss:$28 sps:$4 sm:$0xff]   ;;  %v9654_v60 = vld [vmem:[#allocation6 + $0x54c] ss:$28 sps:$4 sm:$0xff]  }
 0x102   :  { %2521 = vmatprep.subr.bf16.mxu1 %v9576_v61  ;;  %v9657_v61 = vld [vmem:[#allocation6 + $0x93c] ss:$28 sps:$4 sm:$0xff]  }
 0x104   :  { %2440 = vmatpush1.bf16.msra.mxu0 %v9571_v62  ;;  %v9652_v62 = vld [vmem:[#allocation6 + $0x548] ss:$28 sps:$4 sm:$0xff]  }
 0x105   :  { %2522 = vmatpush1.bf16.msra.mxu1 %v9574_v63  ;;  %2441 = vmatprep.subr.bf16.mxu0 %v9579_v0  ;;  %v9655_v63 = vld [vmem:[#allocation6 + $0x938] ss:$28 sps:$4 sm:$0xff]   ;;  %v9660_v0 = vld [vmem:[#allocation6 + $0x584] ss:$28 sps:$4 sm:$0xff]  }
 0x106   :  { %2523 = vmatprep.subr.bf16.mxu1 %v9582_v1  ;;  %v9663_v1 = vld [vmem:[#allocation6 + $0x974] ss:$28 sps:$4 sm:$0xff]  }
 0x108   :  { %2442 = vmatpush1.bf16.msra.mxu0 %v9577_v2  ;;  %v9658_v2 = vld [vmem:[#allocation6 + $0x580] ss:$28 sps:$4 sm:$0xff]  }
 0x109   :  { %2524 = vmatpush1.bf16.msra.mxu1 %v9580_v3  ;;  %2443 = vmatprep.subr.bf16.mxu0 %v9585_v4  ;;  %v9661_v3 = vld [vmem:[#allocation6 + $0x970] ss:$28 sps:$4 sm:$0xff]   ;;  %v9666_v4 = vld [vmem:[#allocation6 + $0x5bc] ss:$28 sps:$4 sm:$0xff]  }
 0x10a   :  { %2525 = vmatprep.subr.bf16.mxu1 %v9588_v5  ;;  %v9669_v5 = vld [vmem:[#allocation6 + $0x9ac] ss:$28 sps:$4 sm:$0xff]  }
 0x10c   :  { %2444 = vmatpush1.bf16.msra.mxu0 %v9583_v6  ;;  %v9664_v6 = vld [vmem:[#allocation6 + $0x5b8] ss:$28 sps:$4 sm:$0xff]  }
 0x10d   :  { %2526 = vmatpush1.bf16.msra.mxu1 %v9586_v7  ;;  %2445 = vmatprep.subr.bf16.mxu0 %v9591_v10  ;;  %v9667_v7 = vld [vmem:[#allocation6 + $0x9a8] ss:$28 sps:$4 sm:$0xff]   ;;  %v9672_v10 = vld [vmem:[#allocation6 + $0x5f4] ss:$28 sps:$4 sm:$0xff]  }
 0x10e   :  { %2527 = vmatprep.subr.bf16.mxu1 %v9594_v11  ;;  %v9675_v11 = vld [vmem:[#allocation6 + $0x9e4] ss:$28 sps:$4 sm:$0xff]  }
 0x110   :  { %2446 = vmatpush1.bf16.msra.mxu0 %v9589_v12  ;;  %v9670_v12 = vld [vmem:[#allocation6 + $0x5f0] ss:$28 sps:$4 sm:$0xff]  }
 0x111   :  { %2528 = vmatpush1.bf16.msra.mxu1 %v9592_v13  ;;  %2456 = vmatprep.subr.bf16.mxu0 %v9597_v15  ;;  %v9673_v13 = vld [vmem:[#allocation6 + $0x9e0] ss:$28 sps:$4 sm:$0xff]  }
 0x112   :  { %2579 = vmatprep.subr.bf16.mxu1 %v9600_v16  ;;  %v9681_v15 = vld [vmem:[#allocation6 + $0xa1c] ss:$28 sps:$4 sm:$0xff]   ;;  %v9676_v16 = vld [vmem:[#allocation6 + $0x628] ss:$28 sps:$4 sm:$0xff]  }
 0x113   :  { %2448 = vmatmul.mubr.bf16.vlgmr.msra.gmra.mrb[4].mxu0 %v11096_v17 }
 0x114   :  { %2530 = vmatmul.mubr.bf16.vlgmr.msra.gmra.mrb[4].mxu1 %v11080_v8  ;;  %2457 = vmatpush1.bf16.msra.mxu0 %v9595_v18  ;;  %v9679_v18 = vld [vmem:[#allocation6 + $0xa18] ss:$28 sps:$4 sm:$0xff]  }
 0x115   :  { %2580 = vmatpush1.bf16.msra.mxu1 %v9598_v19  ;;  %2488 = vmatprep.mubr.bf16.mxu0 %v10876_v24  ;;  %v9684_v19 = vld [vmem:[#allocation6 + $0x664] ss:$28 sps:$4 sm:$0xff]  }
 0x116   :  { %2581 = vmatprep.subr.bf16.mxu1 %v9603_v20  ;;  %2538 = vmatprep.subr.bf16.mxu0 %v9606_v21  ;;  %v9687_v20 = vld [vmem:[#allocation6 + $0xa54] ss:$28 sps:$4 sm:$0xff]   ;;  %v9682_v21 = vld [vmem:[#allocation6 + $0x660] ss:$28 sps:$4 sm:$0xff]  }
 0x117   :  { %2611 = vmatprep.mubr.bf16.mxu1 %v11090_v35 }
 0x119   :  { %2582 = vmatpush1.bf16.msra.mxu1 %v9601_v22  ;;  %v9685_v22 = vld [vmem:[#allocation6 + $0xa50] ss:$28 sps:$4 sm:$0xff]  }
 0x11a   :  { %2583 = vmatprep.subr.bf16.mxu1 %v9609_v25  ;;  %v9693_v25 = vld [vmem:[#allocation6 + $0x394] ss:$28 sps:$4 sm:$0xff]  }
 0x11b   :  { %8508 = vmatmul.mubr.msk.bf16.vlgmr.msra.gmra.mrb[8].mxu0 %vm2329_vm0, %v11105_v27 }
 0x11c   :  { %2539 = vmatpush1.bf16.msra.mxu0 %v9604_v26  ;;  %2570 = vmatprep.mubr.bf16.mxu0 %v11070_v52  ;;  %v9688_v26 = vld [vmem:[#allocation6 + $0x698] ss:$28 sps:$4 sm:$0xff]  }
 0x11d   :  { %2584 = vmatpush1.bf16.msra.mxu1 %v9607_v28  ;;  %2540 = vmatprep.subr.bf16.mxu0 %v9612_v29  ;;  %v9691_v28 = vld [vmem:[#allocation6 + $0x390] ss:$28 sps:$4 sm:$0xff]  }
 0x11e   :  { %2585 = vmatprep.subr.bf16.mxu1 %v9615_v30  ;;  %v9696_v29 = vld [vmem:[#allocation6 + $0x6d4] ss:$28 sps:$4 sm:$0xff]   ;;  %v9699_v30 = vld [vmem:[#allocation6 + $0x3cc] ss:$28 sps:$4 sm:$0xff]  }
 0x120   :  { %2541 = vmatpush1.bf16.msra.mxu0 %v9610_v31  ;;  %v9694_v31 = vld [vmem:[#allocation6 + $0x6d0] ss:$28 sps:$4 sm:$0xff]  }
 0x121   :  { %2586 = vmatpush1.bf16.msra.mxu1 %v9613_v32  ;;  %2542 = vmatprep.subr.bf16.mxu0 %v9618_v33  ;;  %v9697_v32 = vld [vmem:[#allocation6 + $0x3c8] ss:$28 sps:$4 sm:$0xff]  }
 0x122   :  { %2587 = vmatprep.subr.bf16.mxu1 %v9621_v34  ;;  %v9702_v33 = vld [vmem:[#allocation6 + $0xa8c] ss:$28 sps:$4 sm:$0xff]   ;;  %v9705_v34 = vld [vmem:[#allocation6 + $0x404] ss:$28 sps:$4 sm:$0xff]  }
 0x124   :  { %2543 = vmatpush1.bf16.msra.mxu0 %v9616_v36  ;;  %v9700_v36 = vld [vmem:[#allocation6 + $0xa88] ss:$28 sps:$4 sm:$0xff]  }
 0x125   :  { %2588 = vmatpush1.bf16.msra.mxu1 %v9619_v37  ;;  %2544 = vmatprep.subr.bf16.mxu0 %v9624_v38  ;;  %v9703_v37 = vld [vmem:[#allocation6 + $0x400] ss:$28 sps:$4 sm:$0xff]  }
 0x126   :  { %2589 = vmatprep.subr.bf16.mxu1 %v9627_v39  ;;  %v9708_v38 = vld [vmem:[#allocation6 + $0x43c] ss:$28 sps:$4 sm:$0xff]   ;;  %v9711_v39 = vld [vmem:[#allocation6 + $0x14] ss:$28 sps:$4 sm:$0xff]  }
 0x128   :  { %2545 = vmatpush1.bf16.msra.mxu0 %v9622_v40  ;;  %v9706_v40 = vld [vmem:[#allocation6 + $0x438] ss:$28 sps:$4 sm:$0xff]  }
 0x129   :  { %2590 = vmatpush1.bf16.msra.mxu1 %v9625_v41  ;;  %2546 = vmatprep.subr.bf16.mxu0 %v9630_v42  ;;  %v9714_v41 = vld [vmem:[#allocation6 + $0x474] ss:$28 sps:$4 sm:$0xff]  }
 0x12a   :  { %2591 = vmatprep.subr.bf16.mxu1 %v9633_v43  ;;  %v9709_v42 = vld [vmem:[#allocation6 + $0x10] ss:$28 sps:$4 sm:$0xff]  }
 0x12b   :  { %v9712_v43 = vld [vmem:[#allocation6 + $0x470] ss:$28 sps:$4 sm:$0xff]  }
 0x12c   :  { %2547 = vmatpush1.bf16.msra.mxu0 %v9628_v44  ;;  %v9717_v44 = vld [vmem:[#allocation6 + $0x4c] ss:$28 sps:$4 sm:$0xff]  }
 0x12d   :  { %2592 = vmatpush1.bf16.msra.mxu1 %v9631_v45  ;;  %2548 = vmatprep.subr.bf16.mxu0 %v9636_v46  ;;  %v9720_v45 = vld [vmem:[#allocation6 + $0x4ac] ss:$28 sps:$4 sm:$0xff]  }
 0x12e   :  { %2593 = vmatprep.subr.bf16.mxu1 %v9639_v47  ;;  %v9715_v46 = vld [vmem:[#allocation6 + $0x48] ss:$28 sps:$4 sm:$0xff]  }
 0x12f   :  { %v9718_v47 = vld [vmem:[#allocation6 + $0x4a8] ss:$28 sps:$4 sm:$0xff]  }
 0x130   :  { %2549 = vmatpush1.bf16.msra.mxu0 %v9634_v48  ;;  %v9723_v48 = vld [vmem:[#allocation6 + $0x84] ss:$28 sps:$4 sm:$0xff]  }
 0x131   :  { %2594 = vmatpush1.bf16.msra.mxu1 %v9637_v50  ;;  %2550 = vmatprep.subr.bf16.mxu0 %v9642_v51  ;;  %v9726_v50 = vld [vmem:[#allocation6 + $0x4e4] ss:$28 sps:$4 sm:$0xff]  }
 0x132   :  { %2595 = vmatprep.subr.bf16.mxu1 %v9645_v53  ;;  %v9721_v51 = vld [vmem:[#allocation6 + $0x80] ss:$28 sps:$4 sm:$0xff]  }
 0x133   :  { %v9724_v53 = vld [vmem:[#allocation6 + $0x4e0] ss:$28 sps:$4 sm:$0xff]  }
 0x134   :  { %2551 = vmatpush1.bf16.msra.mxu0 %v9640_v54  ;;  %v9729_v54 = vld [vmem:[#allocation6 + $0xbc] ss:$28 sps:$4 sm:$0xff]  }
 0x135   :  { %2596 = vmatpush1.bf16.msra.mxu1 %v9643_v55  ;;  %2552 = vmatprep.subr.bf16.mxu0 %v9648_v56  ;;  %v9732_v55 = vld [vmem:[#allocation6 + $0x51c] ss:$28 sps:$4 sm:$0xff]  }
 0x136   :  { %2597 = vmatprep.subr.bf16.mxu1 %v9651_v57  ;;  %v9727_v56 = vld [vmem:[#allocation6 + $0xb8] ss:$28 sps:$4 sm:$0xff]  }
 0x137   :  { %v9730_v57 = vld [vmem:[#allocation6 + $0x518] ss:$28 sps:$4 sm:$0xff]  }
 0x138   :  { %2553 = vmatpush1.bf16.msra.mxu0 %v9646_v58  ;;  %v9735_v58 = vld [vmem:[#allocation6 + $0xf4] ss:$28 sps:$4 sm:$0xff]  }
 0x139   :  { %2598 = vmatpush1.bf16.msra.mxu1 %v9649_v59  ;;  %2554 = vmatprep.subr.bf16.mxu0 %v9654_v60  ;;  %v9738_v59 = vld [vmem:[#allocation6 + $0x554] ss:$28 sps:$4 sm:$0xff]  }
 0x13a   :  { %2599 = vmatprep.subr.bf16.mxu1 %v9657_v61  ;;  %v9733_v60 = vld [vmem:[#allocation6 + $0xf0] ss:$28 sps:$4 sm:$0xff]  }
 0x13b   :  { %v9736_v61 = vld [vmem:[#allocation6 + $0x550] ss:$28 sps:$4 sm:$0xff]  }
 0x13c   :  { %2555 = vmatpush1.bf16.msra.mxu0 %v9652_v62  ;;  %v9741_v62 = vld [vmem:[#allocation6 + $0x12c] ss:$28 sps:$4 sm:$0xff]  }
 0x13d   :  { %2600 = vmatpush1.bf16.msra.mxu1 %v9655_v63  ;;  %2556 = vmatprep.subr.bf16.mxu0 %v9660_v0  ;;  %v9744_v63 = vld [vmem:[#allocation6 + $0x58c] ss:$28 sps:$4 sm:$0xff]  }
 0x13e   :  { %2601 = vmatprep.subr.bf16.mxu1 %v9663_v1  ;;  %v9739_v0 = vld [vmem:[#allocation6 + $0x128] ss:$28 sps:$4 sm:$0xff]  }
 0x13f   :  { %v9742_v1 = vld [vmem:[#allocation6 + $0x588] ss:$28 sps:$4 sm:$0xff]  }
 0x140   :  { %2557 = vmatpush1.bf16.msra.mxu0 %v9658_v2  ;;  %v9747_v2 = vld [vmem:[#allocation6 + $0x164] ss:$28 sps:$4 sm:$0xff]  }
 0x141   :  { %2602 = vmatpush1.bf16.msra.mxu1 %v9661_v3  ;;  %2558 = vmatprep.subr.bf16.mxu0 %v9666_v4  ;;  %v9750_v3 = vld [vmem:[#allocation6 + $0x5c4] ss:$28 sps:$4 sm:$0xff]  }
 0x142   :  { %2603 = vmatprep.subr.bf16.mxu1 %v9669_v5  ;;  %v9745_v4 = vld [vmem:[#allocation6 + $0x160] ss:$28 sps:$4 sm:$0xff]  }
 0x143   :  { %v9748_v5 = vld [vmem:[#allocation6 + $0x5c0] ss:$28 sps:$4 sm:$0xff]  }
 0x144   :  { %2559 = vmatpush1.bf16.msra.mxu0 %v9664_v6  ;;  %v9753_v6 = vld [vmem:[#allocation6 + $0x19c] ss:$28 sps:$4 sm:$0xff]  }
 0x145   :  { %2604 = vmatpush1.bf16.msra.mxu1 %v9667_v7  ;;  %2560 = vmatprep.subr.bf16.mxu0 %v9672_v10  ;;  %v9756_v7 = vld [vmem:[#allocation6 + $0x5fc] ss:$28 sps:$4 sm:$0xff]  }
 0x146   :  { %2605 = vmatprep.subr.bf16.mxu1 %v9675_v11  ;;  %v9751_v10 = vld [vmem:[#allocation6 + $0x198] ss:$28 sps:$4 sm:$0xff]  }
 0x147   :  { %v9754_v11 = vld [vmem:[#allocation6 + $0x5f8] ss:$28 sps:$4 sm:$0xff]  }
 0x148   :  { %2561 = vmatpush1.bf16.msra.mxu0 %v9670_v12  ;;  %v9759_v12 = vld [vmem:[#allocation6 + $0x1d4] ss:$28 sps:$4 sm:$0xff]  }
 0x149   :  { %2606 = vmatpush1.bf16.msra.mxu1 %v9673_v13  ;;  %2562 = vmatprep.subr.bf16.mxu0 %v9678_v14  ;;  %v9762_v13 = vld [vmem:[#allocation6 + $0x634] ss:$28 sps:$4 sm:$0xff]  }
 0x14a   :  { %2607 = vmatprep.subr.bf16.mxu1 %v9681_v15  ;;  %v9757_v14 = vld [vmem:[#allocation6 + $0x1d0] ss:$28 sps:$4 sm:$0xff]  }
 0x14b   :  { %v9760_v15 = vld [vmem:[#allocation6 + $0x630] ss:$28 sps:$4 sm:$0xff]  }
 0x14c   :  { %2563 = vmatpush1.bf16.msra.mxu0 %v9676_v16  ;;  %v9765_v16 = vld [vmem:[#allocation6 + $0x20c] ss:$28 sps:$4 sm:$0xff]  }
 0x14d   :  { %2608 = vmatpush1.bf16.msra.mxu1 %v9679_v18  ;;  %2564 = vmatprep.subr.bf16.mxu0 %v9684_v19  ;;  %v9768_v18 = vld [vmem:[#allocation6 + $0x66c] ss:$28 sps:$4 sm:$0xff]  }
 0x14e   :  { %2609 = vmatprep.subr.bf16.mxu1 %v9687_v20  ;;  %v9763_v19 = vld [vmem:[#allocation6 + $0x208] ss:$28 sps:$4 sm:$0xff]  }
 0x14f   :  { %v9766_v20 = vld [vmem:[#allocation6 + $0x668] ss:$28 sps:$4 sm:$0xff]  }
 0x150   :  { %2565 = vmatpush1.bf16.msra.mxu0 %v9682_v21  ;;  %v9771_v21 = vld [vmem:[#allocation6 + $0x244] ss:$28 sps:$4 sm:$0xff]  }
 0x151   :  { %2610 = vmatpush1.bf16.msra.mxu1 %v9685_v22  ;;  %2566 = vmatprep.subr.bf16.mxu0 %v9690_v23  ;;  %v9774_v22 = vld [vmem:[#allocation6 + $0x6a4] ss:$28 sps:$4 sm:$0xff]  }
 0x152   :  { %2702 = vmatprep.subr.bf16.mxu1 %v9693_v25  ;;  %v9769_v23 = vld [vmem:[#allocation6 + $0x240] ss:$28 sps:$4 sm:$0xff]  }
 0x153   :  { %v9772_v25 = vld [vmem:[#allocation6 + $0x6a0] ss:$28 sps:$4 sm:$0xff]  }
 0x154   :  { %2612 = vmatmul.mubr.bf16.vlgmr.msra.gmra.mrb[8].mxu1 %v11096_v17  ;;  %2567 = vmatpush1.bf16.msra.mxu0 %v9688_v26  ;;  %v9777_v26 = vld [vmem:[#allocation6 + $0x27c] ss:$28 sps:$4 sm:$0xff]  }
 0x155   :  { %2703 = vmatpush1.bf16.msra.mxu1 %v9691_v28  ;;  %2568 = vmatprep.subr.bf16.mxu0 %v9696_v29  ;;  %v9780_v28 = vld [vmem:[#allocation6 + $0x6dc] ss:$28 sps:$4 sm:$0xff]  }
 0x156   :  { %2704 = vmatprep.subr.bf16.mxu1 %v9699_v30  ;;  %2734 = vmatprep.mubr.bf16.mxu1 %v11070_v52  ;;  %v9775_v29 = vld [vmem:[#allocation6 + $0x278] ss:$28 sps:$4 sm:$0xff]  }
 0x157   :  { %v9778_v30 = vld [vmem:[#allocation6 + $0x6d8] ss:$28 sps:$4 sm:$0xff]  }
 0x158   :  { %2569 = vmatpush1.bf16.msra.mxu0 %v9694_v31  ;;  %v9783_v31 = vld [vmem:[#allocation6 + $0x2b4] ss:$28 sps:$4 sm:$0xff]  }
 0x159   :  { %2705 = vmatpush1.bf16.msra.mxu1 %v9697_v32  ;;  %2620 = vmatprep.subr.bf16.mxu0 %v9702_v33  ;;  %v9784_v32 = vld [vmem:[#allocation6 + $0x1d8] ss:$28 sps:$4 sm:$0xff]   ;;  %v9781_v33 = vld [vmem:[#allocation6 + $0x2b0] ss:$28 sps:$4 sm:$0xff]  }
 0x15a   :  { %2706 = vmatprep.subr.bf16.mxu1 %v9705_v34  ;;  %v9785_v34 = vld [vmem:[#allocation6 + $0x18] ss:$28 sps:$4 sm:$0xff]  }
 0x15b   :  { %2571 = vmatmul.mubr.bf16.vlgmr.msra.gmra.mrb[12].mxu0 %v11082_v9 }
 0x15c   :  { %2621 = vmatpush1.bf16.msra.mxu0 %v9700_v36  ;;  %2652 = vmatprep.mubr.bf16.mxu0 %v10876_v24  ;;  %v9788_v36 = vld [vmem:[#allocation6 + $0x2ec] ss:$28 sps:$4 sm:$0xff]  }
 0x15d   :  { %2707 = vmatpush1.bf16.msra.mxu1 %v9703_v37  ;;  %2661 = vmatprep.subr.bf16.mxu0 %v9711_v39  ;;  %v9789_v37 = vld [vmem:[#allocation6 + $0x210] ss:$28 sps:$4 sm:$0xff]  }
 0x15e   :  { %2708 = vmatprep.subr.bf16.mxu1 %v9708_v38  ;;  %v9786_v38 = vld [vmem:[#allocation6 + $0x2e8] ss:$28 sps:$4 sm:$0xff]   ;;  %v9790_v39 = vld [vmem:[#allocation6 + $0x50] ss:$28 sps:$4 sm:$0xff]  }
 0x161   :  { %2709 = vmatpush1.bf16.msra.mxu1 %v9706_v40  ;;  %v9793_v40 = vld [vmem:[#allocation6 + $0x324] ss:$28 sps:$4 sm:$0xff]  }
 0x162   :  { %2710 = vmatprep.subr.bf16.mxu1 %v9714_v41  ;;  %v9794_v41 = vld [vmem:[#allocation6 + $0x248] ss:$28 sps:$4 sm:$0xff]  }
 0x163   :  { %8509 = vmatmul.mubr.msk.bf16.vlgmr.msra.gmra.mrb[16].mxu0 %vm2329_vm0, %v11105_v27 }
 0x164   :  { %2662 = vmatpush1.bf16.msra.mxu0 %v9709_v42  ;;  %2693 = vmatprep.mubr.bf16.mxu0 %v11065_v49  ;;  %v9791_v42 = vld [vmem:[#allocation6 + $0x320] ss:$28 sps:$4 sm:$0xff]  }
 0x165   :  { %2711 = vmatpush1.bf16.msra.mxu1 %v9712_v43  ;;  %2663 = vmatprep.subr.bf16.mxu0 %v9717_v44  ;;  %v9795_v43 = vld [vmem:[#allocation6 + $0x88] ss:$28 sps:$4 sm:$0xff]   ;;  %v9798_v44 = vld [vmem:[#allocation6 + $0x35c] ss:$28 sps:$4 sm:$0xff]  }
 0x166   :  { %2712 = vmatprep.subr.bf16.mxu1 %v9720_v45  ;;  %v9799_v45 = vld [vmem:[#allocation6 + $0x280] ss:$28 sps:$4 sm:$0xff]  }
 0x168   :  { %2664 = vmatpush1.bf16.msra.mxu0 %v9715_v46  ;;  %v9796_v46 = vld [vmem:[#allocation6 + $0x358] ss:$28 sps:$4 sm:$0xff]  }
 0x169   :  { %2713 = vmatpush1.bf16.msra.mxu1 %v9718_v47  ;;  %2665 = vmatprep.subr.bf16.mxu0 %v9723_v48  ;;  %v9800_v47 = vld [vmem:[#allocation6 + $0xc0] ss:$28 sps:$4 sm:$0xff]   ;;  %v9803_v48 = vld [vmem:[#allocation6 + $0x714] ss:$28 sps:$4 sm:$0xff]  }
 0x16a   :  { %2714 = vmatprep.subr.bf16.mxu1 %v9726_v50  ;;  %v9804_v50 = vld [vmem:[#allocation6 + $0x2b8] ss:$28 sps:$4 sm:$0xff]  }
 0x16c   :  { %2666 = vmatpush1.bf16.msra.mxu0 %v9721_v51  ;;  %v9801_v51 = vld [vmem:[#allocation6 + $0x710] ss:$28 sps:$4 sm:$0xff]  }
 0x16d   :  { %2715 = vmatpush1.bf16.msra.mxu1 %v9724_v53  ;;  %2667 = vmatprep.subr.bf16.mxu0 %v9729_v54  ;;  %v9805_v53 = vld [vmem:[#allocation6 + $0xf8] ss:$28 sps:$4 sm:$0xff]   ;;  %v9808_v54 = vld [vmem:[#allocation6 + $0x74c] ss:$28 sps:$4 sm:$0xff]  }
 0x16e   :  { %2716 = vmatprep.subr.bf16.mxu1 %v9732_v55  ;;  %v9809_v55 = vld [vmem:[#allocation6 + $0x2f0] ss:$28 sps:$4 sm:$0xff]  }
 0x170   :  { %2668 = vmatpush1.bf16.msra.mxu0 %v9727_v56  ;;  %v9810_v56 = vld [vmem:[#allocation6 + $0x130] ss:$28 sps:$4 sm:$0xff]  }
 0x171   :  { %2717 = vmatpush1.bf16.msra.mxu1 %v9730_v57  ;;  %2669 = vmatprep.subr.bf16.mxu0 %v9735_v58  ;;  %v9813_v57 = vld [vmem:[#allocation6 + $0x784] ss:$28 sps:$4 sm:$0xff]  }
 0x172   :  { %2718 = vmatprep.subr.bf16.mxu1 %v9738_v59  ;;  %v9814_v58 = vld [vmem:[#allocation6 + $0x328] ss:$28 sps:$4 sm:$0xff]  }
 0x174   :  { %2670 = vmatpush1.bf16.msra.mxu0 %v9733_v60 }
 0x175   :  { %2719 = vmatpush1.bf16.msra.mxu1 %v9736_v61  ;;  %2671 = vmatprep.subr.bf16.mxu0 %v9741_v62  ;;  %v9811_v61 = vld [vmem:[#allocation6 + $0x780] ss:$28 sps:$4 sm:$0xff]   ;;  %v9815_v62 = vld [vmem:[#allocation6 + $0x168] ss:$28 sps:$4 sm:$0xff]  }
 0x176   :  { %2720 = vmatprep.subr.bf16.mxu1 %v9744_v63 }
 0x178   :  { %2672 = vmatpush1.bf16.msra.mxu0 %v9739_v0 }
 0x179   :  { %2721 = vmatpush1.bf16.msra.mxu1 %v9742_v1  ;;  %2673 = vmatprep.subr.bf16.mxu0 %v9747_v2  ;;  %v9818_v2 = vld [vmem:[#allocation6 + $0x7bc] ss:$28 sps:$4 sm:$0xff]  }
 0x17a   :  { %2722 = vmatprep.subr.bf16.mxu1 %v9750_v3  ;;  %v9819_v3 = vld [vmem:[#allocation6 + $0x360] ss:$28 sps:$4 sm:$0xff]  }
 0x17c   :  { %2674 = vmatpush1.bf16.msra.mxu0 %v9745_v4 }
 0x17d   :  { %2723 = vmatpush1.bf16.msra.mxu1 %v9748_v5  ;;  %2675 = vmatprep.subr.bf16.mxu0 %v9753_v6 }
 0x17e   :  { %2724 = vmatprep.subr.bf16.mxu1 %v9756_v7 }
 0x180   :  { %2676 = vmatpush1.bf16.msra.mxu0 %v9751_v10 }
 0x181   :  { %2725 = vmatpush1.bf16.msra.mxu1 %v9754_v11  ;;  %2677 = vmatprep.subr.bf16.mxu0 %v9759_v12  ;;  %v9816_v11 = vld [vmem:[#allocation6 + $0x7b8] ss:$28 sps:$4 sm:$0xff]   ;;  %v9820_v12 = vld [vmem:[#allocation6 + $0x1a0] ss:$28 sps:$4 sm:$0xff]  }
 0x182   :  { %2726 = vmatprep.subr.bf16.mxu1 %v9762_v13  ;;  %v9823_v13 = vld [vmem:[#allocation6 + $0x7f4] ss:$28 sps:$4 sm:$0xff]  }
 0x184   :  { %2678 = vmatpush1.bf16.msra.mxu0 %v9757_v14  ;;  %v9824_v14 = vld [vmem:[#allocation6 + $0x558] ss:$28 sps:$4 sm:$0xff]  }
 0x185   :  { %2727 = vmatpush1.bf16.msra.mxu1 %v9760_v15  ;;  %2679 = vmatprep.subr.bf16.mxu0 %v9765_v16  ;;  %v9821_v15 = vld [vmem:[#allocation6 + $0x7f0] ss:$28 sps:$4 sm:$0xff]   ;;  %v9825_v16 = vld [vmem:[#allocation6 + $0x398] ss:$28 sps:$4 sm:$0xff]  }
 0x186   :  { %2728 = vmatprep.subr.bf16.mxu1 %v9768_v18  ;;  %v9828_v18 = vld [vmem:[#allocation6 + $0x82c] ss:$28 sps:$4 sm:$0xff]  }
 0x188   :  { %2680 = vmatpush1.bf16.msra.mxu0 %v9763_v19  ;;  %v9829_v19 = vld [vmem:[#allocation6 + $0x590] ss:$28 sps:$4 sm:$0xff]  }
 0x189   :  { %2729 = vmatpush1.bf16.msra.mxu1 %v9766_v20  ;;  %2681 = vmatprep.subr.bf16.mxu0 %v9771_v21  ;;  %v9826_v20 = vld [vmem:[#allocation6 + $0x828] ss:$28 sps:$4 sm:$0xff]   ;;  %v9830_v21 = vld [vmem:[#allocation6 + $0x3d0] ss:$28 sps:$4 sm:$0xff]  }
 0x18a   :  { %2730 = vmatprep.subr.bf16.mxu1 %v9774_v22  ;;  %v9833_v22 = vld [vmem:[#allocation6 + $0x864] ss:$28 sps:$4 sm:$0xff]  }
 0x18c   :  { %2682 = vmatpush1.bf16.msra.mxu0 %v9769_v23  ;;  %v9834_v23 = vld [vmem:[#allocation6 + $0x5c8] ss:$28 sps:$4 sm:$0xff]  }
 0x18d   :  { %2731 = vmatpush1.bf16.msra.mxu1 %v9772_v25  ;;  %2683 = vmatprep.subr.bf16.mxu0 %v9777_v26  ;;  %v9831_v25 = vld [vmem:[#allocation6 + $0x860] ss:$28 sps:$4 sm:$0xff]   ;;  %v9835_v26 = vld [vmem:[#allocation6 + $0x408] ss:$28 sps:$4 sm:$0xff]  }
 0x18e   :  { %2732 = vmatprep.subr.bf16.mxu1 %v9780_v28  ;;  %v9838_v28 = vld [vmem:[#allocation6 + $0x89c] ss:$28 sps:$4 sm:$0xff]  }
 0x190   :  { %2684 = vmatpush1.bf16.msra.mxu0 %v9775_v29  ;;  %v9839_v29 = vld [vmem:[#allocation6 + $0x600] ss:$28 sps:$4 sm:$0xff]  }
 0x191   :  { %2733 = vmatpush1.bf16.msra.mxu1 %v9778_v30  ;;  %2685 = vmatprep.subr.bf16.mxu0 %v9783_v31  ;;  %v9836_v30 = vld [vmem:[#allocation6 + $0x898] ss:$28 sps:$4 sm:$0xff]   ;;  %v9840_v31 = vld [vmem:[#allocation6 + $0x440] ss:$28 sps:$4 sm:$0xff]  }
 0x192   :  { %9064 = vmatprep.subr.bf16.mxu1 %v9784_v32  ;;  %v9843_v32 = vld [vmem:[#allocation6 + $0x8d4] ss:$28 sps:$4 sm:$0xff]  }
 0x194   :  { %2735 = vmatmul.mubr.bf16.vlgmr.msra.gmra.mrb[12].mxu1 %v11082_v9  ;;  %2686 = vmatpush1.bf16.msra.mxu0 %v9781_v33  ;;  %v9841_v33 = vld [vmem:[#allocation6 + $0x8d0] ss:$28 sps:$4 sm:$0xff]  }
 0x195   :  { %9065 = vmatpush3.bf16.msra.mxu1 %v9785_v34  ;;  %2687 = vmatprep.subr.bf16.mxu0 %v9788_v36  ;;  %v9845_v34 = vld [vmem:[#allocation6 + $0x478] ss:$28 sps:$4 sm:$0xff]   ;;  %v9848_v36 = vld [vmem:[#allocation6 + $0x90c] ss:$28 sps:$4 sm:$0xff]  }
 0x196   :  { %9066 = vmatprep.subr.bf16.mxu1 %v9789_v37  ;;  %2857 = vmatprep.mubr.bf16.mxu1 %v11065_v49  ;;  %v9806_v49 = vld [vmem:[#allocation6 + $0x748] ss:$28 sps:$4 sm:$0xff]   ;;  %v9849_v37 = vld [vmem:[#allocation6 + $0x670] ss:$28 sps:$4 sm:$0xff]  }
 0x198   :  { %2688 = vmatpush1.bf16.msra.mxu0 %v9786_v38  ;;  %v9850_v38 = vld [vmem:[#allocation6 + $0x4b0] ss:$28 sps:$4 sm:$0xff]  }
 0x199   :  { %9067 = vmatpush3.bf16.msra.mxu1 %v9790_v39  ;;  %2689 = vmatprep.subr.bf16.mxu0 %v9793_v40  ;;  %v9853_v39 = vld [vmem:[#allocation6 + $0x944] ss:$28 sps:$4 sm:$0xff]  }
 0x19a   :  { %9068 = vmatprep.subr.bf16.mxu1 %v9794_v41  ;;  %v9854_v40 = vld [vmem:[#allocation6 + $0x6a8] ss:$28 sps:$4 sm:$0xff]   ;;  %v9851_v41 = vld [vmem:[#allocation6 + $0x940] ss:$28 sps:$4 sm:$0xff]  }
 0x19c   :  { %2690 = vmatpush1.bf16.msra.mxu0 %v9791_v42  ;;  %v9855_v42 = vld [vmem:[#allocation6 + $0x4e8] ss:$28 sps:$4 sm:$0xff]  }
 0x19d   :  { %9069 = vmatpush3.bf16.msra.mxu1 %v9795_v43  ;;  %2691 = vmatprep.subr.bf16.mxu0 %v9798_v44  ;;  %v9858_v43 = vld [vmem:[#allocation6 + $0x97c] ss:$28 sps:$4 sm:$0xff]  }
 0x19e   :  { %9070 = vmatprep.subr.bf16.mxu1 %v9799_v45  ;;  %v9859_v44 = vld [vmem:[#allocation6 + $0x6e0] ss:$28 sps:$4 sm:$0xff]   ;;  %v9856_v45 = vld [vmem:[#allocation6 + $0x978] ss:$28 sps:$4 sm:$0xff]  }
 0x1a0   :  { %2692 = vmatpush1.bf16.msra.mxu0 %v9796_v46  ;;  %v9860_v46 = vld [vmem:[#allocation6 + $0x520] ss:$28 sps:$4 sm:$0xff]  }
 0x1a1   :  { %9071 = vmatpush3.bf16.msra.mxu1 %v9800_v47  ;;  %2743 = vmatprep.subr.bf16.mxu0 %v9803_v48  ;;  %v9863_v47 = vld [vmem:[#allocation6 + $0x9b4] ss:$28 sps:$4 sm:$0xff]  }
 0x1a2   :  { %9072 = vmatprep.subr.bf16.mxu1 %v9804_v50  ;;  %v9861_v48 = vld [vmem:[#allocation6 + $0x9b0] ss:$28 sps:$4 sm:$0xff]   ;;  %v9867_v50 = vld [vmem:[#allocation6 + $0xa98] ss:$28 sps:$4 sm:$0xff]  }
 0x1a3   :  { %2694 = vmatmul.mubr.bf16.vlgmr.msra.gmra.mrb[20].mxu0 %v11080_v8 }
 0x1a4   :  { %2744 = vmatpush1.bf16.msra.mxu0 %v9801_v51  ;;  %2775 = vmatprep.mubr.bf16.mxu0 %v11090_v35  ;;  %v9866_v51 = vld [vmem:[#allocation6 + $0x9ec] ss:$28 sps:$4 sm:$0xff]  }
 0x1a5   :  { %9073 = vmatpush3.bf16.msra.mxu1 %v9805_v53  ;;  %2745 = vmatprep.subr.bf16.mxu0 %v9808_v54  ;;  %v9874_v53 = vld [vmem:[#allocation4 + $0x4] ss:$28 sps:$4 sm:$0x1f]   ;;  %v10877_v54 = vmov 0.0  }
 0x1a6   :  { %9074 = vmatprep.subr.bf16.mxu1 %v9809_v55  ;;  %v2367_v59 = vpop.f32.mrb[0].mxu0  ;;  %v9864_v55 = vld [vmem:[#allocation6 + $0x9e8] ss:$28 sps:$4 sm:$0xff]  }
 0x1a7   :  { %v2408_v60 = vpop.f32.mrb[0].mxu1  ;;  %v2369_v0 = vpop.f32.mrb[1].mxu0 }
 0x1a8   :  { %v11121_v63 = vadd.f32 %v2408_v60, %v2367_v59  ;;  %v2410_v1 = vpop.f32.mrb[1].mxu1  ;;  %2746 = vmatpush1.bf16.msra.mxu0 %v9806_v49  ;;  %v2371_v5 = vpop.f32.mrb[2].mxu0  ;;  %v9870_v49 = vld [vmem:[#allocation6 + $0xa24] ss:$28 sps:$4 sm:$0xff]  }
 0x1a9   :  { %v11123_v4 = vadd.f32 %v2410_v1, %v2369_v0  ;;  %9075 = vmatpush3.bf16.msra.mxu1 %v9810_v56  ;;  %v2412_v6 = vpop.f32.mrb[2].mxu1  ;;  %v2372_v7 = vpop.f32.mrb[3].mxu0  ;;  %2747 = vmatprep.subr.bf16.mxu0 %v9813_v57  ;;  %v9876_v56 = vld [vmem:[#allocation4] ss:$28 sps:$4 sm:$0x1f]  }
 0x1aa   :  { %9076 = vmatprep.subr.bf16.mxu1 %v9814_v58  ;;  %v2413_v10 = vpop.f32.mrb[3].mxu1  ;;  %v9868_v57 = vld [vmem:[#allocation6 + $0xa20] ss:$28 sps:$4 sm:$0xff]   ;;  %v9880_v59 = vld [vmem:[#allocation4 + $0xc] ss:$28 sps:$4 sm:$0x1f]  }
 0x1ab   :  { %v9873_v58 = vld [vmem:[#allocation6 + $0xa5c] ss:$28 sps:$4 sm:$0xff]   ;;  %v3020_v60 = vsel %vm3018_vm1, %v9876_v56, 0  ;;  %v9883_v0 = vld [vmem:[#allocation4 + $0x8] ss:$28 sps:$4 sm:$0x1f]  }
 0x1ac   :  { %2748 = vmatpush1.bf16.msra.mxu0 %v9811_v61  ;;  %v149_v61 = vld [vmem:[#allocation2] sm:$0xff]  ;;  %v9877_v1 = vld [vmem:[#allocation6 + $0xa90] ss:$28 sps:$4 sm:$0xff]   ;;  %v3026_v5 = vsel %vm3018_vm1, %v9883_v0, 0  ;;  %v9884_v10 = vld [vmem:[#allocation6 + $0x718] ss:$28 sps:$4 sm:$0xff]  }
 0x1ad   :  { %9077 = vmatpush3.bf16.msra.mxu1 %v9815_v62  ;;  %2749 = vmatprep.subr.bf16.mxu0 %v9818_v2  ;;  %v9879_v62 = vld [vmem:[#allocation6 + $0xa94] ss:$28 sps:$4 sm:$0xff]   ;;  %v11137_v2 = vpack.c.bf16 %v149_v61, %v149_v61  ;;  %v9902_v6 = vld [vmem:[#allocation4 + $0x18] ss:$28 sps:$4 sm:$0x1f]  }
 0x1ae   :  { %9078 = vmatprep.subr.bf16.mxu1 %v9819_v3  ;;  %v9882_v3 = vld [vmem:[#allocation6 + $0x8d8] ss:$28 sps:$4 sm:$0xff]  }
 0x1b0   :  { %2750 = vmatpush1.bf16.msra.mxu0 %v9816_v11 }
 0x1b1   :  { %9079 = vmatpush3.bf16.msra.mxu1 %v9820_v12  ;;  %2751 = vmatprep.subr.bf16.mxu0 %v9823_v13 }
 0x1b2   :  { %9086 = vmatprep.subr.bf16.mxu1 %v9824_v14  ;;  %v9885_v14 = vld [vmem:[#allocation6 + $0x910] ss:$28 sps:$4 sm:$0xff]  }
 0x1b4   :  { %2858 = vmatmul.mubr.bf16.vlgmr.msra.gmra.mrb[16].mxu1 %v11080_v8  ;;  %2752 = vmatpush1.bf16.msra.mxu0 %v9821_v15  ;;  %v9844_v8 = vld [vmem:[#allocation6 + $0x638] ss:$28 sps:$4 sm:$0xff]  }
 0x1b5   :  { %9087 = vmatpush3.bf16.msra.mxu1 %v9825_v16  ;;  %2753 = vmatprep.subr.bf16.mxu0 %v9828_v18 }
 0x1b6   :  { %9088 = vmatprep.subr.bf16.mxu1 %v9829_v19  ;;  %2897 = vmatprep.mubr.bf16.mxu1 %v11070_v52  ;;  %v9846_v52 = vld [vmem:[#allocation6 + $0x908] ss:$28 sps:$4 sm:$0xff]  }
 0x1b8   :  { %2754 = vmatpush1.bf16.msra.mxu0 %v9826_v20 }
 0x1b9   :  { %9089 = vmatpush3.bf16.msra.mxu1 %v9830_v21  ;;  %2755 = vmatprep.subr.bf16.mxu0 %v9833_v22  ;;  %v9886_v22 = vld [vmem:[#allocation6 + $0x750] ss:$28 sps:$4 sm:$0xff]  }
 0x1ba   :  { %9090 = vmatprep.subr.bf16.mxu1 %v9834_v23  ;;  %v3038_v23 = vsel %vm3018_vm1, %v9902_v6, 0  ;;  %v9908_v6 = vld [vmem:[#allocation7 + $0xc] ss:$28 sps:$4 sm:$0xff]  }
 0x1bc   :  { %2756 = vmatpush1.bf16.msra.mxu0 %v9831_v25  ;;  %v9887_v25 = vld [vmem:[#allocation6 + $0x948] ss:$28 sps:$4 sm:$0xff]  }
 0x1bd   :  { %9091 = vmatpush3.bf16.msra.mxu1 %v9835_v26  ;;  %2757 = vmatprep.subr.bf16.mxu0 %v9838_v28 }
 0x1be   :  { %9092 = vmatprep.subr.bf16.mxu1 %v9839_v29  ;;  %v9889_v29 = vld [vmem:[#allocation6 + $0x980] ss:$28 sps:$4 sm:$0xff]  }
 0x1c0   :  { %2758 = vmatpush1.bf16.msra.mxu0 %v9836_v30 }
 0x1c1   :  { %9093 = vmatpush3.bf16.msra.mxu1 %v9840_v31  ;;  %2759 = vmatprep.subr.bf16.mxu0 %v9843_v32  ;;  %v9890_v32 = vld [vmem:[#allocation6 + $0x7c0] ss:$28 sps:$4 sm:$0xff]  }
 0x1c2   :  { %9094 = vmatprep.subr.bf16.mxu1 %v9844_v8  ;;  %v9891_v8 = vld [vmem:[#allocation6 + $0x9b8] ss:$28 sps:$4 sm:$0xff]  }
 0x1c4   :  { %2760 = vmatpush1.bf16.msra.mxu0 %v9841_v33  ;;  %v9893_v33 = vld [vmem:[#allocation6 + $0x9f0] ss:$28 sps:$4 sm:$0xff]  }
 0x1c5   :  { %9095 = vmatpush3.bf16.msra.mxu1 %v9845_v34  ;;  %2761 = vmatprep.subr.bf16.mxu0 %v9848_v36  ;;  %v9894_v34 = vld [vmem:[#allocation6 + $0x830] ss:$28 sps:$4 sm:$0xff]   ;;  %v9895_v36 = vld [vmem:[#allocation6 + $0xa28] ss:$28 sps:$4 sm:$0xff]  }
 0x1c6   :  { %9096 = vmatprep.subr.bf16.mxu1 %v9849_v37  ;;  %v9896_v37 = vld [vmem:[#allocation6 + $0x868] ss:$28 sps:$4 sm:$0xff]  }
 0x1c8   :  { %2762 = vmatpush1.bf16.msra.mxu0 %v9846_v52  ;;  %v9897_v52 = vld [vmem:[#allocation6 + $0xa60] ss:$28 sps:$4 sm:$0xff]  }
 0x1c9   :  { %9097 = vmatpush3.bf16.msra.mxu1 %v9850_v38  ;;  %2763 = vmatprep.subr.bf16.mxu0 %v9853_v39  ;;  %v9898_v38 = vld [vmem:[#allocation6 + $0x8a0] ss:$28 sps:$4 sm:$0xff]  }
 0x1ca   :  { %9098 = vmatprep.subr.bf16.mxu1 %v9854_v40  ;;  %v9899_v39 = vld [vmem:[#allocation4 + $0x14] ss:$28 sps:$4 sm:$0x1f]  }
 0x1cb   :  { %v9901_v40 = vld [vmem:[#allocation4 + $0x10] ss:$28 sps:$4 sm:$0x1f]  }
 0x1cc   :  { %2764 = vmatpush1.bf16.msra.mxu0 %v9851_v41  ;;  %v3032_v41 = vsel %vm3018_vm1, %v9901_v40, 0  ;;  %v9944_v40 = vld [vmem:[#allocation7 + $0x15c] ss:$28 sps:$4 sm:$0xff]  }
 0x1cd   :  { %9099 = vmatpush3.bf16.msra.mxu1 %v9855_v42  ;;  %2765 = vmatprep.subr.bf16.mxu0 %v9858_v43 }
 0x1ce   :  { %9100 = vmatprep.subr.bf16.mxu1 %v9859_v44 }
 0x1d0   :  { %2766 = vmatpush1.bf16.msra.mxu0 %v9856_v45 }
 0x1d1   :  { %9101 = vmatpush3.bf16.msra.mxu1 %v9860_v46  ;;  %2767 = vmatprep.subr.bf16.mxu0 %v9863_v47 }
 0x1d2   :  { %9250 = vmatprep.subr.bf16.mxu1 %v10877_v54 }
 0x1d4   :  { %2898 = vmatmul.mubr.bf16.vlgmr.msra.gmra.mrb[20].mxu1 %v11082_v9  ;;  %2768 = vmatpush1.bf16.msra.mxu0 %v9861_v48  ;;  %v9871_v9 = vld [vmem:[#allocation6 + $0xa58] ss:$28 sps:$4 sm:$0xff]  }
 0x1d5   :  { %9251 = vmatpush3.bf16.msra.mxu1 %v9867_v50  ;;  %2769 = vmatprep.subr.bf16.mxu0 %v9866_v51 }
 0x1d6   :  { %9252 = vmatprep.mubr.msk.bf16.mxu1 %vm10878_vm2, %v10877_v54  ;;  %8519 = vmatprep.subr.msk.bf16.mxu1 %vm3018_vm1, %v9874_v53 }
 0x1d8   :  { %2770 = vmatpush1.bf16.msra.mxu0 %v9864_v55 }
 0x1d9   :  { %2771 = vmatprep.subr.bf16.mxu0 %v9870_v49 }
 0x1dc   :  { %9253 = vmatmul.mubr.msk.bf16.vlgmr.msra.gmra.mrb[24].mxu1 %vm2329_vm0, %v11105_v27  ;;  %2772 = vmatpush1.bf16.msra.mxu0 %v9868_v57 }
 0x1dd   :  { %3041 = vmatpush1.bf16.msra.mxu1 %v3020_v60  ;;  %2773 = vmatprep.subr.bf16.mxu0 %v9873_v58 }
 0x1de   :  { %3072 = vmatprep.mubr.bf16.mxu1 %v10876_v24  ;;  %8521 = vmatprep.subr.msk.bf16.mxu1 %vm3018_vm1, %v9880_v59 }
 0x1e0   :  { %2774 = vmatpush1.bf16.msra.mxu0 %v9871_v9 }
 0x1e1   :  { %2784 = vmatprep.subr.bf16.mxu0 %v9879_v62 }
 0x1e3   :  { %2776 = vmatmul.mubr.bf16.vlgmr.msra.gmra.mrb[24].mxu0 %v11096_v17 }
 0x1e4   :  { %8520 = vmatmul.mubr.msk.bf16.vlgmr.msra.gmra.mrb[28].mxu1 %vm3014_vm3, %v11137_v2  ;;  %2785 = vmatpush1.bf16.msra.mxu0 %v9877_v1  ;;  %v9903_v1 = vld [vmem:[#allocation7] ss:$28 sps:$4 sm:$0xff]  }
 0x1e5   :  { %2816 = vmatprep.mubr.bf16.mxu0 %v10876_v24  ;;  %9108 = vmatprep.subr.bf16.mxu0 %v9882_v3  ;;  %v9906_v3 = vld [vmem:[#allocation7 + $0x8] ss:$28 sps:$4 sm:$0xff]  }
 0x1e6   :  { %3082 = vmatpush1.bf16.msra.mxu1 %v3026_v5  ;;  %v2449_v7 = vpop.f32.mrb[4].mxu0  ;;  %3113 = vmatprep.mubr.bf16.mxu1 %v10876_v24 }
 0x1e7   :  { %v11145_v11 = vpop.f32.mrb[4].mxu1  ;;  %9256 = vmatprep.subr.bf16.mxu1 %v10877_v54  ;;  %v2450_v12 = vadd.f32 %v2449_v7, %v11121_v63  ;;  %v2451_v13 = vpop.f32.mrb[5].mxu0 }
 0x1e8   :  { %v2533_v15 = vpop.f32.mrb[5].mxu1  ;;  %v2452_v16 = vadd.f32 %v2451_v13, %v11123_v4  ;;  %v2453_v18 = vpop.f32.mrb[6].mxu0  ;;  %v9888_v4 = vld [vmem:[#allocation6 + $0x788] ss:$28 sps:$4 sm:$0xff]  }
 0x1e9   :  { %v2535_v19 = vpop.f32.mrb[6].mxu1  ;;  %v2454_v20 = vpop.f32.mrb[7].mxu0  ;;  %v9912_v18 = vld [vmem:[#allocation7 + $0x40] ss:$28 sps:$4 sm:$0xff]  }
 0x1ea   :  { %v2536_v21 = vpop.f32.mrb[7].mxu1  ;;  %v9917_v19 = vld [vmem:[#allocation7 + $0x74] ss:$28 sps:$4 sm:$0xff]   ;;  %v9920_v20 = vld [vmem:[#allocation7 + $0x7c] ss:$28 sps:$4 sm:$0xff]  }
 0x1eb   :  { %8510 = vmatmul.mubr.msk.bf16.vlgmr.msra.gmra.mrb[28].mxu0 %vm2329_vm0, %v11105_v27  ;;  %v9915_v21 = vld [vmem:[#allocation7 + $0x70] ss:$28 sps:$4 sm:$0xff]  }
 0x1ec   :  { %8522 = vmatmul.mubr.msk.bf16.vlgmr.msra.gmra.mrb[32].mxu1 %vm3014_vm3, %v11137_v2  ;;  %9109 = vmatpush3.bf16.msra.mxu0 %v9884_v10 }
 0x1ed   :  { %2937 = vmatprep.mubr.bf16.mxu0 %v11090_v35  ;;  %9110 = vmatprep.subr.bf16.mxu0 %v9885_v14  ;;  %v9892_v35 = vld [vmem:[#allocation6 + $0x7f8] ss:$28 sps:$4 sm:$0xff]   ;;  %v9909_v14 = vld [vmem:[#allocation7 + $0x38] ss:$28 sps:$4 sm:$0xff]  }
 0x1ee   :  { %9257 = vmatpush3.bf16.msra.mxu1 %v3038_v23  ;;  %v2490_v63 = vpop.f32.mrb[8].mxu0  ;;  %9258 = vmatprep.mubr.msk.bf16.mxu1 %vm10878_vm2, %v10877_v54  ;;  %v9923_v23 = vld [vmem:[#allocation7 + $0xac] ss:$28 sps:$4 sm:$0xff]  }
 0x1ef   :  { %v11158_v26 = vadd.f32 %v2490_v63, %v2450_v12  ;;  %v2492_v28 = vpop.f32.mrb[9].mxu0  ;;  %6075 = vmatprep.subr.bf16.mxu1 %v9908_v6  ;;  %v9921_v63 = vld [vmem:[#allocation7 + $0xa8] ss:$28 sps:$4 sm:$0xff]  }
 0x1f0   :  { %9111 = vmatpush3.bf16.msra.mxu0 %v9886_v22  ;;  %v11160_v27 = vadd.f32 %v2492_v28, %v2452_v16  ;;  %v2494_v30 = vpop.f32.mrb[10].mxu0  ;;  %v9918_v22 = vld [vmem:[#allocation7 + $0x78] ss:$28 sps:$4 sm:$0xff]   ;;  %v9929_v28 = vld [vmem:[#allocation7 + $0xe4] ss:$28 sps:$4 sm:$0xff]  }
 0x1f1   :  { %9112 = vmatprep.subr.bf16.mxu0 %v9887_v25  ;;  %v2495_v31 = vpop.f32.mrb[11].mxu0  ;;  %v9926_v25 = vld [vmem:[#allocation7 + $0xb4] ss:$28 sps:$4 sm:$0xff]   ;;  %v9927_v30 = vld [vmem:[#allocation7 + $0xe0] ss:$28 sps:$4 sm:$0xff]  }
 0x1f2   :  { %v9930_v31 = vld [vmem:[#allocation7 + $0xe8] ss:$28 sps:$4 sm:$0xff]  }
 0x1f4   :  { %9259 = vmatmul.mubr.msk.bf16.vlgmr.msra.gmra.mrb[36].mxu1 %vm3014_vm3, %v11137_v2  ;;  %9113 = vmatpush3.bf16.msra.mxu0 %v9888_v4  ;;  %v9924_v4 = vld [vmem:[#allocation7 + $0xb0] ss:$28 sps:$4 sm:$0xff]  }
 0x1f5   :  { %9114 = vmatprep.subr.bf16.mxu0 %v9889_v29  ;;  %6076 = vmatpush1.bf16.msra.mxu1 %v9906_v3  ;;  %v9932_v29 = vld [vmem:[#allocation7 + $0xec] ss:$28 sps:$4 sm:$0xff]  }
 0x1f8   :  { %9115 = vmatpush3.bf16.msra.mxu0 %v9890_v32  ;;  %v9935_v32 = vld [vmem:[#allocation7 + $0x11c] ss:$28 sps:$4 sm:$0xff]  }
 0x1f9   :  { %9116 = vmatprep.subr.bf16.mxu0 %v9891_v8 }
 0x1fc   :  { %9117 = vmatpush3.bf16.msra.mxu0 %v9892_v35  ;;  %v9938_v35 = vld [vmem:[#allocation7 + $0x124] ss:$28 sps:$4 sm:$0xff]  }
 0x1fd   :  { %9118 = vmatprep.subr.bf16.mxu0 %v9893_v33 }
 0x200   :  { %9119 = vmatpush3.bf16.msra.mxu0 %v9894_v34 }
 0x201   :  { %9120 = vmatprep.subr.bf16.mxu0 %v9895_v36 }
 0x204   :  { %9121 = vmatpush3.bf16.msra.mxu0 %v9896_v37  ;;  %v9933_v37 = vld [vmem:[#allocation7 + $0x118] ss:$28 sps:$4 sm:$0xff]  }
 0x205   :  { %9122 = vmatprep.subr.bf16.mxu0 %v9897_v52 }
 0x208   :  { %9123 = vmatpush3.bf16.msra.mxu0 %v9898_v38  ;;  %v9936_v38 = vld [vmem:[#allocation7 + $0x120] ss:$28 sps:$4 sm:$0xff]  }
 0x209   :  { %8523 = vmatprep.subr.msk.bf16.mxu0 %vm3018_vm1, %v9899_v39  ;;  %v9941_v39 = vld [vmem:[#allocation7 + $0x154] ss:$28 sps:$4 sm:$0xff]  }
 0x20b   :  { %2938 = vmatmul.mubr.bf16.vlgmr.msra.gmra.mrb[32].mxu0 %v11096_v17 }
 0x20c   :  { %3123 = vmatpush1.bf16.msra.mxu0 %v3032_v41  ;;  %3154 = vmatprep.mubr.bf16.mxu0 %v10876_v24  ;;  %v9939_v41 = vld [vmem:[#allocation7 + $0x150] ss:$28 sps:$4 sm:$0xff]  }
 0x213   :  { %8524 = vmatmul.mubr.msk.bf16.vlgmr.msra.gmra.mrb[36].mxu0 %vm3014_vm3, %v11137_v2  ;;  %v9905_v2 = vld [vmem:[#allocation7 + $0x4] ss:$28 sps:$4 sm:$0xff]  }
 0x214   :  { %5911 = vmatprep.subr.bf16.mxu0 %v9905_v2 }
 0x215   :  { %5912 = vmatpush1.bf16.msra.mxu0 %v9903_v1 }
 0x227   :  { %v2613_v42 = vpop.f32.mrb[8].mxu1 }
 0x228   :  { %v2615_v43 = vpop.f32.mrb[9].mxu1 }
 0x229   :  { %v2617_v44 = vpop.f32.mrb[10].mxu1 }
 0x22a   :  { %v2618_v45 = vpop.f32.mrb[11].mxu1  ;;  %v9950_v44 = vld [vmem:[#allocation7 + $0x194] ss:$28 sps:$4 sm:$0xff]  }
 0x22b   :  { %v9945_v45 = vld [vmem:[#allocation7 + $0x188] ss:$28 sps:$4 sm:$0xff]  }
 0x22e   :  { %v2572_v46 = vpop.f32.mrb[12].mxu0 }
 0x22f   :  { %v2573_v47 = vadd.f32 %v2572_v46, %v11145_v11  ;;  %v2574_v48 = vpop.f32.mrb[13].mxu0  ;;  %v9911_v11 = vld [vmem:[#allocation7 + $0x3c] ss:$28 sps:$4 sm:$0xff]   ;;  %v9948_v46 = vld [vmem:[#allocation7 + $0x190] ss:$28 sps:$4 sm:$0xff]  }
 0x230   :  { %v2575_v50 = vadd.f32 %v2574_v48, %v2533_v15  ;;  %v2576_v51 = vpop.f32.mrb[14].mxu0  ;;  %v9914_v15 = vld [vmem:[#allocation7 + $0x44] ss:$28 sps:$4 sm:$0xff]   ;;  %5913 = vmatprep.subr.bf16.mxu0 %v9911_v11 }
 0x231   :  { %v2614_v53 = vadd.f32 %v2613_v42, %v2573_v47  ;;  %v2577_v55 = vpop.f32.mrb[15].mxu0  ;;  %6077 = vmatprep.subr.bf16.mxu1 %v9914_v15  ;;  %5914 = vmatpush1.bf16.msra.mxu0 %v9909_v14  ;;  %v9942_v42 = vld [vmem:[#allocation7 + $0x158] ss:$28 sps:$4 sm:$0xff]  }
 0x232   :  { %v2616_v49 = vadd.f32 %v2615_v43, %v2575_v50  ;;  %6078 = vmatpush1.bf16.msra.mxu1 %v9912_v18  ;;  %5915 = vmatprep.subr.bf16.mxu0 %v9917_v19  ;;  %v9947_v43 = vld [vmem:[#allocation7 + $0x18c] ss:$28 sps:$4 sm:$0xff]  }
 0x233   :  { %6079 = vmatprep.subr.bf16.mxu1 %v9920_v20 }
 0x235   :  { %5916 = vmatpush1.bf16.msra.mxu0 %v9915_v21 }
 0x236   :  { %v2654_v17 = vpop.f32.mrb[16].mxu0  ;;  %6080 = vmatpush1.bf16.msra.mxu1 %v9918_v22  ;;  %5917 = vmatprep.subr.bf16.mxu0 %v9923_v23 }
 0x237   :  { %v11171_v56 = vadd.f32 %v2654_v17, %v2614_v53  ;;  %v2656_v57 = vpop.f32.mrb[17].mxu0  ;;  %6081 = vmatprep.subr.bf16.mxu1 %v9926_v25 }
 0x238   :  { %v11173_v58 = vadd.f32 %v2656_v57, %v2616_v49  ;;  %v2658_v59 = vpop.f32.mrb[18].mxu0 }
 0x239   :  { %v2659_v60 = vpop.f32.mrb[19].mxu0  ;;  %5918 = vmatpush1.bf16.msra.mxu0 %v9921_v63 }
 0x23a   :  { %6082 = vmatpush1.bf16.msra.mxu1 %v9924_v4  ;;  %5919 = vmatprep.subr.bf16.mxu0 %v9929_v28  ;;  %v3207_v4 = vlaneseq }
 0x23b   :  { %6083 = vmatprep.subr.bf16.mxu1 %v9932_v29  ;;  %v3203_v29 = vld [vmem:[#allocation13] ss:$8 sm:$0xf] }
 0x23c   :  { %v3208_v28 = vshrl.u32 %v3207_v4, 7  ;;  %v9954_v4 = vld [vmem:[#allocation7 + $0x1c8] ss:$28 sps:$4 sm:$0xff]  }
 0x23d   :  { %5920 = vmatpush1.bf16.msra.mxu0 %v9927_v30  ;;  %v3204_v30 = vld [vmem:[#allocation13] ss:$8 sm:$0xf0] }
 0x23e   :  { %6084 = vmatpush1.bf16.msra.mxu1 %v9930_v31  ;;  %5921 = vmatprep.subr.bf16.mxu0 %v9935_v32  ;;  %v3205_v31 = vor.u32 %v3204_v30, %v3203_v29  ;;  %v11185_v32 = vsub.s32 0, %v3208_v28  ;;  %v9962_v29 = vld [vmem:[#allocation7 + $0x204] ss:$28 sps:$4 sm:$0xff]   ;;  %v9957_v30 = vld [vmem:[#allocation7 + $0x1f8] ss:$28 sps:$4 sm:$0xff]  }
 0x23f   :  { %6085 = vmatprep.subr.bf16.mxu1 %v9938_v35 }
 0x241   :  { %5922 = vmatpush1.bf16.msra.mxu0 %v9933_v37 }
 0x242   :  { %6086 = vmatpush1.bf16.msra.mxu1 %v9936_v38  ;;  %5923 = vmatprep.subr.bf16.mxu0 %v9941_v39 }
 0x243   :  { %6087 = vmatprep.subr.bf16.mxu1 %v9944_v40 }
 0x245   :  { %5924 = vmatpush1.bf16.msra.mxu0 %v9939_v41 }
 0x246   :  { %6088 = vmatpush1.bf16.msra.mxu1 %v9942_v42  ;;  %5925 = vmatprep.subr.bf16.mxu0 %v9947_v43 }
 0x247   :  { %6089 = vmatprep.subr.bf16.mxu1 %v9950_v44 }
 0x249   :  { %5926 = vmatpush1.bf16.msra.mxu0 %v9945_v45 }
 0x24a   :  { %6090 = vmatpush1.bf16.msra.mxu1 %v9948_v46  ;;  %v11207_v46 = vsub.s32 4, %v3208_v28 }
 0x267   :  { %v2736_v9 = vpop.f32.mrb[12].mxu1 }
 0x268   :  { %v2738_v61 = vpop.f32.mrb[13].mxu1 }
 0x269   :  { %v2740_v62 = vpop.f32.mrb[14].mxu1 }
 0x26a   :  { %v2741_v0 = vpop.f32.mrb[15].mxu1 }
 0x276   :  { %v2695_v5 = vpop.f32.mrb[20].mxu0 }
 0x277   :  { %v11175_v7 = vadd.f32 %v2736_v9, %v2695_v5  ;;  %v2697_v10 = vpop.f32.mrb[21].mxu0 }
 0x278   :  { %v11177_v12 = vadd.f32 %v2738_v61, %v2697_v10  ;;  %v2699_v13 = vpop.f32.mrb[22].mxu0 }
 0x279   :  { %v2700_v16 = vpop.f32.mrb[23].mxu0 }
 0x287   :  { %v9080_v8 = vpop.f32.mrb[16].mxu1 }
 0x288   :  { %v9081_v33 = vpop.f32.mrb[17].mxu1 }
 0x289   :  { %v9082_v34 = vadd.f32 %v9081_v33, %v9080_v8  ;;  %v9083_v36 = vpop.f32.mrb[18].mxu1  ;;  %v11189_v8 = vsub.s32 2, %v3208_v28 }
 0x28a   :  { %v9084_v52 = vpop.f32.mrb[19].mxu1 }
 0x28b   :  { %v3218_v33 = vrot.slane %v3205_v31, %v11189_v8 }
 0x2a7   :  { %v9102_v47 = vpop.f32.mrb[20].mxu1 }
 0x2a8   :  { %v9103_v48 = vpop.f32.mrb[21].mxu1 }
 0x2a9   :  { %v9104_v50 = vadd.f32 %v9103_v48, %v9102_v47  ;;  %v9105_v51 = vpop.f32.mrb[22].mxu1  ;;  %v11209_v48 = vsub.s32 5, %v3208_v28 }
 0x2aa   :  { %v9106_v53 = vpop.f32.mrb[23].mxu1 }
 0x2ab   :  { %v2900_v55 = vadd.f32 %v9104_v50, %v9082_v34  ;;  %v11194_v34 = vsub.s32 3, %v3208_v28 }
 0x2ad   :  { %v3222_v39 = vrot.slane %v3205_v31, %v11194_v34 }
 0x2af   :  { %v2979_v49 = vpop.f32.mrb[24].mxu1 }
 0x2b0   :  { %v9254_v17 = vpop.f32.mrb[25].mxu1 }
 0x2b1   :  { %v2982_v57 = vpop.f32.mrb[26].mxu1 }
 0x2b2   :  { %v9255_v59 = vpop.f32.mrb[27].mxu1 }
 0x2b6   :  { %v2777_v60 = vpop.f32.mrb[24].mxu0 }
 0x2b7   :  { %v3074_v9 = vpop.f32.mrb[28].mxu1  ;;  %v2778_v61 = vadd.f32 %v2777_v60, %v11175_v7  ;;  %v2779_v62 = vpop.f32.mrb[25].mxu0  ;;  %v11218_v60 = vsub.s32 6, %v3208_v28 }
 0x2b8   :  { %v3075_v0 = vadd.f32 %v3074_v9, %v11158_v26  ;;  %v3076_v1 = vpop.f32.mrb[29].mxu1  ;;  %v2780_v2 = vadd.f32 %v2779_v62, %v11177_v12  ;;  %v2781_v3 = vpop.f32.mrb[26].mxu0  ;;  %v3226_v9 = vrot.slane %v3205_v31, %v11207_v46  ;;  %v3230_v62 = vrot.slane %v3205_v31, %v11209_v48 }
 0x2b9   :  { %v3077_v5 = vadd.f32 %v3076_v1, %v11160_v27  ;;  %v3078_v6 = vpop.f32.mrb[30].mxu1  ;;  %v2782_v10 = vpop.f32.mrb[27].mxu0 }
 0x2ba   :  { %v3079_v11 = vpop.f32.mrb[31].mxu1 }
 0x2be   :  { %v2818_v13 = vpop.f32.mrb[28].mxu0 }
 0x2bf   :  { %v3115_v14 = vpop.f32.mrb[32].mxu1  ;;  %v2819_v15 = vadd.f32 %v2818_v13, %v2778_v61  ;;  %v2820_v16 = vpop.f32.mrb[29].mxu0 }
 0x2c0   :  { %v3116_v18 = vadd.f32 %v3115_v14, %v11171_v56  ;;  %v3117_v19 = vpop.f32.mrb[33].mxu1  ;;  %v2821_v7 = vadd.f32 %v2820_v16, %v2780_v2  ;;  %v2822_v20 = vpop.f32.mrb[30].mxu0  ;;  %v11187_v56 = vsub.s32 1, %v3208_v28  ;;  %v9959_v28 = vld [vmem:[#allocation7 + $0x1fc] ss:$28 sps:$4 sm:$0xff]  }
 0x2c1   :  { %v3118_v26 = vadd.f32 %v3117_v19, %v11173_v58  ;;  %v3119_v21 = vpop.f32.mrb[34].mxu1  ;;  %v2823_v22 = vpop.f32.mrb[31].mxu0  ;;  %v3210_v58 = vrot.slane %v3205_v31, %v11185_v32 }
 0x2c2   :  { %v3120_v12 = vpop.f32.mrb[35].mxu1  ;;  %v3214_v35 = vrot.slane %v3205_v31, %v11187_v56  ;;  %v11200_v38 = vadd.f32 %v3218_v33, %v3116_v18  ;;  %v9963_v33 = vld [vmem:[#allocation7 + $0x230] ss:$28 sps:$4 sm:$0xff]  }
 0x2c3   :  { %v11196_v36 = vadd.f32 %v3210_v58, %v3075_v0  ;;  %v11215_v53 = vadd.f32 %v3222_v39, %v3118_v26  ;;  %v9965_v58 = vld [vmem:[#allocation7 + $0x234] ss:$28 sps:$4 sm:$0xff]   ;;  %v9969_v39 = vld [vmem:[#allocation7 + $0x268] ss:$28 sps:$4 sm:$0xff]  }
 0x2c4   :  { %v11198_v37 = vadd.f32 %v3214_v35, %v3077_v5  ;;  %v3268_v51 = vmul.f32 %v11200_v38, %v11200_v38  ;;  %v9968_v35 = vld [vmem:[#allocation7 + $0x23c] ss:$28 sps:$4 sm:$0xff]  }
 0x2c5   :  { %v3266_v43 = vmul.f32 %v11196_v36, %v11196_v36  ;;  %v3269_v1 = vmul.f32 %v11215_v53, %v11215_v53 }
 0x2c6   :  { %v3267_v44 = vmul.f32 %v11198_v37, %v11198_v37  ;;  %v3257_v50 = vadd.f32 %v11198_v37, %v11196_v36 }
 0x2c7   :  { %v3197_v23 = vpop.f32.mrb[36].mxu1 }
 0x2c8   :  { %v9260_v25 = vpop.f32.mrb[37].mxu1  ;;  %v3273_v57 = vadd.f32 %v3267_v44, %v3266_v43  ;;  %v3258_v59 = vadd.f32 %v3257_v50, %v11200_v38  ;;  %v9977_v43 = vld [vmem:[#allocation7 + $0x2a4] ss:$28 sps:$4 sm:$0xff]   ;;  %v9980_v44 = vld [vmem:[#allocation7 + $0x2ac] ss:$28 sps:$4 sm:$0xff]  }
 0x2c9   :  { %v3200_v27 = vpop.f32.mrb[38].mxu1  ;;  %v9953_v25 = vld [vmem:[#allocation7 + $0x1c4] ss:$28 sps:$4 sm:$0xff]   ;;  %v9983_v50 = vld [vmem:[#allocation7 + $0x2dc] ss:$28 sps:$4 sm:$0xff]  }
 0x2ca   :  { %v9261_v63 = vpop.f32.mrb[39].mxu1  ;;  %v3274_v0 = vadd.f32 %v3273_v57, %v3268_v51  ;;  %v3259_v13 = vadd.f32 %v3258_v59, %v11215_v53  ;;  %v9956_v27 = vld [vmem:[#allocation7 + $0x1cc] ss:$28 sps:$4 sm:$0xff]   ;;  %5927 = vmatprep.subr.bf16.mxu0 %v9953_v25  ;;  %v9986_v51 = vld [vmem:[#allocation7 + $0x2e4] ss:$28 sps:$4 sm:$0xff]  }
 0x2cb   :  { %v9951_v63 = vld [vmem:[#allocation7 + $0x1c0] ss:$28 sps:$4 sm:$0xff]   ;;  %6091 = vmatprep.subr.bf16.mxu1 %v9956_v27  ;;  %v9989_v59 = vld [vmem:[#allocation7 + $0x314] ss:$28 sps:$4 sm:$0xff]  }
 0x2cc   :  { %v3275_v19 = vadd.f32 %v3274_v0, %v3269_v1  ;;  %5928 = vmatpush1.bf16.msra.mxu0 %v9951_v63  ;;  %6092 = vmatpush1.bf16.msra.mxu1 %v9954_v4  ;;  %v9984_v57 = vld [vmem:[#allocation7 + $0x2e0] ss:$28 sps:$4 sm:$0xff]   ;;  %v9998_v0 = vld [vmem:[#allocation7 + $0x354] ss:$28 sps:$4 sm:$0xff]   ;;  %v9993_v1 = vld [vmem:[#allocation7 + $0x348] ss:$28 sps:$4 sm:$0xff]  }
 0x2cd   :  { %5929 = vmatprep.subr.bf16.mxu0 %v9959_v28  ;;  %6093 = vmatprep.subr.bf16.mxu1 %v9962_v29 }
 0x2d0   :  { %5930 = vmatpush1.bf16.msra.mxu0 %v9957_v30 }
 0x2d1   :  { %5931 = vmatprep.subr.bf16.mxu0 %v9965_v58 }
 0x2d4   :  { %5932 = vmatpush1.bf16.msra.mxu0 %v9963_v33 }
 0x2de   :  { %v9124_v52 = vpop.f32.mrb[32].mxu0 }
 0x2df   :  { %v9125_v40 = vpop.f32.mrb[33].mxu0 }
 0x2e0   :  { %v9126_v41 = vadd.f32 %v9125_v40, %v9124_v52  ;;  %v9127_v42 = vpop.f32.mrb[34].mxu0  ;;  %v9966_v52 = vld [vmem:[#allocation7 + $0x238] ss:$28 sps:$4 sm:$0xff]   ;;  %v9971_v40 = vld [vmem:[#allocation7 + $0x26c] ss:$28 sps:$4 sm:$0xff]  }
 0x2e1   :  { %v9128_v45 = vpop.f32.mrb[35].mxu0  ;;  %v9974_v42 = vld [vmem:[#allocation7 + $0x274] ss:$28 sps:$4 sm:$0xff]   ;;  %5933 = vmatprep.subr.bf16.mxu0 %v9971_v40 }
 0x2e2   :  { %v2940_v47 = vadd.f32 %v9126_v41, %v2900_v55  ;;  %v9972_v41 = vld [vmem:[#allocation7 + $0x270] ss:$28 sps:$4 sm:$0xff]   ;;  %5934 = vmatpush1.bf16.msra.mxu0 %v9969_v39  ;;  %v9975_v45 = vld [vmem:[#allocation7 + $0x2a0] ss:$28 sps:$4 sm:$0xff]  }
 0x2e3   :  { %5935 = vmatprep.subr.bf16.mxu0 %v9977_v43 }
 0x2e4   :  { %v2980_v17 = vadd.f32 %v2979_v49, %v2940_v47  ;;  %v3234_v49 = vrot.slane %v3205_v31, %v11218_v60  ;;  %v9960_v31 = vld [vmem:[#allocation7 + $0x200] ss:$28 sps:$4 sm:$0xff]   ;;  %v9978_v47 = vld [vmem:[#allocation7 + $0x2a8] ss:$28 sps:$4 sm:$0xff]  }
 0x2e5   :  { %6094 = vmatpush1.bf16.msra.mxu1 %v9960_v31 }
 0x2e6   :  { %v3198_v61 = vadd.f32 %v3197_v23, %v2980_v17  ;;  %v3156_v55 = vpop.f32.mrb[36].mxu0  ;;  %6095 = vmatprep.subr.bf16.mxu1 %v9968_v35  ;;  %5936 = vmatpush1.bf16.msra.mxu0 %v9975_v45  ;;  %v9981_v17 = vld [vmem:[#allocation7 + $0x2d8] ss:$28 sps:$4 sm:$0xff]  }
 0x2e7   :  { %v3157_v2 = vadd.f32 %v3156_v55, %v2819_v15  ;;  %v3158_v3 = vpop.f32.mrb[37].mxu0  ;;  %5937 = vmatprep.subr.bf16.mxu0 %v9983_v50  ;;  %v9990_v55 = vld [vmem:[#allocation7 + $0x318] ss:$28 sps:$4 sm:$0xff]  }
 0x2e8   :  { %v3159_v5 = vadd.f32 %v3158_v3, %v2821_v7  ;;  %v3160_v6 = vpop.f32.mrb[38].mxu0  ;;  %v11235_v7 = vadd.f32 %v3234_v49, %v3198_v61  ;;  %v9987_v61 = vld [vmem:[#allocation7 + $0x310] ss:$28 sps:$4 sm:$0xff]   ;;  %v10001_v3 = vld [vmem:[#allocation7 + $0x384] ss:$28 sps:$4 sm:$0xff]  }
 0x2e9   :  { %v11225_v10 = vadd.f32 %v3226_v9, %v3157_v2  ;;  %v3161_v11 = vpop.f32.mrb[39].mxu0  ;;  %6096 = vmatpush1.bf16.msra.mxu1 %v9966_v52  ;;  %v9992_v9 = vld [vmem:[#allocation7 + $0x31c] ss:$28 sps:$4 sm:$0xff]   ;;  %v9996_v2 = vld [vmem:[#allocation7 + $0x350] ss:$28 sps:$4 sm:$0xff]  }
 0x2ea   :  { %v11228_v14 = vadd.f32 %v3230_v62, %v3159_v5  ;;  %v3272_v12 = vmul.f32 %v11235_v7, %v11235_v7  ;;  %6097 = vmatprep.subr.bf16.mxu1 %v9974_v42  ;;  %5938 = vmatpush1.bf16.msra.mxu0 %v9981_v17  ;;  %v9995_v62 = vld [vmem:[#allocation7 + $0x34c] ss:$28 sps:$4 sm:$0xff]  }
 0x2eb   :  { %v3270_v16 = vmul.f32 %v11225_v10, %v11225_v10  ;;  %v3260_v18 = vadd.f32 %v3259_v13, %v11225_v10  ;;  %5939 = vmatprep.subr.bf16.mxu0 %v9989_v59  ;;  %v10004_v5 = vld [vmem:[#allocation7 + $0x38c] ss:$28 sps:$4 sm:$0xff]  }
 0x2ec   :  { %v3271_v15 = vmul.f32 %v11228_v14, %v11228_v14 }
 0x2ed   :  { %v3261_v20 = vadd.f32 %v3260_v18, %v11228_v14  ;;  %v3276_v26 = vadd.f32 %v3275_v19, %v3270_v16  ;;  %6098 = vmatpush1.bf16.msra.mxu1 %v9972_v41 }
 0x2ee   :  { %6099 = vmatprep.subr.bf16.mxu1 %v9980_v44  ;;  %5940 = vmatpush1.bf16.msra.mxu0 %v9987_v61 }
 0x2ef   :  { %v3262_v21 = vadd.f32 %v3261_v20, %v11235_v7  ;;  %v3277_v22 = vadd.f32 %v3276_v26, %v3271_v15  ;;  %5941 = vmatprep.subr.bf16.mxu0 %v9995_v62  ;;  %v3250_v15 = vld [vmem:[#allocation13 + $0x1] ss:$8 sm:$0xf]  ;;  %v3254_v26 = vld [vmem:[#allocation13 + $0x2] ss:$8 sm:$0xf] }
 0x2f0   :  { %v3251_v20 = vld [vmem:[#allocation13 + $0x1] ss:$8 sm:$0xf0] }
 0x2f1   :  { %3263 = vadd.xlane.f32.xlu0 %v3262_v21  ;;  %v3278_v23 = vadd.f32 %v3277_v22, %v3272_v12  ;;  %6100 = vmatpush1.bf16.msra.mxu1 %v9978_v47  ;;  %v3255_v21 = vld [vmem:[#allocation13 + $0x2] ss:$8 sm:$0xf0]  ;;  %v3252_v22 = vor.u32 %v3251_v20, %v3250_v15 }
 0x2f2   :  { %6101 = vmatprep.subr.bf16.mxu1 %v9986_v51  ;;  %5942 = vmatpush1.bf16.msra.mxu0 %v9993_v1  ;;  %v3256_v12 = vor.u32 %v3255_v21, %v3254_v26  ;;  %v9999_v20 = vld [vmem:[#allocation7 + $0x380] ss:$28 sps:$4 sm:$0xff]   ;;  %v10002_v26 = vld [vmem:[#allocation7 + $0x388] ss:$28 sps:$4 sm:$0xff]  }
 0x2f3   :  { %5952 = vmatprep.subr.bf16.mxu0 %v10001_v3  ;;  %v3304_v25 = vrot.slane %v3252_v22, %v11185_v32  ;;  %v3316_v27 = vrot.slane %v3252_v22, %v11194_v34  ;;  %v3312_v63 = vrot.slane %v3252_v22, %v11189_v8  ;;  %v3324_v29 = vrot.slane %v3252_v22, %v11209_v48 }
 0x2f4   :  { %v3351_v4 = vrot.slane %v3256_v12, %v11187_v56  ;;  %v3347_v28 = vrot.slane %v3256_v12, %v11185_v32  ;;  %v3320_v30 = vrot.slane %v3252_v22, %v11207_v46  ;;  %v3359_v31 = vrot.slane %v3256_v12, %v11194_v34 }
 0x2f5   :  { %3279 = vadd.xlane.f32.xlu0 %v3278_v23  ;;  %6102 = vmatpush1.bf16.msra.mxu1 %v9984_v57  ;;  %v3308_v23 = vrot.slane %v3252_v22, %v11187_v56  ;;  %v3355_v58 = vrot.slane %v3256_v12, %v11189_v8  ;;  %v3367_v35 = vrot.slane %v3256_v12, %v11209_v48 }
 0x2f6   :  { %6103 = vmatprep.subr.bf16.mxu1 %v9992_v9  ;;  %v3328_v33 = vrot.slane %v3252_v22, %v11218_v60  ;;  %v3363_v45 = vrot.slane %v3256_v12, %v11207_v46  ;;  %v10007_v22 = vld [vmem:[#allocation7 + $0x3bc] ss:$28 sps:$4 sm:$0xff]  }
 0x2f9   :  { %6104 = vmatpush1.bf16.msra.mxu1 %v9990_v55 }
 0x2fa   :  { %6105 = vmatprep.subr.bf16.mxu1 %v9998_v0 }
 0x2fd   :  { %6106 = vmatpush1.bf16.msra.mxu1 %v9996_v2 }
 0x2fe   :  { %6116 = vmatprep.subr.bf16.mxu1 %v10004_v5 }
 0x37e   :  { %v3264_v6 = vpop.xlane.xlu0 %3263 }
 0x37f   :  { %v3265_v49 = vmul.f32 0.0012594458, %v3264_v6 }
 0x381   :  { %v3282_v13 = vmul.f32 %v3265_v49, %v3265_v49  ;;  %v3285_v52 = vsub.f32 %v11198_v37, %v3265_v49  ;;  %v3284_v39 = vsub.f32 %v11196_v36, %v3265_v49  ;;  %v3287_v40 = vsub.f32 %v11215_v53, %v3265_v49 }
 0x382   :  { %v3280_v11 = vpop.xlane.xlu0 %3279  ;;  %v3286_v41 = vsub.f32 %v11200_v38, %v3265_v49  ;;  %v3289_v43 = vsub.f32 %v11228_v14, %v3265_v49  ;;  %v3288_v44 = vsub.f32 %v11225_v10, %v3265_v49  ;;  %v3290_v47 = vsub.f32 %v11235_v7, %v3265_v49 }
 0x383   :  { %v3281_v16 = vmul.f32 0.0012594458, %v3280_v11  ;;  %v3371_v53 = vrot.slane %v3256_v12, %v11218_v60  ;;  %v10010_v12 = vld [vmem:[#allocation7 + $0x3c4] ss:$28 sps:$4 sm:$0xff]  }
 0x385   :  { %v3283_v18 = vsub.f32 %v3281_v16, %v3282_v13 }
 0x387   :  { %v3291_v19 = vadd.f32 1e-05, %v3283_v18 }
 0x389   :  { %10662 = vrsqrt.f32 %v3291_v19 }
 0x393   :  { %v10663_v42 = vpop.eup %10662 }
 0x394   :  { %v3294_v50 = vmul.f32 %v10663_v42, %v3285_v52  ;;  %v3293_v51 = vmul.f32 %v10663_v42, %v3284_v39  ;;  %v3296_v17 = vmul.f32 %v10663_v42, %v3287_v40  ;;  %v3295_v57 = vmul.f32 %v10663_v42, %v3286_v41  ;;  %v10028_v52 = vld [vmem:[#allocation7 + $0x46c] ss:$28 sps:$4 sm:$0xff]   ;;  %v10023_v39 = vld [vmem:[#allocation7 + $0x460] ss:$28 sps:$4 sm:$0xff]  }
 0x395   :  { %v3298_v37 = vmul.f32 %v10663_v42, %v3289_v43  ;;  %v3297_v59 = vmul.f32 %v10663_v42, %v3288_v44  ;;  %v3299_v36 = vmul.f32 %v10663_v42, %v3290_v47  ;;  %v10026_v40 = vld [vmem:[#allocation7 + $0x468] ss:$28 sps:$4 sm:$0xff]   ;;  %v10031_v41 = vld [vmem:[#allocation7 + $0x49c] ss:$28 sps:$4 sm:$0xff]  }
 0x396   :  { %v3337_v9 = vmul.f32 %v3308_v23, %v3294_v50  ;;  %v3336_v38 = vmul.f32 %v3304_v25, %v3293_v51  ;;  %v3339_v61 = vmul.f32 %v3316_v27, %v3296_v17  ;;  %v3338_v55 = vmul.f32 %v3312_v63, %v3295_v57  ;;  %v10005_v25 = vld [vmem:[#allocation7 + $0x3b8] ss:$28 sps:$4 sm:$0xff]   ;;  %v10008_v27 = vld [vmem:[#allocation7 + $0x3c0] ss:$28 sps:$4 sm:$0xff]   ;;  %v10035_v50 = vld [vmem:[#allocation7 + $0x4d0] ss:$28 sps:$4 sm:$0xff]  }
 0x397   :  { %v3341_v14 = vmul.f32 %v3324_v29, %v3298_v37  ;;  %v3340_v62 = vmul.f32 %v3320_v30, %v3297_v59  ;;  %v3342_v10 = vmul.f32 %v3328_v33, %v3299_v36  ;;  %v10013_v63 = vld [vmem:[#allocation7 + $0x3f4] ss:$28 sps:$4 sm:$0xff]   ;;  %v10019_v30 = vld [vmem:[#allocation7 + $0x42c] ss:$28 sps:$4 sm:$0xff]   ;;  %v10025_v33 = vld [vmem:[#allocation7 + $0x464] ss:$28 sps:$4 sm:$0xff]  }
 0x398   :  { %v3380_v0 = vadd.f32 %v3351_v4, %v3337_v9  ;;  %v3379_v1 = vadd.f32 %v3347_v28, %v3336_v38  ;;  %v3382_v2 = vadd.f32 %v3359_v31, %v3339_v61  ;;  %v11262_v7 = vadd.f32 %v3355_v58, %v3338_v55  ;;  %v10016_v4 = vld [vmem:[#allocation7 + $0x3fc] ss:$28 sps:$4 sm:$0xff]   ;;  %v10011_v28 = vld [vmem:[#allocation7 + $0x3f0] ss:$28 sps:$4 sm:$0xff]   ;;  %v10017_v58 = vld [vmem:[#allocation7 + $0x428] ss:$28 sps:$4 sm:$0xff]  }
 0x399   :  { %v11264_v3 = vadd.f32 %v3367_v35, %v3341_v14  ;;  %v11266_v5 = vadd.f32 %v3363_v45, %v3340_v62  ;;  %v11268_v6 = vadd.f32 %v3371_v53, %v3342_v10  ;;  %v10014_v29 = vld [vmem:[#allocation7 + $0x3f8] ss:$28 sps:$4 sm:$0xff]   ;;  %v10020_v35 = vld [vmem:[#allocation7 + $0x430] ss:$28 sps:$4 sm:$0xff]   ;;  %v10034_v42 = vld [vmem:[#allocation7 + $0x4a4] ss:$28 sps:$4 sm:$0xff]  }
 0x39a   :  { %v3387_v49 = vmul.f32 0.2, %v3380_v0  ;;  %v3386_v11 = vmul.f32 0.2, %v3379_v1  ;;  %v3389_v13 = vmul.f32 0.2, %v3382_v2 }
 0x39b   :  { %v10022_v31 = vld [vmem:[#allocation7 + $0x434] ss:$28 sps:$4 sm:$0xff]   ;;  %v10032_v44 = vld [vmem:[#allocation7 + $0x4a0] ss:$28 sps:$4 sm:$0xff]   ;;  %v10043_v17 = vld [vmem:[#allocation7 + $0x50c] ss:$28 sps:$4 sm:$0xff]  }
 0x39c   :  { %v3394_v16 = vmax.f32 %v3380_v0, %v3387_v49  ;;  %v3393_v18 = vmax.f32 %v3379_v1, %v3386_v11  ;;  %v3396_v19 = vmax.f32 %v3382_v2, %v3389_v13  ;;  %v10029_v43 = vld [vmem:[#allocation7 + $0x498] ss:$28 sps:$4 sm:$0xff]   ;;  %v10041_v37 = vld [vmem:[#allocation7 + $0x508] ss:$28 sps:$4 sm:$0xff]   ;;  %v10044_v59 = vld [vmem:[#allocation7 + $0x510] ss:$28 sps:$4 sm:$0xff]  }
 0x39d   :  { %v10037_v45 = vld [vmem:[#allocation7 + $0x4d4] ss:$28 sps:$4 sm:$0xff]   ;;  %v10040_v47 = vld [vmem:[#allocation7 + $0x4dc] ss:$28 sps:$4 sm:$0xff]   ;;  %v10049_v36 = vld [vmem:[#allocation7 + $0x544] ss:$28 sps:$4 sm:$0xff]  }
 0x39e   :  { %v11270_v15 = vpack.c.bf16 %v3394_v16, %v3394_v16  ;;  %v11272_v21 = vpack.c.bf16 %v3393_v18, %v3393_v18  ;;  %v11278_v23 = vpack.c.bf16 %v3396_v19, %v3396_v19  ;;  %v10038_v51 = vld [vmem:[#allocation7 + $0x4d8] ss:$28 sps:$4 sm:$0xff]   ;;  %v10052_v53 = vld [vmem:[#allocation7 + $0x54c] ss:$28 sps:$4 sm:$0xff]   ;;  %v10047_v9 = vld [vmem:[#allocation7 + $0x540] ss:$28 sps:$4 sm:$0xff]  }
 0x39f   :  { %v10046_v57 = vld [vmem:[#allocation7 + $0x514] ss:$28 sps:$4 sm:$0xff]   ;;  %v10050_v38 = vld [vmem:[#allocation7 + $0x548] ss:$28 sps:$4 sm:$0xff]   ;;  %v10055_v61 = vld [vmem:[#allocation7 + $0x57c] ss:$28 sps:$4 sm:$0xff]  }
 0x3a0   :  { %5943 = vmatprep.mubr.bf16.mxu0 %v11270_v15  ;;  %6107 = vmatprep.mubr.bf16.mxu1 %v11270_v15  ;;  %v10058_v55 = vld [vmem:[#allocation7 + $0x584] ss:$28 sps:$4 sm:$0xff]   ;;  %v10053_v14 = vld [vmem:[#allocation7 + $0x578] ss:$28 sps:$4 sm:$0xff]   ;;  %v10059_v1 = vld [vmem:[#allocation7 + $0x5b0] ss:$28 sps:$4 sm:$0xff]  }
 0x3a1   :  { %5944 = vmatmul.mubr.bf16.vlgmr.msra.gmra.mrb[40].mxu0 %v11272_v21  ;;  %6108 = vmatmul.mubr.bf16.vlgmr.msra.gmra.mrb[40].mxu1 %v11272_v21  ;;  %v10056_v62 = vld [vmem:[#allocation7 + $0x580] ss:$28 sps:$4 sm:$0xff]   ;;  %v10061_v10 = vld [vmem:[#allocation7 + $0x5b4] ss:$28 sps:$4 sm:$0xff]   ;;  %v10067_v49 = vld [vmem:[#allocation7 + $0x5ec] ss:$28 sps:$4 sm:$0xff]  }
 0x3a2   :  { %5953 = vmatpush1.bf16.msra.mxu0 %v9999_v20  ;;  %6117 = vmatpush1.bf16.msra.mxu1 %v10002_v26  ;;  %v10064_v0 = vld [vmem:[#allocation7 + $0x5bc] ss:$28 sps:$4 sm:$0xff]   ;;  %v10070_v11 = vld [vmem:[#allocation7 + $0x5f4] ss:$28 sps:$4 sm:$0xff]   ;;  %v10065_v13 = vld [vmem:[#allocation7 + $0x5e8] ss:$28 sps:$4 sm:$0xff]  }
 0x3a3   :  { %5984 = vmatprep.mubr.bf16.mxu0 %v11278_v23  ;;  %6148 = vmatprep.mubr.bf16.mxu1 %v11278_v23  ;;  %v10062_v2 = vld [vmem:[#allocation7 + $0x5b8] ss:$28 sps:$4 sm:$0xff]   ;;  %v10068_v16 = vld [vmem:[#allocation7 + $0x5f0] ss:$28 sps:$4 sm:$0xff]   ;;  %v10073_v18 = vld [vmem:[#allocation7 + $0x624] ss:$28 sps:$4 sm:$0xff]  }
 0x3a4   :  { %5954 = vmatprep.subr.bf16.mxu0 %v10007_v22  ;;  %6118 = vmatprep.subr.bf16.mxu1 %v10010_v12  ;;  %v10076_v19 = vld [vmem:[#allocation7 + $0x62c] ss:$28 sps:$4 sm:$0xff]   ;;  %v10071_v20 = vld [vmem:[#allocation7 + $0x620] ss:$28 sps:$4 sm:$0xff]  }
 0x3a5   :  { %v10074_v26 = vld [vmem:[#allocation7 + $0x628] ss:$28 sps:$4 sm:$0xff]   ;;  %v10079_v22 = vld [vmem:[#allocation7 + $0x65c] ss:$28 sps:$4 sm:$0xff]  }
 0x3a6   :  { %5955 = vmatpush1.bf16.msra.mxu0 %v10005_v25  ;;  %6119 = vmatpush1.bf16.msra.mxu1 %v10008_v27  ;;  %v10082_v12 = vld [vmem:[#allocation7 + $0x664] ss:$28 sps:$4 sm:$0xff]   ;;  %v10077_v25 = vld [vmem:[#allocation7 + $0x658] ss:$28 sps:$4 sm:$0xff]  }
 0x3a7   :  { %5956 = vmatprep.subr.bf16.mxu0 %v10013_v63  ;;  %6120 = vmatprep.subr.bf16.mxu1 %v10016_v4  ;;  %v10080_v27 = vld [vmem:[#allocation7 + $0x660] ss:$28 sps:$4 sm:$0xff]   ;;  %v10085_v63 = vld [vmem:[#allocation7 + $0x694] ss:$28 sps:$4 sm:$0xff]  }
 0x3a8   :  { %v10088_v4 = vld [vmem:[#allocation7 + $0x69c] ss:$28 sps:$4 sm:$0xff]  }
 0x3aa   :  { %5957 = vmatpush1.bf16.msra.mxu0 %v10011_v28  ;;  %6121 = vmatpush1.bf16.msra.mxu1 %v10014_v29  ;;  %v10083_v28 = vld [vmem:[#allocation7 + $0x690] ss:$28 sps:$4 sm:$0xff]   ;;  %v10086_v29 = vld [vmem:[#allocation7 + $0x698] ss:$28 sps:$4 sm:$0xff]  }
 0x3ab   :  { %5958 = vmatprep.subr.bf16.mxu0 %v10019_v30  ;;  %6122 = vmatprep.subr.bf16.mxu1 %v10022_v31  ;;  %v10091_v30 = vld [vmem:[#allocation7 + $0x6cc] ss:$28 sps:$4 sm:$0xff]   ;;  %v10094_v31 = vld [vmem:[#allocation7 + $0x6d4] ss:$28 sps:$4 sm:$0xff]  }
 0x3ae   :  { %5959 = vmatpush1.bf16.msra.mxu0 %v10017_v58  ;;  %6123 = vmatpush1.bf16.msra.mxu1 %v10020_v35  ;;  %v3388_v58 = vmul.f32 0.2, %v11262_v7  ;;  %v3391_v35 = vmul.f32 0.2, %v11264_v3 }
 0x3af   :  { %5960 = vmatprep.subr.bf16.mxu0 %v10025_v33  ;;  %6124 = vmatprep.subr.bf16.mxu1 %v10028_v52  ;;  %v10089_v33 = vld [vmem:[#allocation7 + $0x6c8] ss:$28 sps:$4 sm:$0xff]   ;;  %v10092_v52 = vld [vmem:[#allocation7 + $0x6d0] ss:$28 sps:$4 sm:$0xff]  }
 0x3b2   :  { %5961 = vmatpush1.bf16.msra.mxu0 %v10023_v39  ;;  %6125 = vmatpush1.bf16.msra.mxu1 %v10026_v40  ;;  %v3395_v39 = vmax.f32 %v11262_v7, %v3388_v58  ;;  %v10097_v40 = vld [vmem:[#allocation7 + $0x704] ss:$28 sps:$4 sm:$0xff]   ;;  %v10101_v7 = vld [vmem:[#allocation7 + $0x738] ss:$28 sps:$4 sm:$0xff]   ;;  %v10155_v58 = vld [vmem:[#allocation7 + $0x930] ss:$28 sps:$4 sm:$0xff]  }
 0x3b3   :  { %5962 = vmatprep.subr.bf16.mxu0 %v10031_v41  ;;  %6126 = vmatprep.subr.bf16.mxu1 %v10034_v42  ;;  %v10100_v41 = vld [vmem:[#allocation7 + $0x70c] ss:$28 sps:$4 sm:$0xff]   ;;  %v3398_v42 = vmax.f32 %v11264_v3, %v3391_v35  ;;  %v10104_v3 = vld [vmem:[#allocation7 + $0x740] ss:$28 sps:$4 sm:$0xff]   ;;  %v10158_v35 = vld [vmem:[#allocation7 + $0x938] ss:$28 sps:$4 sm:$0xff]  }
 0x3b6   :  { %5963 = vmatpush1.bf16.msra.mxu0 %v10029_v43  ;;  %6127 = vmatpush1.bf16.msra.mxu1 %v10032_v44  ;;  %v10095_v43 = vld [vmem:[#allocation7 + $0x700] ss:$28 sps:$4 sm:$0xff]   ;;  %v11286_v44 = vpack.c.bf16 %v3395_v39, %v3395_v39  ;;  %v10161_v39 = vld [vmem:[#allocation7 + $0x968] ss:$28 sps:$4 sm:$0xff]  }
 0x3b7   :  { %5964 = vmatprep.subr.bf16.mxu0 %v10037_v45  ;;  %6128 = vmatprep.subr.bf16.mxu1 %v10040_v47  ;;  %v10098_v45 = vld [vmem:[#allocation7 + $0x708] ss:$28 sps:$4 sm:$0xff]   ;;  %v11288_v47 = vpack.c.bf16 %v3398_v42, %v3398_v42 }
 0x3b8   :  { %v10172_v42 = vld [vmem:[#allocation7 + $0x9ac] ss:$28 sps:$4 sm:$0xff]  }
 0x3ba   :  { %5965 = vmatpush1.bf16.msra.mxu0 %v10035_v50  ;;  %6129 = vmatpush1.bf16.msra.mxu1 %v10038_v51  ;;  %v10103_v50 = vld [vmem:[#allocation7 + $0x73c] ss:$28 sps:$4 sm:$0xff]   ;;  %v10106_v51 = vld [vmem:[#allocation7 + $0x744] ss:$28 sps:$4 sm:$0xff]  }
 0x3bb   :  { %5966 = vmatprep.subr.bf16.mxu0 %v10043_v17  ;;  %6130 = vmatprep.subr.bf16.mxu1 %v10046_v57  ;;  %v10109_v17 = vld [vmem:[#allocation7 + $0x774] ss:$28 sps:$4 sm:$0xff]   ;;  %v10112_v57 = vld [vmem:[#allocation7 + $0x77c] ss:$28 sps:$4 sm:$0xff]  }
 0x3be   :  { %5967 = vmatpush1.bf16.msra.mxu0 %v10041_v37  ;;  %6131 = vmatpush1.bf16.msra.mxu1 %v10044_v59  ;;  %v10107_v37 = vld [vmem:[#allocation7 + $0x770] ss:$28 sps:$4 sm:$0xff]   ;;  %v10110_v59 = vld [vmem:[#allocation7 + $0x778] ss:$28 sps:$4 sm:$0xff]  }
 0x3bf   :  { %5968 = vmatprep.subr.bf16.mxu0 %v10049_v36  ;;  %6132 = vmatprep.subr.bf16.mxu1 %v10052_v53  ;;  %v10115_v36 = vld [vmem:[#allocation7 + $0x7ac] ss:$28 sps:$4 sm:$0xff]   ;;  %v10118_v53 = vld [vmem:[#allocation7 + $0x7b4] ss:$28 sps:$4 sm:$0xff]  }
 0x3c2   :  { %5969 = vmatpush1.bf16.msra.mxu0 %v10047_v9  ;;  %6133 = vmatpush1.bf16.msra.mxu1 %v10050_v38  ;;  %v10113_v9 = vld [vmem:[#allocation7 + $0x7a8] ss:$28 sps:$4 sm:$0xff]   ;;  %v10116_v38 = vld [vmem:[#allocation7 + $0x7b0] ss:$28 sps:$4 sm:$0xff]  }
 0x3c3   :  { %5970 = vmatprep.subr.bf16.mxu0 %v10055_v61  ;;  %6134 = vmatprep.subr.bf16.mxu1 %v10058_v55  ;;  %v10121_v61 = vld [vmem:[#allocation7 + $0x7e4] ss:$28 sps:$4 sm:$0xff]   ;;  %v10124_v55 = vld [vmem:[#allocation7 + $0x7ec] ss:$28 sps:$4 sm:$0xff]  }
 0x3c6   :  { %5971 = vmatpush1.bf16.msra.mxu0 %v10053_v14  ;;  %6135 = vmatpush1.bf16.msra.mxu1 %v10056_v62  ;;  %v10119_v14 = vld [vmem:[#allocation7 + $0x7e0] ss:$28 sps:$4 sm:$0xff]   ;;  %v10122_v62 = vld [vmem:[#allocation7 + $0x7e8] ss:$28 sps:$4 sm:$0xff]  }
 0x3c7   :  { %5972 = vmatprep.subr.bf16.mxu0 %v10061_v10  ;;  %6136 = vmatprep.subr.bf16.mxu1 %v10064_v0  ;;  %v10127_v10 = vld [vmem:[#allocation7 + $0x81c] ss:$28 sps:$4 sm:$0xff]   ;;  %v10130_v0 = vld [vmem:[#allocation7 + $0x824] ss:$28 sps:$4 sm:$0xff]  }
 0x3ca   :  { %5973 = vmatpush1.bf16.msra.mxu0 %v10059_v1  ;;  %6137 = vmatpush1.bf16.msra.mxu1 %v10062_v2  ;;  %v10125_v1 = vld [vmem:[#allocation7 + $0x818] ss:$28 sps:$4 sm:$0xff]   ;;  %v10128_v2 = vld [vmem:[#allocation7 + $0x820] ss:$28 sps:$4 sm:$0xff]  }
 0x3cb   :  { %5974 = vmatprep.subr.bf16.mxu0 %v10067_v49  ;;  %6138 = vmatprep.subr.bf16.mxu1 %v10070_v11  ;;  %v10133_v49 = vld [vmem:[#allocation7 + $0x854] ss:$28 sps:$4 sm:$0xff]   ;;  %v10136_v11 = vld [vmem:[#allocation7 + $0x85c] ss:$28 sps:$4 sm:$0xff]  }
 0x3ce   :  { %5975 = vmatpush1.bf16.msra.mxu0 %v10065_v13  ;;  %6139 = vmatpush1.bf16.msra.mxu1 %v10068_v16  ;;  %v10131_v13 = vld [vmem:[#allocation7 + $0x850] ss:$28 sps:$4 sm:$0xff]   ;;  %v10134_v16 = vld [vmem:[#allocation7 + $0x858] ss:$28 sps:$4 sm:$0xff]  }
 0x3cf   :  { %5976 = vmatprep.subr.bf16.mxu0 %v10073_v18  ;;  %6140 = vmatprep.subr.bf16.mxu1 %v10076_v19  ;;  %v10139_v18 = vld [vmem:[#allocation7 + $0x88c] ss:$28 sps:$4 sm:$0xff]   ;;  %v10142_v19 = vld [vmem:[#allocation7 + $0x894] ss:$28 sps:$4 sm:$0xff]  }
 0x3d2   :  { %5977 = vmatpush1.bf16.msra.mxu0 %v10071_v20  ;;  %6141 = vmatpush1.bf16.msra.mxu1 %v10074_v26  ;;  %v10137_v20 = vld [vmem:[#allocation7 + $0x888] ss:$28 sps:$4 sm:$0xff]   ;;  %v10140_v26 = vld [vmem:[#allocation7 + $0x890] ss:$28 sps:$4 sm:$0xff]  }
 0x3d3   :  { %5978 = vmatprep.subr.bf16.mxu0 %v10079_v22  ;;  %6142 = vmatprep.subr.bf16.mxu1 %v10082_v12  ;;  %v10145_v22 = vld [vmem:[#allocation7 + $0x8c4] ss:$28 sps:$4 sm:$0xff]   ;;  %v10148_v12 = vld [vmem:[#allocation7 + $0x8cc] ss:$28 sps:$4 sm:$0xff]  }
 0x3d6   :  { %5979 = vmatpush1.bf16.msra.mxu0 %v10077_v25  ;;  %6143 = vmatpush1.bf16.msra.mxu1 %v10080_v27  ;;  %v10143_v25 = vld [vmem:[#allocation7 + $0x8c0] ss:$28 sps:$4 sm:$0xff]   ;;  %v10146_v27 = vld [vmem:[#allocation7 + $0x8c8] ss:$28 sps:$4 sm:$0xff]  }
 0x3d7   :  { %5980 = vmatprep.subr.bf16.mxu0 %v10085_v63  ;;  %6144 = vmatprep.subr.bf16.mxu1 %v10088_v4  ;;  %v10151_v63 = vld [vmem:[#allocation7 + $0x8fc] ss:$28 sps:$4 sm:$0xff]   ;;  %v10154_v4 = vld [vmem:[#allocation7 + $0x904] ss:$28 sps:$4 sm:$0xff]  }
 0x3da   :  { %5981 = vmatpush1.bf16.msra.mxu0 %v10083_v28  ;;  %6145 = vmatpush1.bf16.msra.mxu1 %v10086_v29  ;;  %v10149_v28 = vld [vmem:[#allocation7 + $0x8f8] ss:$28 sps:$4 sm:$0xff]   ;;  %v10152_v29 = vld [vmem:[#allocation7 + $0x900] ss:$28 sps:$4 sm:$0xff]  }
 0x3db   :  { %5982 = vmatprep.subr.bf16.mxu0 %v10091_v30  ;;  %6146 = vmatprep.subr.bf16.mxu1 %v10094_v31  ;;  %v10157_v30 = vld [vmem:[#allocation7 + $0x934] ss:$28 sps:$4 sm:$0xff]   ;;  %v10160_v31 = vld [vmem:[#allocation7 + $0x93c] ss:$28 sps:$4 sm:$0xff]  }
 0x3de   :  { %5983 = vmatpush1.bf16.msra.mxu0 %v10089_v33  ;;  %6147 = vmatpush1.bf16.msra.mxu1 %v10092_v52  ;;  %v10163_v33 = vld [vmem:[#allocation7 + $0x96c] ss:$28 sps:$4 sm:$0xff]   ;;  %v10166_v52 = vld [vmem:[#allocation7 + $0x974] ss:$28 sps:$4 sm:$0xff]  }
 0x3df   :  { %5993 = vmatprep.subr.bf16.mxu0 %v10097_v40  ;;  %6157 = vmatprep.subr.bf16.mxu1 %v10100_v41  ;;  %v10164_v40 = vld [vmem:[#allocation7 + $0x970] ss:$28 sps:$4 sm:$0xff]   ;;  %v10169_v41 = vld [vmem:[#allocation7 + $0x9a4] ss:$28 sps:$4 sm:$0xff]  }
 0x3e1   :  { %5985 = vmatmul.mubr.bf16.vlgmr.msra.gmra.mrb[40].mxu0 %v11286_v44  ;;  %6149 = vmatmul.mubr.bf16.vlgmr.msra.gmra.mrb[40].mxu1 %v11286_v44 }
 0x3e2   :  { %5994 = vmatpush1.bf16.msra.mxu0 %v10095_v43  ;;  %6025 = vmatprep.mubr.bf16.mxu0 %v11288_v47  ;;  %v10167_v43 = vld [vmem:[#allocation7 + $0x9a0] ss:$28 sps:$4 sm:$0xff]  }
 0x3e3   :  { %6158 = vmatpush1.bf16.msra.mxu1 %v10098_v45  ;;  %6189 = vmatprep.mubr.bf16.mxu1 %v11288_v47  ;;  %v10170_v45 = vld [vmem:[#allocation7 + $0x9a8] ss:$28 sps:$4 sm:$0xff]  }
 0x3e4   :  { %5995 = vmatprep.subr.bf16.mxu0 %v10103_v50  ;;  %6159 = vmatprep.subr.bf16.mxu1 %v10106_v51  ;;  %v10175_v50 = vld [vmem:[#allocation7 + $0x9dc] ss:$28 sps:$4 sm:$0xff]   ;;  %v10178_v51 = vld [vmem:[#allocation7 + $0x9e4] ss:$28 sps:$4 sm:$0xff]  }
 0x3e6   :  { %5996 = vmatpush1.bf16.msra.mxu0 %v10101_v7  ;;  %v10173_v7 = vld [vmem:[#allocation7 + $0x9d8] ss:$28 sps:$4 sm:$0xff]  }
 0x3e7   :  { %6160 = vmatpush1.bf16.msra.mxu1 %v10104_v3  ;;  %5997 = vmatprep.subr.bf16.mxu0 %v10109_v17  ;;  %v10176_v3 = vld [vmem:[#allocation7 + $0x9e0] ss:$28 sps:$4 sm:$0xff]   ;;  %v10181_v17 = vld [vmem:[#allocation7 + $0xa14] ss:$28 sps:$4 sm:$0xff]  }
 0x3e8   :  { %6161 = vmatprep.subr.bf16.mxu1 %v10112_v57  ;;  %v10184_v57 = vld [vmem:[#allocation7 + $0xa1c] ss:$28 sps:$4 sm:$0xff]  }
 0x3ea   :  { %5998 = vmatpush1.bf16.msra.mxu0 %v10107_v37  ;;  %v10179_v37 = vld [vmem:[#allocation7 + $0xa10] ss:$28 sps:$4 sm:$0xff]  }
 0x3eb   :  { %6162 = vmatpush1.bf16.msra.mxu1 %v10110_v59  ;;  %5999 = vmatprep.subr.bf16.mxu0 %v10115_v36  ;;  %v10182_v59 = vld [vmem:[#allocation7 + $0xa18] ss:$28 sps:$4 sm:$0xff]   ;;  %v10187_v36 = vld [vmem:[#allocation7 + $0xa4c] ss:$28 sps:$4 sm:$0xff]  }
 0x3ec   :  { %6163 = vmatprep.subr.bf16.mxu1 %v10118_v53  ;;  %v3390_v53 = vmul.f32 0.2, %v11266_v5 }
 0x3ee   :  { %6000 = vmatpush1.bf16.msra.mxu0 %v10113_v9  ;;  %v10190_v9 = vld [vmem:[#allocation7 + $0xa54] ss:$28 sps:$4 sm:$0xff]  }
 0x3ef   :  { %6164 = vmatpush1.bf16.msra.mxu1 %v10116_v38  ;;  %6001 = vmatprep.subr.bf16.mxu0 %v10121_v61  ;;  %v10185_v38 = vld [vmem:[#allocation7 + $0xa48] ss:$28 sps:$4 sm:$0xff]   ;;  %v10188_v61 = vld [vmem:[#allocation7 + $0xa50] ss:$28 sps:$4 sm:$0xff]  }
 0x3f0   :  { %6165 = vmatprep.subr.bf16.mxu1 %v10124_v55  ;;  %v3397_v55 = vmax.f32 %v11266_v5, %v3390_v53  ;;  %v10200_v5 = vld [vmem:[#allocation7 + $0xac0] ss:$28 sps:$4 sm:$0xff]   ;;  %v10252_v53 = vld [vmem:[#allocation7 + $0x248] ss:$28 sps:$4 sm:$0xff]  }
 0x3f2   :  { %6002 = vmatpush1.bf16.msra.mxu0 %v10119_v14  ;;  %v10193_v14 = vld [vmem:[#allocation7 + $0xa84] ss:$28 sps:$4 sm:$0xff]  }
 0x3f3   :  { %6166 = vmatpush1.bf16.msra.mxu1 %v10122_v62  ;;  %6003 = vmatprep.subr.bf16.mxu0 %v10127_v10  ;;  %v10196_v62 = vld [vmem:[#allocation7 + $0xa8c] ss:$28 sps:$4 sm:$0xff]   ;;  %v10191_v10 = vld [vmem:[#allocation7 + $0xa80] ss:$28 sps:$4 sm:$0xff]  }
 0x3f4   :  { %6167 = vmatprep.subr.bf16.mxu1 %v10130_v0  ;;  %v11296_v0 = vpack.c.bf16 %v3397_v55, %v3397_v55  ;;  %v10257_v55 = vld [vmem:[#allocation7 + $0x280] ss:$28 sps:$4 sm:$0xff]  }
 0x3f6   :  { %6004 = vmatpush1.bf16.msra.mxu0 %v10125_v1  ;;  %v10194_v1 = vld [vmem:[#allocation7 + $0xa88] ss:$28 sps:$4 sm:$0xff]  }
 0x3f7   :  { %6168 = vmatpush1.bf16.msra.mxu1 %v10128_v2  ;;  %6005 = vmatprep.subr.bf16.mxu0 %v10133_v49  ;;  %v10199_v2 = vld [vmem:[#allocation7 + $0xabc] ss:$28 sps:$4 sm:$0xff]   ;;  %v10202_v49 = vld [vmem:[#allocation7 + $0xac4] ss:$28 sps:$4 sm:$0xff]  }
 0x3f8   :  { %6169 = vmatprep.subr.bf16.mxu1 %v10136_v11  ;;  %v10197_v11 = vld [vmem:[#allocation7 + $0xab8] ss:$28 sps:$4 sm:$0xff]  }
 0x3fa   :  { %6006 = vmatpush1.bf16.msra.mxu0 %v10131_v13  ;;  %v10205_v13 = vld [vmem:[#allocation7 + $0xaf4] ss:$28 sps:$4 sm:$0xff]  }
 0x3fb   :  { %6170 = vmatpush1.bf16.msra.mxu1 %v10134_v16  ;;  %6007 = vmatprep.subr.bf16.mxu0 %v10139_v18  ;;  %v10208_v16 = vld [vmem:[#allocation7 + $0xafc] ss:$28 sps:$4 sm:$0xff]   ;;  %v10203_v18 = vld [vmem:[#allocation7 + $0xaf0] ss:$28 sps:$4 sm:$0xff]  }
 0x3fc   :  { %6171 = vmatprep.subr.bf16.mxu1 %v10142_v19  ;;  %v10206_v19 = vld [vmem:[#allocation7 + $0xaf8] ss:$28 sps:$4 sm:$0xff]  }
 0x3fe   :  { %6008 = vmatpush1.bf16.msra.mxu0 %v10137_v20  ;;  %v10211_v20 = vld [vmem:[#allocation7 + $0xb2c] ss:$28 sps:$4 sm:$0xff]  }
 0x3ff   :  { %6172 = vmatpush1.bf16.msra.mxu1 %v10140_v26  ;;  %6009 = vmatprep.subr.bf16.mxu0 %v10145_v22  ;;  %v10214_v26 = vld [vmem:[#allocation7 + $0xb34] ss:$28 sps:$4 sm:$0xff]   ;;  %v10209_v22 = vld [vmem:[#allocation7 + $0xb28] ss:$28 sps:$4 sm:$0xff]  }
 0x400   :  { %6173 = vmatprep.subr.bf16.mxu1 %v10148_v12  ;;  %v10212_v12 = vld [vmem:[#allocation7 + $0xb30] ss:$28 sps:$4 sm:$0xff]  }
 0x402   :  { %6010 = vmatpush1.bf16.msra.mxu0 %v10143_v25  ;;  %v10217_v25 = vld [vmem:[#allocation7 + $0xb64] ss:$28 sps:$4 sm:$0xff]  }
 0x403   :  { %6174 = vmatpush1.bf16.msra.mxu1 %v10146_v27  ;;  %6011 = vmatprep.subr.bf16.mxu0 %v10151_v63  ;;  %v10220_v27 = vld [vmem:[#allocation7 + $0xb6c] ss:$28 sps:$4 sm:$0xff]   ;;  %v10215_v63 = vld [vmem:[#allocation7 + $0xb60] ss:$28 sps:$4 sm:$0xff]  }
 0x404   :  { %6175 = vmatprep.subr.bf16.mxu1 %v10154_v4  ;;  %v10218_v4 = vld [vmem:[#allocation7 + $0xb68] ss:$28 sps:$4 sm:$0xff]  }
 0x406   :  { %6012 = vmatpush1.bf16.msra.mxu0 %v10149_v28  ;;  %v10223_v28 = vld [vmem:[#allocation7 + $0xb9c] ss:$28 sps:$4 sm:$0xff]  }
 0x407   :  { %6176 = vmatpush1.bf16.msra.mxu1 %v10152_v29  ;;  %6013 = vmatprep.subr.bf16.mxu0 %v10157_v30  ;;  %v10226_v29 = vld [vmem:[#allocation7 + $0xba4] ss:$28 sps:$4 sm:$0xff]   ;;  %v10221_v30 = vld [vmem:[#allocation7 + $0xb98] ss:$28 sps:$4 sm:$0xff]  }
 0x408   :  { %6177 = vmatprep.subr.bf16.mxu1 %v10160_v31  ;;  %v10224_v31 = vld [vmem:[#allocation7 + $0xba0] ss:$28 sps:$4 sm:$0xff]  }
 0x40a   :  { %6014 = vmatpush1.bf16.msra.mxu0 %v10155_v58  ;;  %v10229_v58 = vld [vmem:[#allocation7 + $0xbd4] ss:$28 sps:$4 sm:$0xff]  }
 0x40b   :  { %6178 = vmatpush1.bf16.msra.mxu1 %v10158_v35  ;;  %6015 = vmatprep.subr.bf16.mxu0 %v10163_v33  ;;  %v10232_v35 = vld [vmem:[#allocation7 + $0xbdc] ss:$28 sps:$4 sm:$0xff]   ;;  %v10227_v33 = vld [vmem:[#allocation7 + $0xbd0] ss:$28 sps:$4 sm:$0xff]  }
 0x40c   :  { %6179 = vmatprep.subr.bf16.mxu1 %v10166_v52  ;;  %v10230_v52 = vld [vmem:[#allocation7 + $0xbd8] ss:$28 sps:$4 sm:$0xff]  }
 0x40e   :  { %6016 = vmatpush1.bf16.msra.mxu0 %v10161_v39  ;;  %v10235_v39 = vld [vmem:[#allocation7 + $0xc0c] ss:$28 sps:$4 sm:$0xff]  }
 0x40f   :  { %6180 = vmatpush1.bf16.msra.mxu1 %v10164_v40  ;;  %6017 = vmatprep.subr.bf16.mxu0 %v10169_v41  ;;  %v3392_v40 = vmul.f32 0.2, %v11268_v6  ;;  %v10238_v41 = vld [vmem:[#allocation7 + $0xc14] ss:$28 sps:$4 sm:$0xff]  }
 0x410   :  { %6181 = vmatprep.subr.bf16.mxu1 %v10172_v42  ;;  %v10233_v42 = vld [vmem:[#allocation7 + $0xc08] ss:$28 sps:$4 sm:$0xff]  }
 0x412   :  { %6018 = vmatpush1.bf16.msra.mxu0 %v10167_v43  ;;  %v10236_v43 = vld [vmem:[#allocation7 + $0xc10] ss:$28 sps:$4 sm:$0xff]  }
 0x413   :  { %6182 = vmatpush1.bf16.msra.mxu1 %v10170_v45  ;;  %6019 = vmatprep.subr.bf16.mxu0 %v10175_v50  ;;  %v3399_v45 = vmax.f32 %v11268_v6, %v3392_v40  ;;  %v10241_v50 = vld [vmem:[#allocation7 + $0x14] ss:$28 sps:$4 sm:$0xff]   ;;  %v10296_v40 = vld [vmem:[#allocation7 + $0x27c] ss:$28 sps:$4 sm:$0xff]  }
 0x414   :  { %6183 = vmatprep.subr.bf16.mxu1 %v10178_v51  ;;  %v10242_v51 = vld [vmem:[#allocation7 + $0x1d8] ss:$28 sps:$4 sm:$0xff]   ;;  %v10248_v6 = vld [vmem:[#allocation7 + $0x50] ss:$28 sps:$4 sm:$0xff]  }
 0x416   :  { %6020 = vmatpush1.bf16.msra.mxu0 %v10173_v7  ;;  %v10239_v7 = vld [vmem:[#allocation7 + $0x10] ss:$28 sps:$4 sm:$0xff]  }
 0x417   :  { %6184 = vmatpush1.bf16.msra.mxu1 %v10176_v3  ;;  %6021 = vmatprep.subr.bf16.mxu0 %v10181_v17  ;;  %v11304_v3 = vpack.c.bf16 %v3399_v45, %v3399_v45  ;;  %v10243_v17 = vld [vmem:[#allocation7 + $0x18] ss:$28 sps:$4 sm:$0xff]  }
 0x418   :  { %6185 = vmatprep.subr.bf16.mxu1 %v10184_v57  ;;  %v10246_v57 = vld [vmem:[#allocation7 + $0x4c] ss:$28 sps:$4 sm:$0xff]   ;;  %v10301_v45 = vld [vmem:[#allocation7 + $0x2b4] ss:$28 sps:$4 sm:$0xff]  }
 0x41a   :  { %6022 = vmatpush1.bf16.msra.mxu0 %v10179_v37  ;;  %v10247_v37 = vld [vmem:[#allocation7 + $0x210] ss:$28 sps:$4 sm:$0xff]  }
 0x41b   :  { %6186 = vmatpush1.bf16.msra.mxu1 %v10182_v59  ;;  %6023 = vmatprep.subr.bf16.mxu0 %v10187_v36  ;;  %v10244_v59 = vld [vmem:[#allocation7 + $0x48] ss:$28 sps:$4 sm:$0xff]  }
 0x41c   :  { %6187 = vmatprep.subr.bf16.mxu1 %v10190_v9  ;;  %v10251_v36 = vld [vmem:[#allocation7 + $0x84] ss:$28 sps:$4 sm:$0xff]  }
 0x41d   :  { %v10249_v9 = vld [vmem:[#allocation7 + $0x80] ss:$28 sps:$4 sm:$0xff]  }
 0x41e   :  { %6024 = vmatpush1.bf16.msra.mxu0 %v10185_v38  ;;  %v10253_v38 = vld [vmem:[#allocation7 + $0x88] ss:$28 sps:$4 sm:$0xff]  }
 0x41f   :  { %6188 = vmatpush1.bf16.msra.mxu1 %v10188_v61  ;;  %6034 = vmatprep.subr.bf16.mxu0 %v10193_v14  ;;  %v10256_v61 = vld [vmem:[#allocation7 + $0xbc] ss:$28 sps:$4 sm:$0xff]  }
 0x420   :  { %6198 = vmatprep.subr.bf16.mxu1 %v10196_v62  ;;  %v10254_v14 = vld [vmem:[#allocation7 + $0xb8] ss:$28 sps:$4 sm:$0xff]   ;;  %v10258_v62 = vld [vmem:[#allocation7 + $0xc0] ss:$28 sps:$4 sm:$0xff]  }
 0x421   :  { %6026 = vmatmul.mubr.bf16.vlgmr.msra.gmra.mrb[40].mxu0 %v11296_v0 }
 0x422   :  { %6190 = vmatmul.mubr.bf16.vlgmr.msra.gmra.mrb[40].mxu1 %v11296_v0  ;;  %6035 = vmatpush1.bf16.msra.mxu0 %v10191_v10  ;;  %v10261_v10 = vld [vmem:[#allocation7 + $0xf4] ss:$28 sps:$4 sm:$0xff]  }
 0x423   :  { %6199 = vmatpush1.bf16.msra.mxu1 %v10194_v1  ;;  %6036 = vmatprep.subr.bf16.mxu0 %v10199_v2  ;;  %v10262_v1 = vld [vmem:[#allocation7 + $0x2b8] ss:$28 sps:$4 sm:$0xff]  }
 0x424   :  { %6200 = vmatprep.subr.bf16.mxu1 %v10202_v49  ;;  %6066 = vmatprep.mubr.bf16.mxu0 %v10876_v24  ;;  %v10263_v2 = vld [vmem:[#allocation7 + $0xf8] ss:$28 sps:$4 sm:$0xff]   ;;  %v10266_v49 = vld [vmem:[#allocation7 + $0x12c] ss:$28 sps:$4 sm:$0xff]  }
 0x425   :  { %6230 = vmatprep.mubr.bf16.mxu1 %v10876_v24 }
 0x426   :  { %6037 = vmatpush1.bf16.msra.mxu0 %v10197_v11  ;;  %v10267_v11 = vld [vmem:[#allocation7 + $0x2f0] ss:$28 sps:$4 sm:$0xff]  }
 0x427   :  { %6201 = vmatpush1.bf16.msra.mxu1 %v10200_v5  ;;  %6038 = vmatprep.subr.bf16.mxu0 %v10205_v13  ;;  %v10264_v5 = vld [vmem:[#allocation7 + $0x128] ss:$28 sps:$4 sm:$0xff]   ;;  %v10268_v13 = vld [vmem:[#allocation7 + $0x130] ss:$28 sps:$4 sm:$0xff]  }
 0x428   :  { %6202 = vmatprep.subr.bf16.mxu1 %v10208_v16  ;;  %v10271_v16 = vld [vmem:[#allocation7 + $0x164] ss:$28 sps:$4 sm:$0xff]  }
 0x42a   :  { %6039 = vmatpush1.bf16.msra.mxu0 %v10203_v18  ;;  %v10272_v18 = vld [vmem:[#allocation7 + $0x328] ss:$28 sps:$4 sm:$0xff]  }
 0x42b   :  { %6203 = vmatpush1.bf16.msra.mxu1 %v10206_v19  ;;  %6040 = vmatprep.subr.bf16.mxu0 %v10211_v20  ;;  %v10269_v19 = vld [vmem:[#allocation7 + $0x160] ss:$28 sps:$4 sm:$0xff]   ;;  %v10273_v20 = vld [vmem:[#allocation7 + $0x168] ss:$28 sps:$4 sm:$0xff]  }
 0x42c   :  { %6204 = vmatprep.subr.bf16.mxu1 %v10214_v26  ;;  %v10276_v26 = vld [vmem:[#allocation7 + $0x19c] ss:$28 sps:$4 sm:$0xff]  }
 0x42e   :  { %6041 = vmatpush1.bf16.msra.mxu0 %v10209_v22  ;;  %v10277_v22 = vld [vmem:[#allocation7 + $0x360] ss:$28 sps:$4 sm:$0xff]  }
 0x42f   :  { %6205 = vmatpush1.bf16.msra.mxu1 %v10212_v12  ;;  %6042 = vmatprep.subr.bf16.mxu0 %v10217_v25  ;;  %v10274_v12 = vld [vmem:[#allocation7 + $0x198] ss:$28 sps:$4 sm:$0xff]   ;;  %v10278_v25 = vld [vmem:[#allocation7 + $0x1a0] ss:$28 sps:$4 sm:$0xff]  }
 0x430   :  { %6206 = vmatprep.subr.bf16.mxu1 %v10220_v27  ;;  %v10281_v27 = vld [vmem:[#allocation7 + $0x1d4] ss:$28 sps:$4 sm:$0xff]  }
 0x432   :  { %6043 = vmatpush1.bf16.msra.mxu0 %v10215_v63  ;;  %v10282_v63 = vld [vmem:[#allocation7 + $0x558] ss:$28 sps:$4 sm:$0xff]  }
 0x433   :  { %6207 = vmatpush1.bf16.msra.mxu1 %v10218_v4  ;;  %6044 = vmatprep.subr.bf16.mxu0 %v10223_v28  ;;  %v10279_v4 = vld [vmem:[#allocation7 + $0x1d0] ss:$28 sps:$4 sm:$0xff]   ;;  %v10283_v28 = vld [vmem:[#allocation7 + $0x398] ss:$28 sps:$4 sm:$0xff]  }
 0x434   :  { %6208 = vmatprep.subr.bf16.mxu1 %v10226_v29  ;;  %v10286_v29 = vld [vmem:[#allocation7 + $0x20c] ss:$28 sps:$4 sm:$0xff]  }
 0x436   :  { %6045 = vmatpush1.bf16.msra.mxu0 %v10221_v30  ;;  %v10287_v30 = vld [vmem:[#allocation7 + $0x590] ss:$28 sps:$4 sm:$0xff]  }
 0x437   :  { %6209 = vmatpush1.bf16.msra.mxu1 %v10224_v31  ;;  %6046 = vmatprep.subr.bf16.mxu0 %v10229_v58  ;;  %v10284_v31 = vld [vmem:[#allocation7 + $0x208] ss:$28 sps:$4 sm:$0xff]   ;;  %v10288_v58 = vld [vmem:[#allocation7 + $0x3d0] ss:$28 sps:$4 sm:$0xff]  }
 0x438   :  { %6210 = vmatprep.subr.bf16.mxu1 %v10232_v35  ;;  %v10291_v35 = vld [vmem:[#allocation7 + $0x244] ss:$28 sps:$4 sm:$0xff]  }
 0x43a   :  { %6047 = vmatpush1.bf16.msra.mxu0 %v10227_v33  ;;  %v10292_v33 = vld [vmem:[#allocation7 + $0x5c8] ss:$28 sps:$4 sm:$0xff]  }
 0x43b   :  { %6211 = vmatpush1.bf16.msra.mxu1 %v10230_v52  ;;  %6048 = vmatprep.subr.bf16.mxu0 %v10235_v39  ;;  %v10289_v52 = vld [vmem:[#allocation7 + $0x240] ss:$28 sps:$4 sm:$0xff]   ;;  %v10293_v39 = vld [vmem:[#allocation7 + $0x408] ss:$28 sps:$4 sm:$0xff]  }
 0x43c   :  { %6212 = vmatprep.subr.bf16.mxu1 %v10238_v41  ;;  %v10297_v41 = vld [vmem:[#allocation7 + $0x600] ss:$28 sps:$4 sm:$0xff]  }
 0x43e   :  { %6049 = vmatpush1.bf16.msra.mxu0 %v10233_v42  ;;  %v10294_v42 = vld [vmem:[#allocation7 + $0x278] ss:$28 sps:$4 sm:$0xff]  }
 0x43f   :  { %6213 = vmatpush1.bf16.msra.mxu1 %v10236_v43  ;;  %6239 = vmatprep.subr.bf16.mxu0 %v10241_v50  ;;  %v10298_v43 = vld [vmem:[#allocation7 + $0x440] ss:$28 sps:$4 sm:$0xff]   ;;  %v10302_v50 = vld [vmem:[#allocation7 + $0x638] ss:$28 sps:$4 sm:$0xff]  }
 0x440   :  { %9134 = vmatprep.subr.bf16.mxu1 %v10242_v51  ;;  %v10299_v51 = vld [vmem:[#allocation7 + $0x2b0] ss:$28 sps:$4 sm:$0xff]  }
 0x441   :  { %6067 = vmatmul.mubr.bf16.vlgmr.msra.gmra.mrb[40].mxu0 %v11304_v3 }
 0x442   :  { %6231 = vmatmul.mubr.bf16.vlgmr.msra.gmra.mrb[40].mxu1 %v11304_v3  ;;  %6240 = vmatpush1.bf16.msra.mxu0 %v10239_v7  ;;  %v10303_v7 = vld [vmem:[#allocation7 + $0x478] ss:$28 sps:$4 sm:$0xff]  }
 0x443   :  { %6271 = vmatprep.mubr.bf16.mxu0 %v11270_v15  ;;  %9135 = vmatpush3.bf16.msra.mxu1 %v10243_v17  ;;  %v10306_v17 = vld [vmem:[#allocation7 + $0x2ec] ss:$28 sps:$4 sm:$0xff]  }
 0x444   :  { %6435 = vmatprep.mubr.bf16.mxu1 %v11270_v15  ;;  %6241 = vmatprep.subr.bf16.mxu0 %v10246_v57  ;;  %v10259_v15 = vld [vmem:[#allocation7 + $0xf0] ss:$28 sps:$4 sm:$0xff]  }
 0x445   :  { %9136 = vmatprep.subr.bf16.mxu1 %v10247_v37  ;;  %v10307_v57 = vld [vmem:[#allocation7 + $0x670] ss:$28 sps:$4 sm:$0xff]   ;;  %v10304_v37 = vld [vmem:[#allocation7 + $0x2e8] ss:$28 sps:$4 sm:$0xff]  }
 0x446   :  { %6242 = vmatpush1.bf16.msra.mxu0 %v10244_v59  ;;  %v10308_v59 = vld [vmem:[#allocation7 + $0x4b0] ss:$28 sps:$4 sm:$0xff]  }
 0x447   :  { %9137 = vmatpush3.bf16.msra.mxu1 %v10248_v6  ;;  %6243 = vmatprep.subr.bf16.mxu0 %v10251_v36  ;;  %v10311_v6 = vld [vmem:[#allocation7 + $0x324] ss:$28 sps:$4 sm:$0xff]  }
 0x448   :  { %9138 = vmatprep.subr.bf16.mxu1 %v10252_v53  ;;  %v10312_v36 = vld [vmem:[#allocation7 + $0x6a8] ss:$28 sps:$4 sm:$0xff]   ;;  %v10309_v53 = vld [vmem:[#allocation7 + $0x320] ss:$28 sps:$4 sm:$0xff]  }
 0x44a   :  { %6244 = vmatpush1.bf16.msra.mxu0 %v10249_v9  ;;  %v10313_v9 = vld [vmem:[#allocation7 + $0x4e8] ss:$28 sps:$4 sm:$0xff]  }
 0x44b   :  { %9139 = vmatpush3.bf16.msra.mxu1 %v10253_v38  ;;  %6245 = vmatprep.subr.bf16.mxu0 %v10256_v61  ;;  %v10316_v38 = vld [vmem:[#allocation7 + $0x35c] ss:$28 sps:$4 sm:$0xff]  }
 0x44c   :  { %9140 = vmatprep.subr.bf16.mxu1 %v10257_v55  ;;  %v10317_v61 = vld [vmem:[#allocation7 + $0x6e0] ss:$28 sps:$4 sm:$0xff]   ;;  %v10314_v55 = vld [vmem:[#allocation7 + $0x358] ss:$28 sps:$4 sm:$0xff]  }
 0x44e   :  { %6246 = vmatpush1.bf16.msra.mxu0 %v10254_v14  ;;  %v10318_v14 = vld [vmem:[#allocation7 + $0x520] ss:$28 sps:$4 sm:$0xff]  }
 0x44f   :  { %9141 = vmatpush3.bf16.msra.mxu1 %v10258_v62  ;;  %6247 = vmatprep.subr.bf16.mxu0 %v10261_v10  ;;  %v10321_v62 = vld [vmem:[#allocation7 + $0x394] ss:$28 sps:$4 sm:$0xff]  }
 0x450   :  { %9142 = vmatprep.subr.bf16.mxu1 %v10262_v1  ;;  %v10322_v10 = vld [vmem:[#allocation7 + $0x8d8] ss:$28 sps:$4 sm:$0xff]   ;;  %v10319_v1 = vld [vmem:[#allocation7 + $0x390] ss:$28 sps:$4 sm:$0xff]  }
 0x452   :  { %6248 = vmatpush1.bf16.msra.mxu0 %v10259_v15  ;;  %v10323_v15 = vld [vmem:[#allocation7 + $0x718] ss:$28 sps:$4 sm:$0xff]  }
 0x453   :  { %9143 = vmatpush3.bf16.msra.mxu1 %v10263_v2  ;;  %6249 = vmatprep.subr.bf16.mxu0 %v10266_v49  ;;  %v10326_v2 = vld [vmem:[#allocation7 + $0x3cc] ss:$28 sps:$4 sm:$0xff]  }
 0x454   :  { %9144 = vmatprep.subr.bf16.mxu1 %v10267_v11  ;;  %v10327_v49 = vld [vmem:[#allocation7 + $0x910] ss:$28 sps:$4 sm:$0xff]   ;;  %v10324_v11 = vld [vmem:[#allocation7 + $0x3c8] ss:$28 sps:$4 sm:$0xff]  }
 0x456   :  { %6250 = vmatpush1.bf16.msra.mxu0 %v10264_v5  ;;  %v10328_v5 = vld [vmem:[#allocation7 + $0x750] ss:$28 sps:$4 sm:$0xff]  }
 0x457   :  { %9145 = vmatpush3.bf16.msra.mxu1 %v10268_v13  ;;  %6251 = vmatprep.subr.bf16.mxu0 %v10271_v16  ;;  %v10331_v13 = vld [vmem:[#allocation7 + $0x404] ss:$28 sps:$4 sm:$0xff]  }
 0x458   :  { %9146 = vmatprep.subr.bf16.mxu1 %v10272_v18  ;;  %v10332_v16 = vld [vmem:[#allocation7 + $0x948] ss:$28 sps:$4 sm:$0xff]   ;;  %v10329_v18 = vld [vmem:[#allocation7 + $0x400] ss:$28 sps:$4 sm:$0xff]  }
 0x45a   :  { %6252 = vmatpush1.bf16.msra.mxu0 %v10269_v19  ;;  %v10336_v19 = vld [vmem:[#allocation7 + $0x43c] ss:$28 sps:$4 sm:$0xff]  }
 0x45b   :  { %9147 = vmatpush3.bf16.msra.mxu1 %v10273_v20  ;;  %6253 = vmatprep.subr.bf16.mxu0 %v10276_v26  ;;  %v10337_v20 = vld [vmem:[#allocation7 + $0x980] ss:$28 sps:$4 sm:$0xff]   ;;  %v10334_v26 = vld [vmem:[#allocation7 + $0x438] ss:$28 sps:$4 sm:$0xff]  }
 0x45c   :  { %9148 = vmatprep.subr.bf16.mxu1 %v10277_v22  ;;  %v10341_v22 = vld [vmem:[#allocation7 + $0x474] ss:$28 sps:$4 sm:$0xff]  }
 0x45e   :  { %6254 = vmatpush1.bf16.msra.mxu0 %v10274_v12  ;;  %v10342_v12 = vld [vmem:[#allocation7 + $0x9b8] ss:$28 sps:$4 sm:$0xff]  }
 0x45f   :  { %9149 = vmatpush3.bf16.msra.mxu1 %v10278_v25  ;;  %6255 = vmatprep.subr.bf16.mxu0 %v10281_v27  ;;  %v10339_v25 = vld [vmem:[#allocation7 + $0x470] ss:$28 sps:$4 sm:$0xff]   ;;  %v10343_v27 = vld [vmem:[#allocation7 + $0x7f8] ss:$28 sps:$4 sm:$0xff]  }
 0x460   :  { %9156 = vmatprep.subr.bf16.mxu1 %v10282_v63  ;;  %v10346_v63 = vld [vmem:[#allocation7 + $0x4ac] ss:$28 sps:$4 sm:$0xff]  }
 0x462   :  { %6436 = vmatmul.mubr.bf16.vlgmr.msra.gmra.mrb[44].mxu1 %v11272_v21  ;;  %6256 = vmatpush1.bf16.msra.mxu0 %v10279_v4  ;;  %v10347_v4 = vld [vmem:[#allocation7 + $0x9f0] ss:$28 sps:$4 sm:$0xff]  }
 0x463   :  { %9157 = vmatpush3.bf16.msra.mxu1 %v10283_v28  ;;  %6475 = vmatprep.mubr.bf16.mxu1 %v11278_v23  ;;  %v10344_v28 = vld [vmem:[#allocation7 + $0x4a8] ss:$28 sps:$4 sm:$0xff]  }
 0x464   :  { %6257 = vmatprep.subr.bf16.mxu0 %v10286_v29  ;;  %9158 = vmatprep.subr.bf16.mxu1 %v10287_v30  ;;  %v10348_v29 = vld [vmem:[#allocation7 + $0x830] ss:$28 sps:$4 sm:$0xff]   ;;  %v10351_v30 = vld [vmem:[#allocation7 + $0x4e4] ss:$28 sps:$4 sm:$0xff]  }
 0x466   :  { %6258 = vmatpush1.bf16.msra.mxu0 %v10284_v31  ;;  %v10352_v31 = vld [vmem:[#allocation7 + $0xa28] ss:$28 sps:$4 sm:$0xff]  }
 0x467   :  { %9159 = vmatpush3.bf16.msra.mxu1 %v10288_v58  ;;  %6259 = vmatprep.subr.bf16.mxu0 %v10291_v35  ;;  %v10349_v58 = vld [vmem:[#allocation7 + $0x4e0] ss:$28 sps:$4 sm:$0xff]   ;;  %v10353_v35 = vld [vmem:[#allocation7 + $0x868] ss:$28 sps:$4 sm:$0xff]  }
 0x468   :  { %9160 = vmatprep.subr.bf16.mxu1 %v10292_v33  ;;  %v10356_v33 = vld [vmem:[#allocation7 + $0x51c] ss:$28 sps:$4 sm:$0xff]  }
 0x46a   :  { %6260 = vmatpush1.bf16.msra.mxu0 %v10289_v52  ;;  %v10357_v52 = vld [vmem:[#allocation7 + $0xa60] ss:$28 sps:$4 sm:$0xff]  }
 0x46b   :  { %9161 = vmatpush3.bf16.msra.mxu1 %v10293_v39  ;;  %6261 = vmatprep.subr.bf16.mxu0 %v10296_v40  ;;  %v10354_v39 = vld [vmem:[#allocation7 + $0x518] ss:$28 sps:$4 sm:$0xff]   ;;  %v10358_v40 = vld [vmem:[#allocation7 + $0x8a0] ss:$28 sps:$4 sm:$0xff]  }
 0x46c   :  { %9162 = vmatprep.subr.bf16.mxu1 %v10297_v41  ;;  %v10361_v41 = vld [vmem:[#allocation7 + $0x554] ss:$28 sps:$4 sm:$0xff]  }
 0x46e   :  { %6262 = vmatpush1.bf16.msra.mxu0 %v10294_v42  ;;  %v10359_v42 = vld [vmem:[#allocation7 + $0x550] ss:$28 sps:$4 sm:$0xff]  }
 0x46f   :  { %9163 = vmatpush3.bf16.msra.mxu1 %v10298_v43  ;;  %6263 = vmatprep.subr.bf16.mxu0 %v10301_v45  ;;  %v10362_v43 = vld [vmem:[#allocation7 + $0xa98] ss:$28 sps:$4 sm:$0xff]   ;;  %v10365_v45 = vld [vmem:[#allocation7 + $0x58c] ss:$28 sps:$4 sm:$0xff]  }
 0x470   :  { %9164 = vmatprep.subr.bf16.mxu1 %v10302_v50  ;;  %v10363_v50 = vld [vmem:[#allocation7 + $0x588] ss:$28 sps:$4 sm:$0xff]  }
 0x472   :  { %6264 = vmatpush1.bf16.msra.mxu0 %v10299_v51  ;;  %v10366_v51 = vld [vmem:[#allocation7 + $0xad0] ss:$28 sps:$4 sm:$0xff]  }
 0x473   :  { %9165 = vmatpush3.bf16.msra.mxu1 %v10303_v7  ;;  %6265 = vmatprep.subr.bf16.mxu0 %v10306_v17  ;;  %v10369_v7 = vld [vmem:[#allocation7 + $0x5c4] ss:$28 sps:$4 sm:$0xff]  }
 0x474   :  { %9166 = vmatprep.subr.bf16.mxu1 %v10307_v57  ;;  %v10367_v17 = vld [vmem:[#allocation7 + $0x5c0] ss:$28 sps:$4 sm:$0xff]   ;;  %v10370_v57 = vld [vmem:[#allocation7 + $0xb08] ss:$28 sps:$4 sm:$0xff]  }
 0x476   :  { %6266 = vmatpush1.bf16.msra.mxu0 %v10304_v37  ;;  %v10373_v37 = vld [vmem:[#allocation7 + $0x5fc] ss:$28 sps:$4 sm:$0xff]  }
 0x477   :  { %9167 = vmatpush3.bf16.msra.mxu1 %v10308_v59  ;;  %6267 = vmatprep.subr.bf16.mxu0 %v10311_v6  ;;  %v10371_v59 = vld [vmem:[#allocation7 + $0x5f8] ss:$28 sps:$4 sm:$0xff]   ;;  %v10374_v6 = vld [vmem:[#allocation7 + $0xb40] ss:$28 sps:$4 sm:$0xff]  }
 0x478   :  { %9168 = vmatprep.subr.bf16.mxu1 %v10312_v36  ;;  %v10377_v36 = vld [vmem:[#allocation7 + $0x634] ss:$28 sps:$4 sm:$0xff]  }
 0x47a   :  { %6268 = vmatpush1.bf16.msra.mxu0 %v10309_v53  ;;  %v10375_v53 = vld [vmem:[#allocation7 + $0x630] ss:$28 sps:$4 sm:$0xff]  }
 0x47b   :  { %9169 = vmatpush3.bf16.msra.mxu1 %v10313_v9  ;;  %6269 = vmatprep.subr.bf16.mxu0 %v10316_v38  ;;  %v10378_v9 = vld [vmem:[#allocation7 + $0xb78] ss:$28 sps:$4 sm:$0xff]   ;;  %v10381_v38 = vld [vmem:[#allocation7 + $0x66c] ss:$28 sps:$4 sm:$0xff]  }
 0x47c   :  { %9170 = vmatprep.subr.bf16.mxu1 %v10317_v61  ;;  %v10379_v61 = vld [vmem:[#allocation7 + $0x668] ss:$28 sps:$4 sm:$0xff]  }
 0x47e   :  { %6270 = vmatpush1.bf16.msra.mxu0 %v10314_v55  ;;  %v10382_v55 = vld [vmem:[#allocation7 + $0xbb0] ss:$28 sps:$4 sm:$0xff]  }
 0x47f   :  { %9171 = vmatpush3.bf16.msra.mxu1 %v10318_v14  ;;  %6280 = vmatprep.subr.bf16.mxu0 %v10321_v62  ;;  %v10385_v14 = vld [vmem:[#allocation7 + $0x6a4] ss:$28 sps:$4 sm:$0xff]  }
 0x480   :  { %9178 = vmatprep.subr.bf16.mxu1 %v10322_v10  ;;  %v10383_v62 = vld [vmem:[#allocation7 + $0x6a0] ss:$28 sps:$4 sm:$0xff]   ;;  %v10386_v10 = vld [vmem:[#allocation7 + $0xbe8] ss:$28 sps:$4 sm:$0xff]  }
 0x481   :  { %6272 = vmatmul.mubr.bf16.vlgmr.msra.gmra.mrb[44].mxu0 %v11272_v21  ;;  %v10333_v21 = vld [vmem:[#allocation7 + $0x788] ss:$28 sps:$4 sm:$0xff]  }
 0x482   :  { %6476 = vmatmul.mubr.bf16.vlgmr.msra.gmra.mrb[48].mxu1 %v11286_v44  ;;  %6281 = vmatpush1.bf16.msra.mxu0 %v10319_v1  ;;  %v10389_v1 = vld [vmem:[#allocation7 + $0x6dc] ss:$28 sps:$4 sm:$0xff]  }
 0x483   :  { %6312 = vmatprep.mubr.bf16.mxu0 %v11278_v23  ;;  %9179 = vmatpush3.bf16.msra.mxu1 %v10323_v15  ;;  %v10338_v23 = vld [vmem:[#allocation7 + $0x7c0] ss:$28 sps:$4 sm:$0xff]   ;;  %v10387_v15 = vld [vmem:[#allocation7 + $0x6d8] ss:$28 sps:$4 sm:$0xff]  }
 0x484   :  { %6515 = vmatprep.mubr.bf16.mxu1 %v11288_v47  ;;  %6282 = vmatprep.subr.bf16.mxu0 %v10326_v2  ;;  %v10390_v2 = vld [vmem:[#allocation7 + $0xc20] ss:$28 sps:$4 sm:$0xff]  }
 0x485   :  { %9180 = vmatprep.subr.bf16.mxu1 %v10327_v49  ;;  %v10393_v49 = vld [vmem:[#allocation7 + $0x714] ss:$28 sps:$4 sm:$0xff]  }
 0x486   :  { %6283 = vmatpush1.bf16.msra.mxu0 %v10324_v11  ;;  %v10391_v11 = vld [vmem:[#allocation7 + $0x710] ss:$28 sps:$4 sm:$0xff]  }
 0x487   :  { %9181 = vmatpush3.bf16.msra.mxu1 %v10328_v5  ;;  %6284 = vmatprep.subr.bf16.mxu0 %v10331_v13  ;;  %v10396_v5 = vld [vmem:[#allocation7 + $0x74c] ss:$28 sps:$4 sm:$0xff]  }
 0x488   :  { %9182 = vmatprep.subr.bf16.mxu1 %v10332_v16  ;;  %v10394_v13 = vld [vmem:[#allocation7 + $0x748] ss:$28 sps:$4 sm:$0xff]  }
 0x489   :  { %v10399_v16 = vld [vmem:[#allocation7 + $0x784] ss:$28 sps:$4 sm:$0xff]  }
 0x48a   :  { %6285 = vmatpush1.bf16.msra.mxu0 %v10329_v18  ;;  %v10397_v18 = vld [vmem:[#allocation7 + $0x780] ss:$28 sps:$4 sm:$0xff]  }
 0x48b   :  { %9183 = vmatpush3.bf16.msra.mxu1 %v10333_v21  ;;  %6286 = vmatprep.subr.bf16.mxu0 %v10336_v19  ;;  %v10402_v21 = vld [vmem:[#allocation7 + $0x7bc] ss:$28 sps:$4 sm:$0xff]  }
 0x48c   :  { %9184 = vmatprep.subr.bf16.mxu1 %v10337_v20  ;;  %v10400_v19 = vld [vmem:[#allocation7 + $0x7b8] ss:$28 sps:$4 sm:$0xff]  }
 0x48d   :  { %v10405_v20 = vld [vmem:[#allocation7 + $0x7f4] ss:$28 sps:$4 sm:$0xff]  }
 0x48e   :  { %6287 = vmatpush1.bf16.msra.mxu0 %v10334_v26  ;;  %v10403_v26 = vld [vmem:[#allocation7 + $0x7f0] ss:$28 sps:$4 sm:$0xff]  }
 0x48f   :  { %9185 = vmatpush3.bf16.msra.mxu1 %v10338_v23  ;;  %6288 = vmatprep.subr.bf16.mxu0 %v10341_v22  ;;  %v10406_v23 = vld [vmem:[#allocation7 + $0x828] ss:$28 sps:$4 sm:$0xff]  }
 0x490   :  { %9186 = vmatprep.subr.bf16.mxu1 %v10342_v12  ;;  %v10411_v22 = vld [vmem:[#allocation7 + $0x864] ss:$28 sps:$4 sm:$0xff]   ;;  %v10414_v12 = vld [vmem:[#allocation7 + $0x89c] ss:$28 sps:$4 sm:$0xff]  }
 0x492   :  { %6289 = vmatpush1.bf16.msra.mxu0 %v10339_v25  ;;  %v10412_v25 = vld [vmem:[#allocation7 + $0x898] ss:$28 sps:$4 sm:$0xff]  }
 0x493   :  { %9187 = vmatpush3.bf16.msra.mxu1 %v10343_v27  ;;  %6290 = vmatprep.subr.bf16.mxu0 %v10346_v63  ;;  %v10417_v27 = vld [vmem:[#allocation7 + $0x8d4] ss:$28 sps:$4 sm:$0xff]  }
 0x494   :  { %9188 = vmatprep.subr.bf16.mxu1 %v10347_v4  ;;  %v10415_v63 = vld [vmem:[#allocation7 + $0x8d0] ss:$28 sps:$4 sm:$0xff]  }
 0x495   :  { %v10420_v4 = vld [vmem:[#allocation7 + $0x90c] ss:$28 sps:$4 sm:$0xff]  }
 0x496   :  { %6291 = vmatpush1.bf16.msra.mxu0 %v10344_v28  ;;  %v10418_v28 = vld [vmem:[#allocation7 + $0x908] ss:$28 sps:$4 sm:$0xff]  }
 0x497   :  { %9189 = vmatpush3.bf16.msra.mxu1 %v10348_v29  ;;  %6292 = vmatprep.subr.bf16.mxu0 %v10351_v30  ;;  %v10423_v29 = vld [vmem:[#allocation7 + $0x944] ss:$28 sps:$4 sm:$0xff]  }
 0x498   :  { %9190 = vmatprep.subr.bf16.mxu1 %v10352_v31  ;;  %v10421_v30 = vld [vmem:[#allocation7 + $0x940] ss:$28 sps:$4 sm:$0xff]  }
 0x499   :  { %v10426_v31 = vld [vmem:[#allocation7 + $0x97c] ss:$28 sps:$4 sm:$0xff]  }
 0x49a   :  { %6293 = vmatpush1.bf16.msra.mxu0 %v10349_v58  ;;  %v10424_v58 = vld [vmem:[#allocation7 + $0x978] ss:$28 sps:$4 sm:$0xff]  }
 0x49b   :  { %9191 = vmatpush3.bf16.msra.mxu1 %v10353_v35  ;;  %6294 = vmatprep.subr.bf16.mxu0 %v10356_v33  ;;  %v10429_v35 = vld [vmem:[#allocation7 + $0x9b4] ss:$28 sps:$4 sm:$0xff]  }
 0x49c   :  { %9192 = vmatprep.subr.bf16.mxu1 %v10357_v52  ;;  %v10427_v33 = vld [vmem:[#allocation7 + $0x9b0] ss:$28 sps:$4 sm:$0xff]  }
 0x49d   :  { %v10432_v52 = vld [vmem:[#allocation7 + $0x9ec] ss:$28 sps:$4 sm:$0xff]  }
 0x49e   :  { %6295 = vmatpush1.bf16.msra.mxu0 %v10354_v39  ;;  %v10430_v39 = vld [vmem:[#allocation7 + $0x9e8] ss:$28 sps:$4 sm:$0xff]  }
 0x49f   :  { %9193 = vmatpush3.bf16.msra.mxu1 %v10358_v40  ;;  %6296 = vmatprep.subr.bf16.mxu0 %v10361_v41  ;;  %v10435_v40 = vld [vmem:[#allocation7 + $0xa24] ss:$28 sps:$4 sm:$0xff]  }
 0x4a0   :  { %9262 = vmatprep.subr.bf16.mxu1 %v10877_v54  ;;  %v10433_v41 = vld [vmem:[#allocation7 + $0xa20] ss:$28 sps:$4 sm:$0xff]  }
 0x4a2   :  { %6516 = vmatmul.mubr.bf16.vlgmr.msra.gmra.mrb[52].mxu1 %v11296_v0  ;;  %6297 = vmatpush1.bf16.msra.mxu0 %v10359_v42  ;;  %v10438_v42 = vld [vmem:[#allocation7 + $0xa5c] ss:$28 sps:$4 sm:$0xff]  }
 0x4a3   :  { %9263 = vmatpush3.bf16.msra.mxu1 %v10362_v43  ;;  %6298 = vmatprep.subr.bf16.mxu0 %v10365_v45  ;;  %v10436_v43 = vld [vmem:[#allocation7 + $0xa58] ss:$28 sps:$4 sm:$0xff]  }
 0x4a4   :  { %9264 = vmatprep.subr.bf16.mxu1 %v10877_v54  ;;  %9278 = vmatprep.mubr.msk.bf16.mxu1 %vm10878_vm2, %v10877_v54  ;;  %v10441_v45 = vld [vmem:[#allocation7 + $0xa94] ss:$28 sps:$4 sm:$0xff]  }
 0x4a6   :  { %6299 = vmatpush1.bf16.msra.mxu0 %v10363_v50  ;;  %v10439_v50 = vld [vmem:[#allocation7 + $0xa90] ss:$28 sps:$4 sm:$0xff]  }
 0x4a7   :  { %9265 = vmatpush3.bf16.msra.mxu1 %v10366_v51  ;;  %6300 = vmatprep.subr.bf16.mxu0 %v10369_v7  ;;  %v10444_v51 = vld [vmem:[#allocation7 + $0xacc] ss:$28 sps:$4 sm:$0xff]  }
 0x4a8   :  { %9266 = vmatprep.subr.bf16.mxu1 %v10877_v54  ;;  %v10442_v7 = vld [vmem:[#allocation7 + $0xac8] ss:$28 sps:$4 sm:$0xff]  }
 0x4aa   :  { %6301 = vmatpush1.bf16.msra.mxu0 %v10367_v17  ;;  %v10447_v17 = vld [vmem:[#allocation7 + $0xb04] ss:$28 sps:$4 sm:$0xff]  }
 0x4ab   :  { %9267 = vmatpush3.bf16.msra.mxu1 %v10370_v57  ;;  %6302 = vmatprep.subr.bf16.mxu0 %v10373_v37  ;;  %v10445_v57 = vld [vmem:[#allocation7 + $0xb00] ss:$28 sps:$4 sm:$0xff]  }
 0x4ac   :  { %9268 = vmatprep.subr.bf16.mxu1 %v10877_v54  ;;  %v10450_v37 = vld [vmem:[#allocation7 + $0xb3c] ss:$28 sps:$4 sm:$0xff]  }
 0x4ae   :  { %6303 = vmatpush1.bf16.msra.mxu0 %v10371_v59  ;;  %v10448_v59 = vld [vmem:[#allocation7 + $0xb38] ss:$28 sps:$4 sm:$0xff]  }
 0x4af   :  { %9269 = vmatpush3.bf16.msra.mxu1 %v10374_v6  ;;  %6304 = vmatprep.subr.bf16.mxu0 %v10377_v36  ;;  %v10453_v6 = vld [vmem:[#allocation7 + $0xb74] ss:$28 sps:$4 sm:$0xff]  }
 0x4b0   :  { %9270 = vmatprep.subr.bf16.mxu1 %v10877_v54  ;;  %v10451_v36 = vld [vmem:[#allocation7 + $0xb70] ss:$28 sps:$4 sm:$0xff]  }
 0x4b2   :  { %6305 = vmatpush1.bf16.msra.mxu0 %v10375_v53  ;;  %v10456_v53 = vld [vmem:[#allocation7 + $0xbac] ss:$28 sps:$4 sm:$0xff]  }
 0x4b3   :  { %9271 = vmatpush3.bf16.msra.mxu1 %v10378_v9  ;;  %6306 = vmatprep.subr.bf16.mxu0 %v10381_v38  ;;  %v10459_v9 = vld [vmem:[#allocation7 + $0xbe4] ss:$28 sps:$4 sm:$0xff]  }
 0x4b4   :  { %9272 = vmatprep.subr.bf16.mxu1 %v10877_v54 }
 0x4b6   :  { %6307 = vmatpush1.bf16.msra.mxu0 %v10379_v61 }
 0x4b7   :  { %9273 = vmatpush3.bf16.msra.mxu1 %v10382_v55  ;;  %6308 = vmatprep.subr.bf16.mxu0 %v10385_v14 }
 0x4b8   :  { %9274 = vmatprep.subr.bf16.mxu1 %v10877_v54 }
 0x4ba   :  { %6309 = vmatpush1.bf16.msra.mxu0 %v10383_v62 }
 0x4bb   :  { %9275 = vmatpush3.bf16.msra.mxu1 %v10386_v10  ;;  %6310 = vmatprep.subr.bf16.mxu0 %v10389_v1  ;;  %v10457_v10 = vld [vmem:[#allocation7 + $0xbe0] ss:$28 sps:$4 sm:$0xff]  }
 0x4bc   :  { %9276 = vmatprep.subr.bf16.mxu1 %v10877_v54 }
 0x4be   :  { %6311 = vmatpush1.bf16.msra.mxu0 %v10387_v15 }
 0x4bf   :  { %9277 = vmatpush3.bf16.msra.mxu1 %v10390_v2  ;;  %6321 = vmatprep.subr.bf16.mxu0 %v10393_v49  ;;  %v10462_v2 = vld [vmem:[#allocation7 + $0xc1c] ss:$28 sps:$4 sm:$0xff]  }
 0x4c1   :  { %6313 = vmatmul.mubr.bf16.vlgmr.msra.gmra.mrb[44].mxu0 %v11286_v44  ;;  %v10408_v44 = vld [vmem:[#allocation7 + $0x82c] ss:$28 sps:$4 sm:$0xff]  }
 0x4c2   :  { %9279 = vmatmul.mubr.bf16.vlgmr.msra.gmra.mrb[56].mxu1 %v11304_v3  ;;  %6322 = vmatpush1.bf16.msra.mxu0 %v10391_v11  ;;  %v10460_v11 = vld [vmem:[#allocation7 + $0xc18] ss:$28 sps:$4 sm:$0xff]  }
 0x4c3   :  { %6353 = vmatprep.mubr.bf16.mxu0 %v11288_v47  ;;  %6323 = vmatprep.subr.bf16.mxu0 %v10396_v5  ;;  %v10409_v47 = vld [vmem:[#allocation7 + $0x860] ss:$28 sps:$4 sm:$0xff]  }
 0x4c6   :  { %6324 = vmatpush1.bf16.msra.mxu0 %v10394_v13 }
 0x4c7   :  { %6325 = vmatprep.subr.bf16.mxu0 %v10399_v16 }
 0x4ca   :  { %6326 = vmatpush1.bf16.msra.mxu0 %v10397_v18 }
 0x4cb   :  { %6327 = vmatprep.subr.bf16.mxu0 %v10402_v21 }
 0x4ce   :  { %6328 = vmatpush1.bf16.msra.mxu0 %v10400_v19  ;;  %v3856_v19 = vld [vmem:[#allocation13 + $0x3] ss:$8 sm:$0xf] }
 0x4cf   :  { %6329 = vmatprep.subr.bf16.mxu0 %v10405_v20  ;;  %v3857_v20 = vld [vmem:[#allocation13 + $0x3] ss:$8 sm:$0xf0] }
 0x4d2   :  { %6330 = vmatpush1.bf16.msra.mxu0 %v10403_v26  ;;  %v11341_v26 = vor.u32 %v3857_v20, %v3856_v19 }
 0x4d3   :  { %6331 = vmatprep.subr.bf16.mxu0 %v10408_v44 }
 0x4d4   :  { %v3887_v44 = vrot.slane %v11341_v26, %v11218_v60 }
 0x4d6   :  { %6332 = vmatpush1.bf16.msra.mxu0 %v10406_v23 }
 0x4d7   :  { %6333 = vmatprep.subr.bf16.mxu0 %v10411_v22 }
 0x4da   :  { %6334 = vmatpush1.bf16.msra.mxu0 %v10409_v47 }
 0x4db   :  { %6335 = vmatprep.subr.bf16.mxu0 %v10414_v12 }
 0x4de   :  { %6336 = vmatpush1.bf16.msra.mxu0 %v10412_v25 }
 0x4df   :  { %6337 = vmatprep.subr.bf16.mxu0 %v10417_v27 }
 0x4e2   :  { %6338 = vmatpush1.bf16.msra.mxu0 %v10415_v63 }
 0x4e3   :  { %6339 = vmatprep.subr.bf16.mxu0 %v10420_v4 }
 0x4e6   :  { %6340 = vmatpush1.bf16.msra.mxu0 %v10418_v28 }
 0x4e7   :  { %6341 = vmatprep.subr.bf16.mxu0 %v10423_v29 }
 0x4ea   :  { %6342 = vmatpush1.bf16.msra.mxu0 %v10421_v30 }
 0x4eb   :  { %6343 = vmatprep.subr.bf16.mxu0 %v10426_v31 }
 0x4ee   :  { %6344 = vmatpush1.bf16.msra.mxu0 %v10424_v58  ;;  %v10463_v58 = vld [vmem:[#allocation9] ss:$8 sps:$4 sm:$0xff]  }
 0x4ef   :  { %6345 = vmatprep.subr.bf16.mxu0 %v10429_v35  ;;  %v10465_v35 = vld [vmem:[#allocation9 + $0x4] ss:$8 sps:$4 sm:$0xff]  }
 0x4f0   :  { %7406 = vmatprep.subr.bf16.mxu1 %v10465_v35  ;;  %v10487_v35 = vld [vmem:[#allocation9 + $0x80] ss:$8 sps:$4 sm:$0xff]  }
 0x4f1   :  { %7407 = vmatpush1.bf16.msra.mxu1 %v10463_v58 }
 0x4f2   :  { %6346 = vmatpush1.bf16.msra.mxu0 %v10427_v33  ;;  %v10468_v33 = vld [vmem:[#allocation9 + $0x14] ss:$8 sps:$4 sm:$0xff]  }
 0x4f3   :  { %6347 = vmatprep.subr.bf16.mxu0 %v10432_v52  ;;  %v10466_v52 = vld [vmem:[#allocation9 + $0x10] ss:$8 sps:$4 sm:$0xff]   ;;  %7408 = vmatprep.subr.bf16.mxu1 %v10468_v33  ;;  %v10489_v33 = vld [vmem:[#allocation9 + $0x84] ss:$8 sps:$4 sm:$0xff]  }
 0x4f5   :  { %7409 = vmatpush1.bf16.msra.mxu1 %v10466_v52  ;;  %v10492_v52 = vld [vmem:[#allocation9 + $0x94] ss:$8 sps:$4 sm:$0xff]  }
 0x4f6   :  { %6348 = vmatpush1.bf16.msra.mxu0 %v10430_v39  ;;  %v10471_v39 = vld [vmem:[#allocation9 + $0x24] ss:$8 sps:$4 sm:$0xff]  }
 0x4f7   :  { %6349 = vmatprep.subr.bf16.mxu0 %v10435_v40  ;;  %v10469_v40 = vld [vmem:[#allocation9 + $0x20] ss:$8 sps:$4 sm:$0xff]   ;;  %7410 = vmatprep.subr.bf16.mxu1 %v10471_v39  ;;  %v10490_v39 = vld [vmem:[#allocation9 + $0x90] ss:$8 sps:$4 sm:$0xff]  }
 0x4f9   :  { %7411 = vmatpush1.bf16.msra.mxu1 %v10469_v40  ;;  %v10495_v40 = vld [vmem:[#allocation9 + $0xa4] ss:$8 sps:$4 sm:$0xff]  }
 0x4fa   :  { %6350 = vmatpush1.bf16.msra.mxu0 %v10433_v41  ;;  %v10474_v41 = vld [vmem:[#allocation9 + $0x34] ss:$8 sps:$4 sm:$0xff]  }
 0x4fb   :  { %6351 = vmatprep.subr.bf16.mxu0 %v10438_v42  ;;  %v10472_v42 = vld [vmem:[#allocation9 + $0x30] ss:$8 sps:$4 sm:$0xff]   ;;  %7412 = vmatprep.subr.bf16.mxu1 %v10474_v41  ;;  %v10493_v41 = vld [vmem:[#allocation9 + $0xa0] ss:$8 sps:$4 sm:$0xff]  }
 0x4fd   :  { %7413 = vmatpush1.bf16.msra.mxu1 %v10472_v42  ;;  %v10498_v42 = vld [vmem:[#allocation9 + $0xb4] ss:$8 sps:$4 sm:$0xff]  }
 0x4fe   :  { %6352 = vmatpush1.bf16.msra.mxu0 %v10436_v43  ;;  %v10477_v43 = vld [vmem:[#allocation9 + $0x44] ss:$8 sps:$4 sm:$0xff]  }
 0x4ff   :  { %6362 = vmatprep.subr.bf16.mxu0 %v10441_v45  ;;  %v10475_v45 = vld [vmem:[#allocation9 + $0x40] ss:$8 sps:$4 sm:$0xff]   ;;  %7414 = vmatprep.subr.bf16.mxu1 %v10477_v43  ;;  %v10496_v43 = vld [vmem:[#allocation9 + $0xb0] ss:$8 sps:$4 sm:$0xff]  }
 0x501   :  { %6354 = vmatmul.mubr.bf16.vlgmr.msra.gmra.mrb[44].mxu0 %v11296_v0  ;;  %v10454_v0 = vld [vmem:[#allocation7 + $0xba8] ss:$28 sps:$4 sm:$0xff]   ;;  %7415 = vmatpush1.bf16.msra.mxu1 %v10475_v45 }
 0x502   :  { %6363 = vmatpush1.bf16.msra.mxu0 %v10439_v50  ;;  %6394 = vmatprep.mubr.bf16.mxu0 %v10876_v24  ;;  %v10480_v50 = vld [vmem:[#allocation9 + $0x54] ss:$8 sps:$4 sm:$0xff]   ;;  %v10501_v45 = vld [vmem:[#allocation9 + $0xc4] ss:$8 sps:$4 sm:$0xff]  }
 0x503   :  { %6364 = vmatprep.subr.bf16.mxu0 %v10444_v51  ;;  %v10478_v51 = vld [vmem:[#allocation9 + $0x50] ss:$8 sps:$4 sm:$0xff]   ;;  %7416 = vmatprep.subr.bf16.mxu1 %v10480_v50  ;;  %v10499_v50 = vld [vmem:[#allocation9 + $0xc0] ss:$8 sps:$4 sm:$0xff]  }
 0x505   :  { %7417 = vmatpush1.bf16.msra.mxu1 %v10478_v51  ;;  %v10504_v51 = vld [vmem:[#allocation9 + $0xd4] ss:$8 sps:$4 sm:$0xff]  }
 0x506   :  { %6365 = vmatpush1.bf16.msra.mxu0 %v10442_v7 }
 0x507   :  { %6366 = vmatprep.subr.bf16.mxu0 %v10447_v17  ;;  %v10483_v17 = vld [vmem:[#allocation9 + $0x64] ss:$8 sps:$4 sm:$0xff]  }
 0x508   :  { %7418 = vmatprep.subr.bf16.mxu1 %v10483_v17  ;;  %v10507_v17 = vld [vmem:[#allocation9 + $0xe4] ss:$8 sps:$4 sm:$0xff]  }
 0x50a   :  { %6367 = vmatpush1.bf16.msra.mxu0 %v10445_v57 }
 0x50b   :  { %6368 = vmatprep.subr.bf16.mxu0 %v10450_v37 }
 0x50e   :  { %6369 = vmatpush1.bf16.msra.mxu0 %v10448_v59 }
 0x50f   :  { %6370 = vmatprep.subr.bf16.mxu0 %v10453_v6 }
 0x512   :  { %6371 = vmatpush1.bf16.msra.mxu0 %v10451_v36  ;;  %v10481_v36 = vld [vmem:[#allocation9 + $0x60] ss:$8 sps:$4 sm:$0xff]  }
 0x513   :  { %6372 = vmatprep.subr.bf16.mxu0 %v10456_v53  ;;  %v10486_v53 = vld [vmem:[#allocation9 + $0x74] ss:$8 sps:$4 sm:$0xff]   ;;  %7419 = vmatpush1.bf16.msra.mxu1 %v10481_v36  ;;  %v10513_v36 = vld [vmem:[#allocation9 + $0x104] ss:$8 sps:$4 sm:$0xff]  }
 0x514   :  { %v11332_v38 = vpop.f32.mrb[40].mxu0  ;;  %7420 = vmatprep.subr.bf16.mxu1 %v10486_v53 }
 0x515   :  { %v11334_v61 = vpop.f32.mrb[40].mxu1  ;;  %v11336_v55 = vpop.f32.mrb[41].mxu0 }
 0x516   :  { %v11338_v14 = vpop.f32.mrb[41].mxu1  ;;  %v6072_v62 = vpop.f32.mrb[42].mxu0  ;;  %6373 = vmatpush1.bf16.msra.mxu0 %v10454_v0  ;;  %v10484_v0 = vld [vmem:[#allocation9 + $0x70] ss:$8 sps:$4 sm:$0xff]  }
 0x517   :  { %v6236_v1 = vpop.f32.mrb[42].mxu1  ;;  %v6073_v15 = vpop.f32.mrb[43].mxu0  ;;  %6374 = vmatprep.subr.bf16.mxu0 %v10459_v9  ;;  %7421 = vmatpush1.bf16.msra.mxu1 %v10484_v0  ;;  %v3863_v9 = vrot.slane %v11341_v26, %v11185_v32  ;;  %v3867_v62 = vrot.slane %v11341_v26, %v11187_v56 }
 0x518   :  { %v6237_v49 = vpop.f32.mrb[43].mxu1  ;;  %v3871_v15 = vrot.slane %v11341_v26, %v11189_v8  ;;  %7422 = vmatprep.subr.bf16.mxu1 %v10489_v33 }
 0x519   :  { %v11355_v1 = vadd.f32 %v11336_v55, %v3867_v62 }
 0x51a   :  { %6375 = vmatpush1.bf16.msra.mxu0 %v10457_v10  ;;  %v11352_v10 = vadd.f32 %v11332_v38, %v3863_v9  ;;  %v3875_v38 = vrot.slane %v11341_v26, %v11194_v34 }
 0x51b   :  { %6376 = vmatprep.subr.bf16.mxu0 %v10462_v2  ;;  %v6581_v49 = vmul.f32 %v11355_v1, %v11355_v1  ;;  %7423 = vmatpush1.bf16.msra.mxu1 %v10487_v35 }
 0x51c   :  { %v6580_v2 = vmul.f32 %v11352_v10, %v11352_v10  ;;  %7424 = vmatprep.subr.bf16.mxu1 %v10492_v52 }
 0x51e   :  { %6377 = vmatpush1.bf16.msra.mxu0 %v10460_v11  ;;  %v11364_v11 = vadd.f32 %v11334_v61, %v3871_v15  ;;  %v6587_v55 = vadd.f32 %v6581_v49, %v6580_v2  ;;  %v3883_v61 = vrot.slane %v11341_v26, %v11209_v48  ;;  %v6564_v49 = vld [vmem:[#allocation13 + $0x4] ss:$8 sm:$0xf] }
 0x51f   :  { %7425 = vmatpush1.bf16.msra.mxu1 %v10490_v39 }
 0x520   :  { %7426 = vmatprep.subr.bf16.mxu1 %v10495_v40 }
 0x521   :  { %6395 = vmatmul.mubr.bf16.vlgmr.msra.gmra.mrb[44].mxu0 %v11304_v3 }
 0x523   :  { %7427 = vmatpush1.bf16.msra.mxu1 %v10493_v41 }
 0x524   :  { %7428 = vmatprep.subr.bf16.mxu1 %v10498_v42 }
 0x527   :  { %7429 = vmatpush1.bf16.msra.mxu1 %v10496_v43 }
 0x528   :  { %7430 = vmatprep.subr.bf16.mxu1 %v10501_v45 }
 0x52b   :  { %7431 = vmatpush1.bf16.msra.mxu1 %v10499_v50 }
 0x52c   :  { %7432 = vmatprep.subr.bf16.mxu1 %v10504_v51 }
 0x535   :  { %v9150_v5 = vpop.f32.mrb[44].mxu1 }
 0x536   :  { %v9151_v13 = vpop.f32.mrb[45].mxu1 }
 0x537   :  { %v9152_v16 = vadd.f32 %v9151_v13, %v9150_v5  ;;  %v9153_v18 = vpop.f32.mrb[46].mxu1  ;;  %v6571_v5 = vadd.f32 %v11355_v1, %v11352_v10  ;;  %v6582_v13 = vmul.f32 %v11364_v11, %v11364_v11 }
 0x538   :  { %v9154_v21 = vpop.f32.mrb[47].mxu1 }
 0x539   :  { %v6438_v47 = vadd.f32 %v9152_v16, %v3887_v44  ;;  %v11373_v16 = vadd.f32 %v11338_v14, %v3875_v38  ;;  %v6572_v18 = vadd.f32 %v11364_v11, %v6571_v5  ;;  %v3879_v21 = vrot.slane %v11341_v26, %v11207_v46  ;;  %v6565_v38 = vld [vmem:[#allocation13 + $0x4] ss:$8 sm:$0xf0] }
 0x53a   :  { %v6588_v19 = vadd.f32 %v6587_v55, %v6582_v13  ;;  %v6568_v55 = vld [vmem:[#allocation13 + $0x5] ss:$8 sm:$0xf] }
 0x53b   :  { %v6573_v44 = vadd.f32 %v11373_v16, %v6572_v18  ;;  %v6569_v13 = vld [vmem:[#allocation13 + $0x5] ss:$8 sm:$0xf0]  ;;  %v6566_v18 = vor.u32 %v6565_v38, %v6564_v49 }
 0x53c   :  { %v10519_v38 = vld [vmem:[#allocation9 + $0x124] ss:$8 sps:$4 sm:$0xff]  }
 0x555   :  { %v9172_v23 = vpop.f32.mrb[48].mxu1 }
 0x556   :  { %v9173_v22 = vpop.f32.mrb[49].mxu1 }
 0x557   :  { %v9174_v12 = vadd.f32 %v9173_v22, %v9172_v23  ;;  %v9175_v25 = vpop.f32.mrb[50].mxu1  ;;  %v6583_v23 = vmul.f32 %v11373_v16, %v11373_v16 }
 0x558   :  { %v9176_v27 = vpop.f32.mrb[51].mxu1 }
 0x559   :  { %v6478_v63 = vadd.f32 %v9174_v12, %v6438_v47  ;;  %v6589_v25 = vadd.f32 %v6588_v19, %v6583_v23  ;;  %v6626_v23 = vrot.slane %v6566_v18, %v11189_v8 }
 0x575   :  { %v9194_v3 = vpop.f32.mrb[52].mxu1 }
 0x576   :  { %v9195_v4 = vpop.f32.mrb[53].mxu1 }
 0x577   :  { %v9196_v28 = vadd.f32 %v9195_v4, %v9194_v3  ;;  %v9197_v29 = vpop.f32.mrb[54].mxu1 }
 0x578   :  { %v9198_v30 = vpop.f32.mrb[55].mxu1 }
 0x579   :  { %v6518_v31 = vadd.f32 %v9196_v28, %v6478_v63 }
 0x595   :  { %v6557_v7 = vpop.f32.mrb[56].mxu1 }
 0x596   :  { %v11345_v57 = vadd.f32 %v6557_v7, %v6518_v31  ;;  %v9280_v37 = vpop.f32.mrb[57].mxu1  ;;  %v10502_v7 = vld [vmem:[#allocation9 + $0xd0] ss:$8 sps:$4 sm:$0xff]  }
 0x597   :  { %v6560_v59 = vpop.f32.mrb[58].mxu1  ;;  %7433 = vmatpush1.bf16.msra.mxu1 %v10502_v7  ;;  %v10505_v37 = vld [vmem:[#allocation9 + $0xe0] ss:$8 sps:$4 sm:$0xff]  }
 0x598   :  { %v9281_v6 = vpop.f32.mrb[59].mxu1  ;;  %v6586_v31 = vmul.f32 %v11345_v57, %v11345_v57  ;;  %7434 = vmatprep.subr.bf16.mxu1 %v10507_v17  ;;  %v10510_v59 = vld [vmem:[#allocation9 + $0xf4] ss:$8 sps:$4 sm:$0xff]  }
 0x599   :  { %v10508_v6 = vld [vmem:[#allocation9 + $0xf0] ss:$8 sps:$4 sm:$0xff]  }
 0x59b   :  { %7435 = vmatpush1.bf16.msra.mxu1 %v10505_v37 }
 0x59c   :  { %7436 = vmatprep.subr.bf16.mxu1 %v10510_v59 }
 0x59f   :  { %7437 = vmatpush1.bf16.msra.mxu1 %v10508_v6 }
 0x5a0   :  { %7447 = vmatprep.subr.bf16.mxu1 %v10513_v36 }
 0x5f4   :  { %v6396_v20 = vpop.f32.mrb[44].mxu0 }
 0x5f5   :  { %v11383_v22 = vadd.f32 %v6396_v20, %v3879_v21  ;;  %v6398_v47 = vpop.f32.mrb[45].mxu0  ;;  %v6570_v21 = vor.u32 %v6569_v13, %v6568_v55  ;;  %v6618_v20 = vrot.slane %v6566_v18, %v11185_v32  ;;  %v10517_v55 = vld [vmem:[#allocation9 + $0x120] ss:$8 sps:$4 sm:$0xff]   ;;  %v10522_v13 = vld [vmem:[#allocation9 + $0x134] ss:$8 sps:$4 sm:$0xff]  }
 0x5f6   :  { %v11385_v14 = vadd.f32 %v6398_v47, %v3883_v61  ;;  %v6400_v12 = vpop.f32.mrb[46].mxu0  ;;  %v6622_v61 = vrot.slane %v6566_v18, %v11187_v56  ;;  %v6638_v47 = vrot.slane %v6566_v18, %v11209_v48 }
 0x5f7   :  { %v6584_v27 = vmul.f32 %v11383_v22, %v11383_v22  ;;  %v6401_v63 = vpop.f32.mrb[47].mxu0  ;;  %v6574_v26 = vadd.f32 %v11383_v22, %v6573_v44  ;;  %v6665_v19 = vrot.slane %v6570_v21, %v11187_v56  ;;  %v6630_v44 = vrot.slane %v6566_v18, %v11194_v34 }
 0x5f8   :  { %v6585_v3 = vmul.f32 %v11385_v14, %v11385_v14  ;;  %v6634_v12 = vrot.slane %v6566_v18, %v11207_v46  ;;  %v6673_v63 = vrot.slane %v6570_v21, %v11194_v34  ;;  %v6677_v33 = vrot.slane %v6570_v21, %v11207_v46 }
 0x5f9   :  { %v6575_v4 = vadd.f32 %v11385_v14, %v6574_v26  ;;  %v6590_v28 = vadd.f32 %v6589_v25, %v6584_v27  ;;  %v6642_v25 = vrot.slane %v6566_v18, %v11218_v60  ;;  %v6661_v27 = vrot.slane %v6570_v21, %v11185_v32  ;;  %v10520_v18 = vld [vmem:[#allocation9 + $0x130] ss:$8 sps:$4 sm:$0xff]  }
 0x5fa   :  { %v6669_v26 = vrot.slane %v6570_v21, %v11189_v8 }
 0x5fb   :  { %v6576_v29 = vadd.f32 %v6575_v4, %v11345_v57  ;;  %v6591_v30 = vadd.f32 %v6590_v28, %v6585_v3  ;;  %v6681_v3 = vrot.slane %v6570_v21, %v11209_v48 }
 0x5fd   :  { %6577 = vadd.xlane.f32.xlu1 %v6576_v29  ;;  %v6592_v58 = vadd.f32 %v6591_v30, %v6586_v31 }
 0x601   :  { %6593 = vadd.xlane.f32.xlu1 %v6592_v58 }
 0x68a   :  { %v6578_v53 = vpop.xlane.xlu1 %6577 }
 0x68b   :  { %v6579_v0 = vmul.f32 0.0012594458, %v6578_v53 }
 0x68d   :  { %v6596_v62 = vmul.f32 %v6579_v0, %v6579_v0  ;;  %v6599_v4 = vsub.f32 %v11355_v1, %v6579_v0  ;;  %v6598_v28 = vsub.f32 %v11352_v10, %v6579_v0  ;;  %v6601_v29 = vsub.f32 %v11373_v16, %v6579_v0 }
 0x68e   :  { %v6594_v9 = vpop.xlane.xlu1 %6593  ;;  %v6600_v30 = vsub.f32 %v11364_v11, %v6579_v0  ;;  %v6603_v58 = vsub.f32 %v11385_v14, %v6579_v0  ;;  %v6602_v35 = vsub.f32 %v11383_v22, %v6579_v0  ;;  %v6604_v34 = vsub.f32 %v11345_v57, %v6579_v0 }
 0x68f   :  { %v6595_v15 = vmul.f32 0.0012594458, %v6594_v9  ;;  %v6685_v16 = vrot.slane %v6570_v21, %v11218_v60  ;;  %v10525_v21 = vld [vmem:[#allocation9 + $0x144] ss:$8 sps:$4 sm:$0xff]  }
 0x691   :  { %v6597_v2 = vsub.f32 %v6595_v15, %v6596_v62  ;;  %v10511_v62 = vld [vmem:[#allocation9 + $0x100] ss:$8 sps:$4 sm:$0xff]  }
 0x693   :  { %v6605_v5 = vadd.f32 1e-05, %v6597_v2  ;;  %v10516_v2 = vld [vmem:[#allocation9 + $0x114] ss:$8 sps:$4 sm:$0xff]  }
 0x695   :  { %10664 = vrsqrt.f32 %v6605_v5  ;;  %v10514_v5 = vld [vmem:[#allocation9 + $0x110] ss:$8 sps:$4 sm:$0xff]  }
 0x69f   :  { %v10665_v31 = vpop.eup %10664 }
 0x6a0   :  { %v6608_v8 = vmul.f32 %v10665_v31, %v6599_v4  ;;  %v6607_v52 = vmul.f32 %v10665_v31, %v6598_v28  ;;  %v6610_v48 = vmul.f32 %v10665_v31, %v6601_v29  ;;  %v6609_v39 = vmul.f32 %v10665_v31, %v6600_v30  ;;  %v10541_v4 = vld [vmem:[#allocation9 + $0x1a0] ss:$8 sps:$4 sm:$0xff]   ;;  %v10546_v28 = vld [vmem:[#allocation9 + $0x1b4] ss:$8 sps:$4 sm:$0xff]   ;;  %v10544_v29 = vld [vmem:[#allocation9 + $0x1b0] ss:$8 sps:$4 sm:$0xff]  }
 0x6a1   :  { %v6612_v1 = vmul.f32 %v10665_v31, %v6603_v58  ;;  %v6611_v40 = vmul.f32 %v10665_v31, %v6602_v35  ;;  %v6613_v10 = vmul.f32 %v10665_v31, %v6604_v34  ;;  %v10549_v30 = vld [vmem:[#allocation9 + $0x1c4] ss:$8 sps:$4 sm:$0xff]   ;;  %v10547_v31 = vld [vmem:[#allocation9 + $0x1c0] ss:$8 sps:$4 sm:$0xff]   ;;  %v10552_v58 = vld [vmem:[#allocation9 + $0x1d4] ss:$8 sps:$4 sm:$0xff]  }
 0x6a2   :  { %v6651_v41 = vmul.f32 %v6622_v61, %v6608_v8  ;;  %v6650_v11 = vmul.f32 %v6618_v20, %v6607_v52  ;;  %v6653_v42 = vmul.f32 %v6630_v44, %v6610_v48  ;;  %v6652_v43 = vmul.f32 %v6626_v23, %v6609_v39  ;;  %v10523_v61 = vld [vmem:[#allocation9 + $0x140] ss:$8 sps:$4 sm:$0xff]   ;;  %v10526_v20 = vld [vmem:[#allocation9 + $0x150] ss:$8 sps:$4 sm:$0xff]   ;;  %v10531_v44 = vld [vmem:[#allocation9 + $0x164] ss:$8 sps:$4 sm:$0xff]  }
 0x6a3   :  { %v6655_v14 = vmul.f32 %v6638_v47, %v6612_v1  ;;  %v6654_v45 = vmul.f32 %v6634_v12, %v6611_v40  ;;  %v6656_v22 = vmul.f32 %v6642_v25, %v6613_v10  ;;  %v10529_v23 = vld [vmem:[#allocation9 + $0x160] ss:$8 sps:$4 sm:$0xff]   ;;  %v10534_v47 = vld [vmem:[#allocation9 + $0x174] ss:$8 sps:$4 sm:$0xff]   ;;  %v10532_v12 = vld [vmem:[#allocation9 + $0x170] ss:$8 sps:$4 sm:$0xff]  }
 0x6a4   :  { %v6694_v50 = vadd.f32 %v6665_v19, %v6651_v41  ;;  %v6693_v46 = vadd.f32 %v6661_v27, %v6650_v11  ;;  %v6696_v51 = vadd.f32 %v6673_v63, %v6653_v42  ;;  %v11417_v57 = vadd.f32 %v6669_v26, %v6652_v43  ;;  %v10528_v19 = vld [vmem:[#allocation9 + $0x154] ss:$8 sps:$4 sm:$0xff]   ;;  %v10537_v25 = vld [vmem:[#allocation9 + $0x184] ss:$8 sps:$4 sm:$0xff]   ;;  %v10535_v27 = vld [vmem:[#allocation9 + $0x180] ss:$8 sps:$4 sm:$0xff]  }
 0x6a5   :  { %v11419_v7 = vadd.f32 %v6681_v3, %v6655_v14  ;;  %v11421_v17 = vadd.f32 %v6677_v33, %v6654_v45  ;;  %v11423_v37 = vadd.f32 %v6685_v16, %v6656_v22  ;;  %v10540_v63 = vld [vmem:[#allocation9 + $0x194] ss:$8 sps:$4 sm:$0xff]   ;;  %v10538_v26 = vld [vmem:[#allocation9 + $0x190] ss:$8 sps:$4 sm:$0xff]   ;;  %v10543_v3 = vld [vmem:[#allocation9 + $0x1a4] ss:$8 sps:$4 sm:$0xff]  }
 0x6a6   :  { %v6701_v59 = vmul.f32 0.2, %v6694_v50  ;;  %v6700_v60 = vmul.f32 0.2, %v6693_v46  ;;  %v6703_v6 = vmul.f32 0.2, %v6696_v51 }
 0x6a7   :  { %v10550_v35 = vld [vmem:[#allocation9 + $0x1d0] ss:$8 sps:$4 sm:$0xff]   ;;  %v10555_v33 = vld [vmem:[#allocation9 + $0x1e4] ss:$8 sps:$4 sm:$0xff]   ;;  %v10553_v34 = vld [vmem:[#allocation9 + $0x1e0] ss:$8 sps:$4 sm:$0xff]  }
 0x6a8   :  { %v6708_v36 = vmax.f32 %v6694_v50, %v6701_v59  ;;  %v6707_v53 = vmax.f32 %v6693_v46, %v6700_v60  ;;  %v6710_v0 = vmax.f32 %v6696_v51, %v6703_v6  ;;  %v10558_v8 = vld [vmem:[#allocation9 + $0x1f4] ss:$8 sps:$4 sm:$0xff]   ;;  %v6702_v52 = vmul.f32 0.2, %v11417_v57  ;;  %v10556_v39 = vld [vmem:[#allocation9 + $0x1f0] ss:$8 sps:$4 sm:$0xff]  }
 0x6a9   :  { %v6705_v48 = vmul.f32 0.2, %v11419_v7  ;;  %v10561_v40 = vld [vmem:[#allocation9 + $0x204] ss:$8 sps:$4 sm:$0xff]   ;;  %v10559_v16 = vld [vmem:[#allocation9 + $0x200] ss:$8 sps:$4 sm:$0xff]  }
 0x6aa   :  { %v6715_v9 = vpack.c.bf16 %v6708_v36, %v6708_v36  ;;  %v6714_v15 = vpack.c.bf16 %v6707_v53, %v6707_v53  ;;  %v6717_v49 = vpack.c.bf16 %v6710_v0, %v6710_v0  ;;  %v6709_v1 = vmax.f32 %v11417_v57, %v6702_v52  ;;  %v10564_v11 = vld [vmem:[#allocation9 + $0x214] ss:$8 sps:$4 sm:$0xff]   ;;  %v10562_v43 = vld [vmem:[#allocation9 + $0x210] ss:$8 sps:$4 sm:$0xff]   ;;  %v10567_v14 = vld [vmem:[#allocation9 + $0x224] ss:$8 sps:$4 sm:$0xff]  }
 0x6ab   :  { %v6712_v10 = vmax.f32 %v11419_v7, %v6705_v48  ;;  %v10565_v45 = vld [vmem:[#allocation9 + $0x220] ss:$8 sps:$4 sm:$0xff]   ;;  %v10570_v22 = vld [vmem:[#allocation9 + $0x234] ss:$8 sps:$4 sm:$0xff]   ;;  %v10568_v50 = vld [vmem:[#allocation9 + $0x230] ss:$8 sps:$4 sm:$0xff]  }
 0x6ac   :  { %7438 = vmatprep.mubr.bf16.mxu1 %v6715_v9  ;;  %v6716_v41 = vpack.c.bf16 %v6709_v1, %v6709_v1  ;;  %v10573_v46 = vld [vmem:[#allocation9 + $0x244] ss:$8 sps:$4 sm:$0xff]   ;;  %v10571_v51 = vld [vmem:[#allocation9 + $0x240] ss:$8 sps:$4 sm:$0xff]   ;;  %v10576_v57 = vld [vmem:[#allocation9 + $0x254] ss:$8 sps:$4 sm:$0xff]  }
 0x6ad   :  { %7439 = vmatmul.mubr.bf16.vlgmr.msra.gmra.mrb[60].mxu1 %v6714_v15  ;;  %v6719_v42 = vpack.c.bf16 %v6712_v10, %v6712_v10  ;;  %v10574_v7 = vld [vmem:[#allocation9 + $0x250] ss:$8 sps:$4 sm:$0xff]   ;;  %v10579_v59 = vld [vmem:[#allocation9 + $0x264] ss:$8 sps:$4 sm:$0xff]   ;;  %v10577_v60 = vld [vmem:[#allocation9 + $0x260] ss:$8 sps:$4 sm:$0xff]  }
 0x6ae   :  { %7448 = vmatpush1.bf16.msra.mxu1 %v10511_v62  ;;  %7479 = vmatprep.mubr.bf16.mxu1 %v6717_v49  ;;  %v10582_v6 = vld [vmem:[#allocation9 + $0x274] ss:$8 sps:$4 sm:$0xff]   ;;  %v10580_v36 = vld [vmem:[#allocation9 + $0x270] ss:$8 sps:$4 sm:$0xff]   ;;  %v10585_v53 = vld [vmem:[#allocation9 + $0x284] ss:$8 sps:$4 sm:$0xff]  }
 0x6af   :  { %7449 = vmatprep.subr.bf16.mxu1 %v10516_v2  ;;  %v10583_v0 = vld [vmem:[#allocation9 + $0x280] ss:$8 sps:$4 sm:$0xff]   ;;  %v10588_v9 = vld [vmem:[#allocation9 + $0x294] ss:$8 sps:$4 sm:$0xff]   ;;  %v10586_v62 = vld [vmem:[#allocation9 + $0x290] ss:$8 sps:$4 sm:$0xff]  }
 0x6b0   :  { %v10591_v15 = vld [vmem:[#allocation9 + $0x2a4] ss:$8 sps:$4 sm:$0xff]   ;;  %v10589_v2 = vld [vmem:[#allocation9 + $0x2a0] ss:$8 sps:$4 sm:$0xff]   ;;  %v10594_v49 = vld [vmem:[#allocation9 + $0x2b4] ss:$8 sps:$4 sm:$0xff]  }
 0x6b1   :  { %v6834_v48 = vld [vmem:[#allocation13 + $0x6] ss:$8 sm:$0x3] }
 0x6b2   :  { %7450 = vmatpush1.bf16.msra.mxu1 %v10514_v5  ;;  %v10592_v5 = vld [vmem:[#allocation9 + $0x2b0] ss:$8 sps:$4 sm:$0xff]   ;;  %v6843_v1 = vrot.slane %v6834_v48, %v11187_v56 }
 0x6b3   :  { %7451 = vmatprep.subr.bf16.mxu1 %v10519_v38  ;;  %v10597_v38 = vld [vmem:[#allocation9 + $0x2c4] ss:$8 sps:$4 sm:$0xff]  }
 0x6b6   :  { %7452 = vmatpush1.bf16.msra.mxu1 %v10517_v55  ;;  %v10595_v55 = vld [vmem:[#allocation9 + $0x2c0] ss:$8 sps:$4 sm:$0xff]  }
 0x6b7   :  { %7453 = vmatprep.subr.bf16.mxu1 %v10522_v13  ;;  %v10600_v13 = vld [vmem:[#allocation9 + $0x2d4] ss:$8 sps:$4 sm:$0xff]  }
 0x6ba   :  { %7454 = vmatpush1.bf16.msra.mxu1 %v10520_v18  ;;  %v10598_v18 = vld [vmem:[#allocation9 + $0x2d0] ss:$8 sps:$4 sm:$0xff]  }
 0x6bb   :  { %7455 = vmatprep.subr.bf16.mxu1 %v10525_v21  ;;  %v10603_v21 = vld [vmem:[#allocation9 + $0x2e4] ss:$8 sps:$4 sm:$0xff]  }
 0x6be   :  { %7456 = vmatpush1.bf16.msra.mxu1 %v10523_v61  ;;  %v10601_v61 = vld [vmem:[#allocation9 + $0x2e0] ss:$8 sps:$4 sm:$0xff]  }
 0x6bf   :  { %7457 = vmatprep.subr.bf16.mxu1 %v10528_v19  ;;  %v10606_v19 = vld [vmem:[#allocation9 + $0x2f4] ss:$8 sps:$4 sm:$0xff]  }
 0x6c2   :  { %7458 = vmatpush1.bf16.msra.mxu1 %v10526_v20  ;;  %v6704_v20 = vmul.f32 0.2, %v11421_v17 }
 0x6c3   :  { %7459 = vmatprep.subr.bf16.mxu1 %v10531_v44  ;;  %v10604_v44 = vld [vmem:[#allocation9 + $0x2f0] ss:$8 sps:$4 sm:$0xff]  }
 0x6c6   :  { %7460 = vmatpush1.bf16.msra.mxu1 %v10529_v23  ;;  %v6711_v23 = vmax.f32 %v11421_v17, %v6704_v20  ;;  %v10621_v17 = vld [vmem:[#allocation9 + $0x344] ss:$8 sps:$4 sm:$0xff]  }
 0x6c7   :  { %7461 = vmatprep.subr.bf16.mxu1 %v10534_v47  ;;  %v10609_v47 = vld [vmem:[#allocation9 + $0x304] ss:$8 sps:$4 sm:$0xff]  }
 0x6ca   :  { %7462 = vmatpush1.bf16.msra.mxu1 %v10532_v12  ;;  %v10607_v12 = vld [vmem:[#allocation9 + $0x300] ss:$8 sps:$4 sm:$0xff]  }
 0x6cb   :  { %7463 = vmatprep.subr.bf16.mxu1 %v10537_v25  ;;  %v6718_v25 = vpack.c.bf16 %v6711_v23, %v6711_v23 }
 0x6ce   :  { %7464 = vmatpush1.bf16.msra.mxu1 %v10535_v27  ;;  %v10612_v27 = vld [vmem:[#allocation9 + $0x314] ss:$8 sps:$4 sm:$0xff]  }
 0x6cf   :  { %7465 = vmatprep.subr.bf16.mxu1 %v10540_v63  ;;  %v10610_v63 = vld [vmem:[#allocation9 + $0x310] ss:$8 sps:$4 sm:$0xff]  }
 0x6d2   :  { %7466 = vmatpush1.bf16.msra.mxu1 %v10538_v26  ;;  %v10615_v26 = vld [vmem:[#allocation9 + $0x324] ss:$8 sps:$4 sm:$0xff]  }
 0x6d3   :  { %7467 = vmatprep.subr.bf16.mxu1 %v10543_v3  ;;  %v10613_v3 = vld [vmem:[#allocation9 + $0x320] ss:$8 sps:$4 sm:$0xff]  }
 0x6d6   :  { %7468 = vmatpush1.bf16.msra.mxu1 %v10541_v4  ;;  %v10618_v4 = vld [vmem:[#allocation9 + $0x334] ss:$8 sps:$4 sm:$0xff]  }
 0x6d7   :  { %7469 = vmatprep.subr.bf16.mxu1 %v10546_v28  ;;  %v10616_v28 = vld [vmem:[#allocation9 + $0x330] ss:$8 sps:$4 sm:$0xff]  }
 0x6da   :  { %7470 = vmatpush1.bf16.msra.mxu1 %v10544_v29  ;;  %v10619_v29 = vld [vmem:[#allocation9 + $0x340] ss:$8 sps:$4 sm:$0xff]  }
 0x6db   :  { %7471 = vmatprep.subr.bf16.mxu1 %v10549_v30  ;;  %v10624_v30 = vld [vmem:[#allocation9 + $0x354] ss:$8 sps:$4 sm:$0xff]  }
 0x6de   :  { %7472 = vmatpush1.bf16.msra.mxu1 %v10547_v31  ;;  %v10622_v31 = vld [vmem:[#allocation9 + $0x350] ss:$8 sps:$4 sm:$0xff]  }
 0x6df   :  { %7473 = vmatprep.subr.bf16.mxu1 %v10552_v58  ;;  %v10627_v58 = vld [vmem:[#allocation9 + $0x364] ss:$8 sps:$4 sm:$0xff]  }
 0x6e2   :  { %7474 = vmatpush1.bf16.msra.mxu1 %v10550_v35  ;;  %v10630_v35 = vld [vmem:[#allocation9 + $0x374] ss:$8 sps:$4 sm:$0xff]  }
 0x6e3   :  { %7475 = vmatprep.subr.bf16.mxu1 %v10555_v33  ;;  %v6706_v33 = vmul.f32 0.2, %v11423_v37 }
 0x6e6   :  { %7476 = vmatpush1.bf16.msra.mxu1 %v10553_v34  ;;  %v10628_v34 = vld [vmem:[#allocation9 + $0x370] ss:$8 sps:$4 sm:$0xff]  }
 0x6e7   :  { %7477 = vmatprep.subr.bf16.mxu1 %v10558_v8  ;;  %v6713_v8 = vmax.f32 %v11423_v37, %v6706_v33 }
 0x6e9   :  { %v6720_v52 = vpack.c.bf16 %v6713_v8, %v6713_v8 }
 0x6ea   :  { %7478 = vmatpush1.bf16.msra.mxu1 %v10556_v39  ;;  %v6839_v39 = vrot.slane %v6834_v48, %v11185_v32 }
 0x6eb   :  { %7488 = vmatprep.subr.bf16.mxu1 %v10561_v40 }
 0x6ed   :  { %7480 = vmatmul.mubr.bf16.vlgmr.msra.gmra.mrb[60].mxu1 %v6716_v41 }
 0x6ee   :  { %7489 = vmatpush1.bf16.msra.mxu1 %v10559_v16  ;;  %7520 = vmatprep.mubr.bf16.mxu1 %v6719_v42 }
 0x6ef   :  { %7490 = vmatprep.subr.bf16.mxu1 %v10564_v11 }
 0x6f2   :  { %7491 = vmatpush1.bf16.msra.mxu1 %v10562_v43 }
 0x6f3   :  { %7492 = vmatprep.subr.bf16.mxu1 %v10567_v14 }
 0x6f6   :  { %7493 = vmatpush1.bf16.msra.mxu1 %v10565_v45 }
 0x6f7   :  { %7494 = vmatprep.subr.bf16.mxu1 %v10570_v22  ;;  %v10631_v22 = vld [vmem:[#allocation10 + $0x40] sm:$0xff]  }
 0x6f8   :  { %9209 = vmatprep.subr.bf16.mxu0 %v10631_v22 }
 0x6fa   :  { %7495 = vmatpush1.bf16.msra.mxu1 %v10568_v50  ;;  %v10632_v50 = vld [vmem:[#allocation10] sm:$0xff]  }
 0x6fb   :  { %7496 = vmatprep.subr.bf16.mxu1 %v10573_v46  ;;  %9210 = vmatpush3.bf16.msra.mxu0 %v10632_v50  ;;  %v10633_v46 = vld [vmem:[#allocation10 + $0x48] sm:$0xff]  }
 0x6fc   :  { %9211 = vmatprep.subr.bf16.mxu0 %v10633_v46 }
 0x6fe   :  { %7497 = vmatpush1.bf16.msra.mxu1 %v10571_v51  ;;  %v10634_v51 = vld [vmem:[#allocation10 + $0x8] sm:$0xff]  }
 0x6ff   :  { %7498 = vmatprep.subr.bf16.mxu1 %v10576_v57  ;;  %9212 = vmatpush3.bf16.msra.mxu0 %v10634_v51  ;;  %v10635_v57 = vld [vmem:[#allocation10 + $0x50] sm:$0xff]  }
 0x700   :  { %9213 = vmatprep.subr.bf16.mxu0 %v10635_v57 }
 0x702   :  { %7499 = vmatpush1.bf16.msra.mxu1 %v10574_v7  ;;  %v10636_v7 = vld [vmem:[#allocation10 + $0x10] sm:$0xff]  }
 0x703   :  { %7500 = vmatprep.subr.bf16.mxu1 %v10579_v59  ;;  %v10637_v59 = vld [vmem:[#allocation10 + $0x58] sm:$0xff]   ;;  %9214 = vmatpush3.bf16.msra.mxu0 %v10636_v7 }
 0x704   :  { %9215 = vmatprep.subr.bf16.mxu0 %v10637_v59  ;;  %v7793_v59 = vld [vmem:[#allocation13 + $0x3a] ss:$0 sm:$0xff] }
 0x706   :  { %7501 = vmatpush1.bf16.msra.mxu1 %v10577_v60  ;;  %v10638_v60 = vld [vmem:[#allocation10 + $0x18] sm:$0xff]  }
 0x707   :  { %7502 = vmatprep.subr.bf16.mxu1 %v10582_v6  ;;  %v10639_v6 = vld [vmem:[#allocation10 + $0x60] sm:$0xff]   ;;  %9216 = vmatpush3.bf16.msra.mxu0 %v10638_v60 }
 0x708   :  { %9217 = vmatprep.subr.bf16.mxu0 %v10639_v6  ;;  %v7794_v6 = vld [vmem:[#allocation13 + $0x3b] ss:$0 sm:$0xff] }
 0x70a   :  { %7503 = vmatpush1.bf16.msra.mxu1 %v10580_v36  ;;  %v10640_v36 = vld [vmem:[#allocation10 + $0x20] sm:$0xff]  }
 0x70b   :  { %7504 = vmatprep.subr.bf16.mxu1 %v10585_v53  ;;  %v10641_v53 = vld [vmem:[#allocation10 + $0x68] sm:$0xff]   ;;  %9218 = vmatpush3.bf16.msra.mxu0 %v10640_v36 }
 0x70c   :  { %9219 = vmatprep.subr.bf16.mxu0 %v10641_v53 }
 0x70e   :  { %7505 = vmatpush1.bf16.msra.mxu1 %v10583_v0  ;;  %v10642_v0 = vld [vmem:[#allocation10 + $0x28] sm:$0xff]  }
 0x70f   :  { %7506 = vmatprep.subr.bf16.mxu1 %v10588_v9  ;;  %v10643_v9 = vld [vmem:[#allocation10 + $0x70] sm:$0xff]   ;;  %9220 = vmatpush3.bf16.msra.mxu0 %v10642_v0 }
 0x710   :  { %9221 = vmatprep.subr.bf16.mxu0 %v10643_v9 }
 0x712   :  { %7507 = vmatpush1.bf16.msra.mxu1 %v10586_v62  ;;  %v10644_v62 = vld [vmem:[#allocation10 + $0x30] sm:$0xff]  }
 0x713   :  { %7508 = vmatprep.subr.bf16.mxu1 %v10591_v15  ;;  %v10645_v15 = vld [vmem:[#allocation10 + $0x78] sm:$0xff]   ;;  %9222 = vmatpush3.bf16.msra.mxu0 %v10644_v62 }
 0x714   :  { %9223 = vmatprep.subr.bf16.mxu0 %v10645_v15  ;;  %v7829_v15 = vld [vmem:[#allocation13 + $0x3c] ss:$0 sm:$0xff] }
 0x716   :  { %7509 = vmatpush1.bf16.msra.mxu1 %v10589_v2  ;;  %v10646_v2 = vld [vmem:[#allocation10 + $0x38] sm:$0xff]  }
 0x717   :  { %7510 = vmatprep.subr.bf16.mxu1 %v10594_v49  ;;  %9224 = vmatpush3.bf16.msra.mxu0 %v10646_v2 }
 0x718   :  { %9282 = vmatprep.subr.bf16.mxu0 %v10877_v54 }
 0x71a   :  { %7511 = vmatpush1.bf16.msra.mxu1 %v10592_v5 }
 0x71b   :  { %7512 = vmatprep.subr.bf16.mxu1 %v10597_v38 }
 0x71e   :  { %7513 = vmatpush1.bf16.msra.mxu1 %v10595_v55 }
 0x71f   :  { %7514 = vmatprep.subr.bf16.mxu1 %v10600_v13 }
 0x722   :  { %7515 = vmatpush1.bf16.msra.mxu1 %v10598_v18 }
 0x723   :  { %7516 = vmatprep.subr.bf16.mxu1 %v10603_v21 }
 0x726   :  { %7517 = vmatpush1.bf16.msra.mxu1 %v10601_v61  ;;  %v7571_v61 = vld [vmem:[#allocation13 + $0x7] ss:$8 sm:$0x3] }
 0x727   :  { %7518 = vmatprep.subr.bf16.mxu1 %v10606_v19  ;;  %v7573_v19 = vld [vmem:[#allocation13 + $0x38] ss:$8 sm:$0x3]  ;;  %v7596_v23 = vrot.slane %v7571_v61, %v11185_v32 }
 0x72a   :  { %7519 = vmatpush1.bf16.msra.mxu1 %v10604_v44 }
 0x72b   :  { %7529 = vmatprep.subr.bf16.mxu1 %v10609_v47  ;;  %v7600_v47 = vrot.slane %v7571_v61, %v11187_v56  ;;  %v10655_v61 = vld [vmem:[%s11529_s8] sm:$0xff]  }
 0x72d   :  { %7521 = vmatmul.mubr.bf16.vlgmr.msra.gmra.mrb[60].mxu1 %v6718_v25 }
 0x72e   :  { %7530 = vmatpush1.bf16.msra.mxu1 %v10607_v12  ;;  %7561 = vmatprep.mubr.bf16.mxu1 %v10876_v24  ;;  %v10625_v24 = vld [vmem:[#allocation9 + $0x360] ss:$8 sps:$4 sm:$0xff]  }
 0x72f   :  { %7531 = vmatprep.subr.bf16.mxu1 %v10612_v27  ;;  %v7609_v27 = vrot.slane %v7573_v19, %v11185_v32  ;;  %v7656_v32 = vld [vmem:[#allocation13 + $0x39] ss:$0 sm:$0xff] }
 0x732   :  { %7532 = vmatpush1.bf16.msra.mxu1 %v10610_v63  ;;  %v7613_v63 = vrot.slane %v7573_v19, %v11187_v56  ;;  %v10656_v19 = vld [vmem:[%s11529_s8 + $0x8] sm:$0xff]  }
 0x733   :  { %7533 = vmatprep.subr.bf16.mxu1 %v10615_v26 }
 0x736   :  { %7534 = vmatpush1.bf16.msra.mxu1 %v10613_v3 }
 0x737   :  { %7535 = vmatprep.subr.bf16.mxu1 %v10618_v4 }
 0x73a   :  { %7536 = vmatpush1.bf16.msra.mxu1 %v10616_v28 }
 0x73b   :  { %7537 = vmatprep.subr.bf16.mxu1 %v10621_v17 }
 0x73e   :  { %7538 = vmatpush1.bf16.msra.mxu1 %v10619_v29 }
 0x73f   :  { %7539 = vmatprep.subr.bf16.mxu1 %v10624_v30 }
 0x742   :  { %7540 = vmatpush1.bf16.msra.mxu1 %v10622_v31 }
 0x743   :  { %7541 = vmatprep.subr.bf16.mxu1 %v10627_v58 }
 0x746   :  { %7542 = vmatpush1.bf16.msra.mxu1 %v10625_v24 }
 0x747   :  { %7543 = vmatprep.subr.bf16.mxu1 %v10630_v35 }
 0x74a   :  { %7544 = vmatpush1.bf16.msra.mxu1 %v10628_v34 }
 0x74d   :  { %7562 = vmatmul.mubr.bf16.vlgmr.msra.gmra.mrb[60].mxu1 %v6720_v52 }
 0x820   :  { %v7563_v40 = vpop.f32.mrb[60].mxu1 }
 0x821   :  { %v11436_v10 = vadd.f32 %v7563_v40, %v6839_v39  ;;  %v7565_v16 = vpop.f32.mrb[61].mxu1  ;;  %v10648_v40 = vld [vmem:[%s11528_s7 + $0x8] sm:$0xff]  }
 0x822   :  { %v9335_v41 = vadd.f32 %v7565_v16, %v6843_v1  ;;  %v7567_v11 = vpop.f32.mrb[62].mxu1  ;;  %v10647_v1 = vld [vmem:[%s11528_s7] sm:$0xff]   ;;  %v10650_v16 = vld [vmem:[%s11528_s7 + $0x18] sm:$0xff]  }
 0x823   :  { %v7568_v42 = vpop.f32.mrb[63].mxu1  ;;  %v7578_v43 = vmul.f32 %v11436_v10, %v11436_v10  ;;  %v10652_v11 = vld [vmem:[%s11528_s7 + $0x28] sm:$0xff]  }
 0x824   :  { %v7574_v37 = vadd.f32 %v9335_v41, %v11436_v10  ;;  %v7579_v14 = vmul.f32 %v9335_v41, %v9335_v41  ;;  %v10653_v42 = vld [vmem:[%s11528_s7 + $0x30] sm:$0xff]  }
 0x826   :  { %7575 = vadd.xlane.f32.xlu0 %v7574_v37  ;;  %v7580_v45 = vadd.f32 %v7579_v14, %v7578_v43  ;;  %v10654_v43 = vld [vmem:[%s11528_s7 + $0x38] sm:$0xff]  }
 0x828   :  { %7581 = vadd.xlane.f32.xlu1 %v7580_v45 }
 0x8b3   :  { %v7576_v49 = vpop.xlane.xlu0 %7575 }
 0x8b4   :  { %v7577_v5 = vmul.f32 0.00390625, %v7576_v49 }
 0x8b5   :  { %v7582_v38 = vpop.xlane.xlu1 %7581 }
 0x8b6   :  { %v7583_v55 = vmul.f32 0.00390625, %v7582_v38  ;;  %v7584_v13 = vmul.f32 %v7577_v5, %v7577_v5  ;;  %v7586_v20 = vsub.f32 %v11436_v10, %v7577_v5  ;;  %v7587_v44 = vsub.f32 %v9335_v41, %v7577_v5  ;;  %v10649_v10 = vld [vmem:[%s11528_s7 + $0x10] sm:$0xff]   ;;  %v10651_v41 = vld [vmem:[%s11528_s7 + $0x20] sm:$0xff]  }
 0x8b8   :  { %v7585_v18 = vsub.f32 %v7583_v55, %v7584_v13 }
 0x8ba   :  { %v7588_v21 = vadd.f32 1e-05, %v7585_v18 }
 0x8bc   :  { %10666 = vrsqrt.f32 %v7588_v21 }
 0x8c6   :  { %v10667_v12 = vpop.eup %10666 }
 0x8c7   :  { %v7591_v25 = vmul.f32 %v10667_v12, %v7587_v44  ;;  %v7590_v26 = vmul.f32 %v10667_v12, %v7586_v20  ;;  %v10657_v20 = vld [vmem:[%s11529_s8 + $0x10] sm:$0xff]   ;;  %v10658_v44 = vld [vmem:[%s11529_s8 + $0x18] sm:$0xff]  }
 0x8c9   :  { %v7604_v3 = vmul.f32 %v7600_v47, %v7591_v25  ;;  %v7603_v4 = vmul.f32 %v7596_v23, %v7590_v26 }
 0x8cb   :  { %v7617_v28 = vadd.f32 %v7613_v63, %v7604_v3  ;;  %v7616_v17 = vadd.f32 %v7609_v27, %v7603_v4 }
 0x8cd   :  { %v7619_v29 = vmul.f32 0.2, %v7617_v28  ;;  %v7618_v30 = vmul.f32 0.2, %v7616_v17 }
 0x8cf   :  { %v7621_v31 = vmax.f32 %v7617_v28, %v7619_v29  ;;  %v7620_v58 = vmax.f32 %v7616_v17, %v7618_v30  ;;  %v7918_v28 = vld [vmem:[#allocation13 + $0x3d] ss:$0 sm:$0xff]  ;;  %v7919_v29 = vld [vmem:[#allocation13 + $0x3e] ss:$0 sm:$0xff] }
 0x8d1   :  { %v7623_v24 = vpack.c.bf16 %v7621_v31, %v7621_v31  ;;  %v7622_v35 = vpack.c.bf16 %v7620_v58, %v7620_v58 }
 0x8d3   :  { %7785 = vmatprep.mubr.bf16.mxu0 %v7623_v24 }
 0x8d4   :  { %7786 = vmatmul.mubr.bf16.vlgmr.msra.gmra.mrb[48].mxu0 %v7622_v35 }
 0x8d5   :  { %9298 = vmatprep.mubr.msk.bf16.mxu0 %vm10878_vm2, %v10877_v54  ;;  %9283 = vmatpush3.bf16.msra.mxu0 %v10647_v1 }
 0x8d6   :  { %9284 = vmatprep.subr.bf16.mxu0 %v10877_v54 }
 0x8d9   :  { %9285 = vmatpush3.bf16.msra.mxu0 %v10648_v40  ;;  %v10659_v40 = vld [vmem:[%s11530_s9] sm:$0xff]  }
 0x8da   :  { %9286 = vmatprep.subr.bf16.mxu0 %v10877_v54 }
 0x8dd   :  { %9287 = vmatpush3.bf16.msra.mxu0 %v10649_v10  ;;  %v10660_v10 = vld [vmem:[%s11530_s9 + $0x8] sm:$0xff]  }
 0x8de   :  { %9288 = vmatprep.subr.bf16.mxu0 %v10877_v54 }
 0x8e1   :  { %9289 = vmatpush3.bf16.msra.mxu0 %v10650_v16 }
 0x8e2   :  { %9290 = vmatprep.subr.bf16.mxu0 %v10877_v54 }
 0x8e5   :  { %9291 = vmatpush3.bf16.msra.mxu0 %v10651_v41 }
 0x8e6   :  { %9292 = vmatprep.subr.bf16.mxu0 %v10877_v54 }
 0x8e9   :  { %9293 = vmatpush3.bf16.msra.mxu0 %v10652_v11 }
 0x8ea   :  { %9294 = vmatprep.subr.bf16.mxu0 %v10877_v54 }
 0x8ed   :  { %9295 = vmatpush3.bf16.msra.mxu0 %v10653_v42 }
 0x8ee   :  { %9296 = vmatprep.subr.bf16.mxu0 %v10877_v54 }
 0x8f1   :  { %9297 = vmatpush3.bf16.msra.mxu0 %v10654_v43 }
 0x8f2   :  { %9302 = vmatprep.subr.bf16.mxu0 %v10877_v54 }
 0x9a7   :  { %v9225_v33 = vpop.f32.mrb[48].mxu0 }
 0x9a8   :  { %v9226_v34 = vpop.f32.mrb[49].mxu0 }
 0x9a9   :  { %v9227_v56 = vadd.f32 %v9226_v34, %v9225_v33  ;;  %v9228_v8 = vpop.f32.mrb[50].mxu0  ;;  %v7949_v33 = vld [vmem:[#allocation13 + $0x3f] ss:$0 sm:$0xff] }
 0x9aa   :  { %v9229_v52 = vpop.f32.mrb[51].mxu0 }
 0x9ab   :  { %v7788_v48 = vadd.f32 %v9227_v56, %v7656_v32 }
 0x9ad   :  { %7795 = vadd.xlane.f32.xlu0 %v7788_v48  ;;  %v7798_v39 = vmul.f32 %v7788_v48, %v7788_v48 }
 0x9af   :  { %7799 = vadd.xlane.f32.xlu1 %v7798_v39 }
 0xa3a   :  { %v7796_v37 = vpop.xlane.xlu0 %7795 }
 0xa3b   :  { %v7797_v14 = vmul.f32 0.0078125, %v7796_v37 }
 0xa3c   :  { %v7800_v45 = vpop.xlane.xlu1 %7799 }
 0xa3d   :  { %v7802_v22 = vmul.f32 %v7797_v14, %v7797_v14  ;;  %v7801_v50 = vmul.f32 0.0078125, %v7800_v45  ;;  %v7804_v57 = vsub.f32 %v7788_v48, %v7797_v14 }
 0xa3f   :  { %v7803_v46 = vsub.f32 %v7801_v50, %v7802_v22  ;;  %v8017_v50 = vld [vmem:[#allocation13 + $0x70] ss:$0 sm:$0xff] }
 0xa41   :  { %v7805_v51 = vadd.f32 1e-05, %v7803_v46 }
 0xa43   :  { %10668 = vrsqrt.f32 %v7805_v51  ;;  %v8018_v51 = vld [vmem:[#allocation13 + $0x71] ss:$0 sm:$0xff] }
 0xa4d   :  { %v10669_v7 = vpop.eup %10668 }
 0xa4e   :  { %v7807_v60 = vmul.f32 %v10669_v7, %v7804_v57 }
 0xa50   :  { %v7808_v36 = vmul.f32 %v7807_v60, %v7793_v59 }
 0xa52   :  { %v7809_v53 = vadd.f32 %v7808_v36, %v7794_v6  ;;  %v10661_v36 = vld [vmem:[#allocation12] sm:$0xff]  }
 0xa54   :  { %v7810_v0 = vmul.f32 0.2, %v7809_v53 }
 0xa56   :  { %v7811_v9 = vmax.f32 %v7809_v53, %v7810_v0  ;;  %v8044_v53 = vld [vmem:[#allocation13 + $0x72] ss:$0 sm:$0xff] }
 0xa58   :  { %v7812_v62 = vpack.c.bf16 %v7811_v9, %v7811_v9 }
 0xa5a   :  { %9299 = vmatmul.mubr.bf16.vlgmr.msra.gmra.mrb[52].mxu0 %v7812_v62 }
 0xa5b   :  { %9310 = vmatprep.mubr.msk.bf16.mxu0 %vm10878_vm2, %v10877_v54  ;;  %9303 = vmatpush3.bf16.msra.mxu0 %v10655_v61 }
 0xa5c   :  { %9304 = vmatprep.subr.bf16.mxu0 %v10877_v54 }
 0xa5f   :  { %9305 = vmatpush3.bf16.msra.mxu0 %v10656_v19 }
 0xa60   :  { %9306 = vmatprep.subr.bf16.mxu0 %v10877_v54 }
 0xa63   :  { %9307 = vmatpush3.bf16.msra.mxu0 %v10657_v20 }
 0xa64   :  { %9308 = vmatprep.subr.bf16.mxu0 %v10877_v54 }
 0xa67   :  { %9309 = vmatpush3.bf16.msra.mxu0 %v10658_v44 }
 0xa68   :  { %9314 = vmatprep.subr.bf16.mxu0 %v10877_v54 }
 0xb2d   :  { %v7912_v2 = vpop.f32.mrb[52].mxu0 }
 0xb2e   :  { %v7913_v49 = vadd.f32 %v7912_v2, %v7829_v15  ;;  %v9300_v5 = vpop.f32.mrb[53].mxu0 }
 0xb2f   :  { %v7915_v38 = vpop.f32.mrb[54].mxu0 }
 0xb30   :  { %v9301_v55 = vpop.f32.mrb[55].mxu0  ;;  %v7921_v13 = vsel %vm7920_vm4, %v7913_v49, 0.0  ;;  %v7925_v18 = vmul.f32 %v7913_v49, %v7913_v49 }
 0xb31   :  { %7922 = vadd.xlane.f32.xlu0 %v7921_v13  ;;  %v8105_v55 = vld [vmem:[#allocation13 + $0x73] ss:$0 sm:$0xff] }
 0xb32   :  { %v7926_v21 = vsel %vm7920_vm4, %v7925_v18, 0.0 }
 0xb33   :  { %7927 = vadd.xlane.f32.xlu1 %v7926_v21 }
 0xbbe   :  { %v7923_v23 = vpop.xlane.xlu0 %7922 }
 0xbbf   :  { %v7924_v47 = vmul.f32 0.015625, %v7923_v23 }
 0xbc0   :  { %v7928_v12 = vpop.xlane.xlu1 %7927 }
 0xbc1   :  { %v7930_v25 = vmul.f32 %v7924_v47, %v7924_v47  ;;  %v7929_v27 = vmul.f32 0.015625, %v7928_v12  ;;  %v7932_v3 = vsub.f32 %v7913_v49, %v7924_v47 }
 0xbc3   :  { %v7931_v63 = vsub.f32 %v7929_v27, %v7930_v25 }
 0xbc5   :  { %v7933_v26 = vadd.f32 1e-05, %v7931_v63 }
 0xbc7   :  { %10670 = vrsqrt.f32 %v7933_v26 }
 0xbd1   :  { %v10671_v4 = vpop.eup %10670 }
 0xbd2   :  { %v7935_v17 = vmul.f32 %v10671_v4, %v7932_v3 }
 0xbd4   :  { %v7936_v30 = vmul.f32 %v7935_v17, %v7918_v28 }
 0xbd6   :  { %v7937_v31 = vadd.f32 %v7936_v30, %v7919_v29 }
 0xbd8   :  { %v7938_v58 = vmul.f32 0.2, %v7937_v31 }
 0xbda   :  { %v7939_v24 = vmax.f32 %v7937_v31, %v7938_v58 }
 0xbdc   :  { %v7940_v35 = vpack.c.bf16 %v7939_v24, %v7939_v24 }
 0xbde   :  { %9311 = vmatmul.mubr.msk.bf16.vlgmr.msra.gmra.mrb[56].mxu0 %vm7920_vm4, %v7940_v35 }
 0xbdf   :  { %9318 = vmatprep.mubr.msk.bf16.mxu0 %vm10878_vm2, %v10877_v54  ;;  %9315 = vmatpush3.bf16.msra.mxu0 %v10659_v40 }
 0xbe0   :  { %9316 = vmatprep.subr.bf16.mxu0 %v10877_v54 }
 0xbe3   :  { %9317 = vmatpush3.bf16.msra.mxu0 %v10660_v10 }
 0xbe4   :  { %9322 = vmatprep.subr.bf16.mxu0 %v10877_v54 }
 0xcb1   :  { %v8011_v32 = vpop.f32.mrb[56].mxu0 }
 0xcb2   :  { %v8012_v34 = vadd.f32 %v8011_v32, %v7949_v33  ;;  %v9312_v56 = vpop.f32.mrb[57].mxu0 }
 0xcb3   :  { %v8014_v8 = vpop.f32.mrb[58].mxu0 }
 0xcb4   :  { %v9313_v52 = vpop.f32.mrb[59].mxu0  ;;  %v8020_v48 = vsel %vm8019_vm5, %v8012_v34, 0.0  ;;  %v8024_v39 = vmul.f32 %v8012_v34, %v8012_v34 }
 0xcb5   :  { %8021 = vadd.xlane.f32.xlu0 %v8020_v48 }
 0xcb6   :  { %v8025_v1 = vsel %vm8019_vm5, %v8024_v39, 0.0 }
 0xcb7   :  { %8026 = vadd.xlane.f32.xlu1 %v8025_v1 }
 0xd42   :  { %v8022_v16 = vpop.xlane.xlu0 %8021 }
 0xd43   :  { %v8023_v41 = vmul.f32 0.03125, %v8022_v16 }
 0xd44   :  { %v8027_v11 = vpop.xlane.xlu1 %8026 }
 0xd45   :  { %v8029_v42 = vmul.f32 %v8023_v41, %v8023_v41  ;;  %v8028_v43 = vmul.f32 0.03125, %v8027_v11  ;;  %v8031_v45 = vsub.f32 %v8012_v34, %v8023_v41 }
 0xd47   :  { %v8030_v37 = vsub.f32 %v8028_v43, %v8029_v42 }
 0xd49   :  { %v8032_v14 = vadd.f32 1e-05, %v8030_v37 }
 0xd4b   :  { %10672 = vrsqrt.f32 %v8032_v14 }
 0xd55   :  { %v10673_v22 = vpop.eup %10672 }
 0xd56   :  { %v8034_v46 = vmul.f32 %v10673_v22, %v8031_v45 }
 0xd58   :  { %v8035_v57 = vmul.f32 %v8034_v46, %v8017_v50 }
 0xd5a   :  { %v8036_v7 = vadd.f32 %v8035_v57, %v8018_v51 }
 0xd5c   :  { %v8037_v59 = vmul.f32 0.2, %v8036_v7 }
 0xd5e   :  { %v8038_v60 = vmax.f32 %v8036_v7, %v8037_v59 }
 0xd60   :  { %v8039_v6 = vpack.c.bf16 %v8038_v60, %v8038_v60 }
 0xd62   :  { %9319 = vmatmul.mubr.msk.bf16.vlgmr.msra.gmra.mrb[60].mxu0 %vm8019_vm5, %v8039_v6 }
 0xd63   :  { %9324 = vmatprep.mubr.msk.bf16.mxu0 %vm10878_vm2, %v10877_v54  ;;  %9323 = vmatpush3.bf16.msra.mxu0 %v10661_v36 }
 0xe35   :  { %v8094_v0 = vpop.f32.mrb[60].mxu0 }
 0xe36   :  { %v8095_v9 = vadd.f32 %v8094_v0, %v8044_v53  ;;  %v9320_v62 = vpop.f32.mrb[61].mxu0 }
 0xe37   :  { %v8097_v15 = vpop.f32.mrb[62].mxu0 }
 0xe38   :  { %v8100_v2 = vmul.f32 0.2, %v8095_v9  ;;  %v9321_v49 = vpop.f32.mrb[63].mxu0 }
 0xe3a   :  { %v8101_v5 = vmax.f32 %v8095_v9, %v8100_v2 }
 0xe3c   :  { %v8102_v38 = vpack.c.bf16 %v8101_v5, %v8101_v5 }
 0xe3e   :  { %9325 = vmatmul.mubr.msk.bf16.vlgmr.msra.gmra.mrb[64].mxu0 %vm2329_vm0, %v8102_v38 }
 0xf11   :  { %v8149_v13 = vpop.f32.mrb[64].mxu0 }
 0xf12   :  { %v8150_v18 = vadd.f32 %v8149_v13, %v8105_v55  ;;  %v9326_v21 = vpop.f32.mrb[65].mxu0 }
 0xf13   :  { %v8152_v61 = vpop.f32.mrb[66].mxu0 }
 0xf14   :  { %8155 = vst [vmem:[%s11533_s12] sm:$0xff] %v8150_v18  ;;  %v9327_v54 = vpop.f32.mrb[67].mxu0 }
 0xf15   :  { %8160 = vsyncpa [#allocation3], 1 }
 0xf16   :  { %8161 = vsyncpa [#allocation5], 1 }
 0xf17   :  { %8162 = vsyncpa [#allocation8], 1 }
 0xf18   :  { %8163 = vsyncpa [#allocation11], 1 }
 0xf19   :  { %8164 = vsyncpa [#allocation14], 1 }

</bundles_post_ra>
